<compile_context>
chip_gen: v6e
topology: v6e:2x2x1
jax: 0.10.0
libtpu: 0.0.40
codegen_flags: <defaults>
</compile_context>

<pallas_src>
import numpy as np
import jax
import jax.numpy as jnp
from jax.experimental import pallas as pl
from jax.experimental.pallas import tpu as pltpu


def _round_up(x, m):
    return ((x + m - 1) // m) * m


def _default_epilogue_dtype():
    """bf16 epilogue on chips with a bf16 VALU (v6e / v7x), f32 otherwise."""
    try:
        kind = jax.devices()[0].device_kind.lower()
    except Exception:
        return jnp.float32
    if "v6" in kind or "v7" in kind:
        return jnp.bfloat16
    return jnp.float32


def _make_kernel(*, hidden, sub_m, n_sub, epilogue_dtype):
    bf = jnp.bfloat16
    use_bf16_ep = np.dtype(epilogue_dtype) == np.dtype(bf)

    def kernel(x_ref, w0cat_ref, wpack_ref, b_ref, out_ref):
        # x_ref:     (tile_m, in_ch)        f32
        # w0cat_ref: (in_ch, 2*hidden)      bf16   [w0 | w5x]
        # wpack_ref: (7, hidden, hidden)    bf16   [w1,w2,w3,w4,w5h,w6,w7]
        # b_ref:     (8, hidden)            f32
        # out_ref:   (tile_m, hidden)
        b_all = b_ref[...]

        def bias(i):
            return b_all[i].astype(bf) if use_bf16_ep else b_all[i]

        def epilogue(acc_f32, bias_ep):
            if use_bf16_ep:
                return jnp.maximum(acc_f32.astype(bf) + bias_ep, 0.0)
            return jnp.maximum(acc_f32 + bias_ep, 0.0)

        w0cat = w0cat_ref[...]

        # ---- layer 0 fused with the skip branch's x-matmul ------------------
        hs, skips = [], []
        b0 = bias(0)
        for s in range(n_sub):
            x_bf = x_ref[pl.ds(s * sub_m, sub_m), :].astype(bf)
            xw = jnp.dot(x_bf, w0cat, preferred_element_type=jnp.float32)
            hs.append(epilogue(xw[:, :hidden], b0))
            skips.append(xw[:, hidden:])       # f32 partial sum, used at layer 5

        # ---- layers 1..7 (layer 5 adds the stashed skip partial sum) --------
        for layer in range(1, 8):
            w = wpack_ref[layer - 1]           # (hidden, hidden) bf16
            bl = bias(layer)
            new_hs = []
            for s in range(n_sub):
                acc = jnp.dot(hs[s].astype(bf), w,
                              preferred_element_type=jnp.float32)
                if layer == 5:
                    acc = acc + skips[s]
                new_hs.append(epilogue(acc, bl))
            hs = new_hs

        for s in range(n_sub):
            out_ref[pl.ds(s * sub_m, sub_m), :] = hs[s].astype(out_ref.dtype)

    return kernel


def nerf_a_forward(x, params, *, tile_m=1024, out_dtype=None, epilogue_dtype=None):
    """x: (N, in_x_ch) f32.

    params: torch-layout weights stored as w{i}: (in_features, hidden) and
    b{i}: (1, hidden) for i in 0..7, where w5 has in_features = hidden + in_x_ch.
    """
    N, in_x_ch = x.shape
    hidden = params["w0"].shape[1]
    out_dtype = x.dtype if out_dtype is None else out_dtype
    if epilogue_dtype is None:
        epilogue_dtype = _default_epilogue_dtype()

    # Target >= 4 row tiles when possible so both v7x TensorCores get more than
    # one pipelined step each; shrink the tile for small N.
    while tile_m > 128 and pl.cdiv(N, tile_m) < 4:
        tile_m //= 2

    n_pad = _round_up(N, tile_m)
    x_p = x if n_pad == N else jnp.pad(x, ((0, n_pad - N), (0, 0)))

    bf = jnp.bfloat16
    w5 = params["w5"]
    # Fused layer-0 / skip-x weight: x @ [w0 | w5x] in one MXU pass.
    w0cat = jnp.concatenate([params["w0"], w5[hidden:]], axis=1).astype(bf)   # (in, 2H)
    wpack = jnp.stack([params["w1"], params["w2"], params["w3"], params["w4"],
                       w5[:hidden], params["w6"], params["w7"]]).astype(bf)   # (7, H, H)
    biases = jnp.concatenate([params[f"b{i}"] for i in range(8)], axis=0)     # (8, H) f32

    # Sub-tile interleaving inside the kernel (independent MXU work hides the
    # per-layer epilogue).
    sub_m = 256 if tile_m % 256 == 0 else tile_m
    n_sub = tile_m // sub_m

    kernel = _make_kernel(hidden=hidden, sub_m=sub_m, n_sub=n_sub,
                          epilogue_dtype=epilogue_dtype)

    w_bytes = (w0cat.size + wpack.size) * 2 + biases.size * 4
    cost = pl.CostEstimate(
        flops=2 * n_pad * (in_x_ch * 2 * hidden + 7 * hidden * hidden),
        transcendentals=0,
        bytes_accessed=(n_pad * in_x_ch * np.dtype(x.dtype).itemsize
                        + n_pad * hidden * np.dtype(out_dtype).itemsize
                        + w_bytes),
    )

    out = pl.pallas_call(
        kernel,
        out_shape=jax.ShapeDtypeStruct((n_pad, hidden), out_dtype),
        grid_spec=pltpu.PrefetchScalarGridSpec(
            num_scalar_prefetch=0,
            grid=(n_pad // tile_m,),
            in_specs=[
                pl.BlockSpec((tile_m, in_x_ch), lambda i: (i, 0)),   # rows tiled, K unpadded
                pl.BlockSpec(w0cat.shape, lambda i: (0, 0)),         # VMEM-resident weights
                pl.BlockSpec(wpack.shape, lambda i: (0, 0, 0)),
                pl.BlockSpec(biases.shape, lambda i: (0, 0)),
            ],
            out_specs=pl.BlockSpec((tile_m, hidden), lambda i: (i, 0)),
        ),
        compiler_params=pltpu.CompilerParams(
            dimension_semantics=("parallel",),
            vmem_limit_bytes=48 * 1024 * 1024,   # large tiles fit on v5e's 16 MiB default too
        ),
        cost_estimate=cost,
    )(x_p, w0cat, wpack, biases)

    return out[:N]


def init_params(key, in_x_ch=60, hidden_dim=256):
    """Deterministic synthetic parameters (not a checkpoint load).

    Weights stored (in_features, out_features); biases (1, out_features).
    Layer 5 (the concat layer) has in_features = hidden_dim + in_x_ch.
    """
    keys = jax.random.split(key, 8)
    p = {}

    def lin(k, fan_in, fan_out):
        kw, kb = jax.random.split(k)
        w = jax.random.normal(kw, (fan_in, fan_out), jnp.float32) / jnp.sqrt(fan_in)
        b = jax.random.normal(kb, (1, fan_out), jnp.float32) * 0.01
        return w, b

    in_features = in_x_ch
    for i in range(8):
        p[f"w{i}"], p[f"b{i}"] = lin(keys[i], in_features, hidden_dim)
        in_features = hidden_dim if i != 4 else hidden_dim + in_x_ch  # skip=4
    return p


def nerf_a_reference_f32(x, p):
    """Pure-JAX f32 reference exactly matching the PyTorch forward."""
    h = x
    for i in range(5):
        h = jnp.maximum(h @ p[f"w{i}"] + p[f"b{i}"], 0.0)
    resid = jnp.concatenate([h, x], axis=-1)
    h = jnp.maximum(resid @ p["w5"] + p["b5"], 0.0)
    h = jnp.maximum(h @ p["w6"] + p["b6"], 0.0)
    h = jnp.maximum(h @ p["w7"] + p["b7"], 0.0)
    return h


def nerf_a_reference_bf16(x, p, epilogue_dtype=jnp.float32):
    """Same structure with bf16 matmul operands / f32 accumulation and the
    kernel's epilogue dtype."""
    bf = jnp.bfloat16
    use_bf16_ep = np.dtype(epilogue_dtype) == np.dtype(bf)

    def lin(h, w, b):
        y = jnp.dot(h.astype(bf), w.astype(bf), preferred_element_type=jnp.float32)
        if use_bf16_ep:
            return jnp.maximum(y.astype(bf) + b.astype(bf), 0.0)
        return jnp.maximum(y + b, 0.0)

    h = x
    for i in range(5):
        h = lin(h, p[f"w{i}"], p[f"b{i}"])
    resid = jnp.concatenate([h.astype(jnp.float32), x], axis=-1)
    h = lin(resid, p["w5"], p["b5"])
    h = lin(h, p["w6"], p["b6"])
    h = lin(h, p["w7"], p["b7"])
    return h.astype(jnp.float32)


if __name__ == "__main__":
    key = jax.random.PRNGKey(0)
    k_params, k_x = jax.random.split(key)

    in_x_ch, hidden_dim = 60, 256       # module defaults
    N = 1000                            # not a tile multiple: exercises row padding

    params = init_params(k_params, in_x_ch=in_x_ch, hidden_dim=hidden_dim)
    x = jax.random.normal(k_x, (N, in_x_ch), jnp.float32)

    out = nerf_a_forward(x, params)
    out = jax.block_until_ready(out)
    assert out.shape == (N, hidden_dim)

    # Tight check vs. a reference using the same bf16-operand / accumulation /
    # epilogue math as the kernel.
    ep = _default_epilogue_dtype()
    ref_bf16 = nerf_a_reference_bf16(x, params, epilogue_dtype=ep)
    assert jnp.allclose(out.astype(jnp.float32), ref_bf16, atol=1e-2, rtol=1e-2), \
        "mismatch vs bf16 reference"

    # Coarse sanity vs. the exact f32 module semantics (bf16 operands introduce a
    # small relative error through the 8-layer chain).
    ref_f32 = nerf_a_reference_f32(x, params)
    rel = jnp.linalg.norm(out.astype(jnp.float32) - ref_f32) / jnp.linalg.norm(ref_f32)
    assert rel < 0.08, f"relative error vs f32 reference too large: {rel}"

    print("KERNEL_OK")
</pallas_src>

<mosaic_0001>
module attributes {stable_mosaic.version = 11 : i64} {
  func.func @kernel(%arg0: i32, %arg1: memref<256x60xf32, #tpu.memory_space<vmem>>, %arg2: memref<60x512xbf16, #tpu.memory_space<vmem>>, %arg3: memref<7x256x256xbf16, #tpu.memory_space<vmem>>, %arg4: memref<8x256xf32, #tpu.memory_space<vmem>>, %arg5: memref<256x256xf32, #tpu.memory_space<vmem>>) attributes {dimension_semantics = [#tpu.dimension_semantics<parallel>], iteration_bounds = array<i64: 4>, scalar_prefetch = 0 : i64, scratch_operands = 0 : i64, tpu.core_type = #tpu.core_type<tc>, window_params = [{transform_indices = @transform_0, window_bounds = array<i64: 256, 60>}, {pipeline_mode = #tpu.pipeline_mode<synchronous>, transform_indices = @transform_1, window_bounds = array<i64: 60, 512>}, {pipeline_mode = #tpu.pipeline_mode<synchronous>, transform_indices = @transform_2, window_bounds = array<i64: 7, 256, 256>}, {pipeline_mode = #tpu.pipeline_mode<synchronous>, transform_indices = @transform_3, window_bounds = array<i64: 8, 256>}, {transform_indices = @transform_4, window_bounds = array<i64: 256, 256>}]} {
    %c0 = arith.constant 0 : index
    %c0_0 = arith.constant 0 : index
    %0 = vector.load %arg4[%c0, %c0_0] : memref<8x256xf32, #tpu.memory_space<vmem>>, vector<8x256xf32>
    %c0_1 = arith.constant 0 : index
    %c0_2 = arith.constant 0 : index
    %1 = vector.load %arg2[%c0_1, %c0_2] : memref<60x512xbf16, #tpu.memory_space<vmem>>, vector<60x512xbf16>
    %2 = vector.extract_strided_slice %0 {offsets = [0, 0], sizes = [1, 256], strides = [1, 1]} : vector<8x256xf32> to vector<1x256xf32>
    %3 = vector.shape_cast %2 : vector<1x256xf32> to vector<256xf32>
    %c0_3 = arith.constant 0 : index
    %c0_4 = arith.constant 0 : index
    %4 = vector.load %arg1[%c0_3, %c0_4] : memref<256x60xf32, #tpu.memory_space<vmem>>, vector<256x60xf32>
    %5 = arith.truncf %4 : vector<256x60xf32> to vector<256x60xbf16>
    %cst = arith.constant dense<0.000000e+00> : vector<256x512xf32>
    %6 = tpu.matmul %5, %1, %cst {dimension_numbers = #tpu.dot_dimension_numbers<[1], [0], [0], [1], [0, 0, 1, 1], [], []>} : vector<256x60xbf16>, vector<60x512xbf16>, vector<256x512xf32> -> vector<256x512xf32>
    %7 = vector.extract_strided_slice %6 {offsets = [0, 0], sizes = [256, 256], strides = [1, 1]} : vector<256x512xf32> to vector<256x256xf32>
    %8 = vector.shape_cast %3 : vector<256xf32> to vector<1x256xf32>
    %9 = vector.broadcast %8 : vector<1x256xf32> to vector<256x256xf32>
    %10 = arith.addf %7, %9 : vector<256x256xf32>
    %cst_5 = arith.constant 0.000000e+00 : f32
    %11 = vector.broadcast %cst_5 : f32 to vector<256x256xf32>
    %12 = arith.maximumf %10, %11 : vector<256x256xf32>
    %13 = vector.extract_strided_slice %6 {offsets = [0, 256], sizes = [256, 256], strides = [1, 1]} : vector<256x512xf32> to vector<256x256xf32>
    %c0_6 = arith.constant 0 : index
    %c0_7 = arith.constant 0 : index
    %c0_8 = arith.constant 0 : index
    %14 = vector.load %arg3[%c0_6, %c0_7, %c0_8] : memref<7x256x256xbf16, #tpu.memory_space<vmem>>, vector<1x256x256xbf16>
    %15 = vector.shape_cast %14 : vector<1x256x256xbf16> to vector<256x256xbf16>
    %16 = vector.extract_strided_slice %0 {offsets = [1, 0], sizes = [1, 256], strides = [1, 1]} : vector<8x256xf32> to vector<1x256xf32>
    %17 = vector.shape_cast %16 : vector<1x256xf32> to vector<256xf32>
    %18 = arith.truncf %12 : vector<256x256xf32> to vector<256x256xbf16>
    %cst_9 = arith.constant dense<0.000000e+00> : vector<256x256xf32>
    %19 = tpu.matmul %18, %15, %cst_9 {dimension_numbers = #tpu.dot_dimension_numbers<[1], [0], [0], [1], [0, 0, 1, 1], [], []>} : vector<256x256xbf16>, vector<256x256xbf16>, vector<256x256xf32> -> vector<256x256xf32>
    %20 = vector.shape_cast %17 : vector<256xf32> to vector<1x256xf32>
    %21 = vector.broadcast %20 : vector<1x256xf32> to vector<256x256xf32>
    %22 = arith.addf %19, %21 : vector<256x256xf32>
    %cst_10 = arith.constant 0.000000e+00 : f32
    %23 = vector.broadcast %cst_10 : f32 to vector<256x256xf32>
    %24 = arith.maximumf %22, %23 : vector<256x256xf32>
    %c1 = arith.constant 1 : index
    %c0_11 = arith.constant 0 : index
    %c0_12 = arith.constant 0 : index
    %25 = vector.load %arg3[%c1, %c0_11, %c0_12] : memref<7x256x256xbf16, #tpu.memory_space<vmem>>, vector<1x256x256xbf16>
    %26 = vector.shape_cast %25 : vector<1x256x256xbf16> to vector<256x256xbf16>
    %27 = vector.extract_strided_slice %0 {offsets = [2, 0], sizes = [1, 256], strides = [1, 1]} : vector<8x256xf32> to vector<1x256xf32>
    %28 = vector.shape_cast %27 : vector<1x256xf32> to vector<256xf32>
    %29 = arith.truncf %24 : vector<256x256xf32> to vector<256x256xbf16>
    %cst_13 = arith.constant dense<0.000000e+00> : vector<256x256xf32>
    %30 = tpu.matmul %29, %26, %cst_13 {dimension_numbers = #tpu.dot_dimension_numbers<[1], [0], [0], [1], [0, 0, 1, 1], [], []>} : vector<256x256xbf16>, vector<256x256xbf16>, vector<256x256xf32> -> vector<256x256xf32>
    %31 = vector.shape_cast %28 : vector<256xf32> to vector<1x256xf32>
    %32 = vector.broadcast %31 : vector<1x256xf32> to vector<256x256xf32>
    %33 = arith.addf %30, %32 : vector<256x256xf32>
    %cst_14 = arith.constant 0.000000e+00 : f32
    %34 = vector.broadcast %cst_14 : f32 to vector<256x256xf32>
    %35 = arith.maximumf %33, %34 : vector<256x256xf32>
    %c2 = arith.constant 2 : index
    %c0_15 = arith.constant 0 : index
    %c0_16 = arith.constant 0 : index
    %36 = vector.load %arg3[%c2, %c0_15, %c0_16] : memref<7x256x256xbf16, #tpu.memory_space<vmem>>, vector<1x256x256xbf16>
    %37 = vector.shape_cast %36 : vector<1x256x256xbf16> to vector<256x256xbf16>
    %38 = vector.extract_strided_slice %0 {offsets = [3, 0], sizes = [1, 256], strides = [1, 1]} : vector<8x256xf32> to vector<1x256xf32>
    %39 = vector.shape_cast %38 : vector<1x256xf32> to vector<256xf32>
    %40 = arith.truncf %35 : vector<256x256xf32> to vector<256x256xbf16>
    %cst_17 = arith.constant dense<0.000000e+00> : vector<256x256xf32>
    %41 = tpu.matmul %40, %37, %cst_17 {dimension_numbers = #tpu.dot_dimension_numbers<[1], [0], [0], [1], [0, 0, 1, 1], [], []>} : vector<256x256xbf16>, vector<256x256xbf16>, vector<256x256xf32> -> vector<256x256xf32>
    %42 = vector.shape_cast %39 : vector<256xf32> to vector<1x256xf32>
    %43 = vector.broadcast %42 : vector<1x256xf32> to vector<256x256xf32>
    %44 = arith.addf %41, %43 : vector<256x256xf32>
    %cst_18 = arith.constant 0.000000e+00 : f32
    %45 = vector.broadcast %cst_18 : f32 to vector<256x256xf32>
    %46 = arith.maximumf %44, %45 : vector<256x256xf32>
    %c3 = arith.constant 3 : index
    %c0_19 = arith.constant 0 : index
    %c0_20 = arith.constant 0 : index
    %47 = vector.load %arg3[%c3, %c0_19, %c0_20] : memref<7x256x256xbf16, #tpu.memory_space<vmem>>, vector<1x256x256xbf16>
    %48 = vector.shape_cast %47 : vector<1x256x256xbf16> to vector<256x256xbf16>
    %49 = vector.extract_strided_slice %0 {offsets = [4, 0], sizes = [1, 256], strides = [1, 1]} : vector<8x256xf32> to vector<1x256xf32>
    %50 = vector.shape_cast %49 : vector<1x256xf32> to vector<256xf32>
    %51 = arith.truncf %46 : vector<256x256xf32> to vector<256x256xbf16>
    %cst_21 = arith.constant dense<0.000000e+00> : vector<256x256xf32>
    %52 = tpu.matmul %51, %48, %cst_21 {dimension_numbers = #tpu.dot_dimension_numbers<[1], [0], [0], [1], [0, 0, 1, 1], [], []>} : vector<256x256xbf16>, vector<256x256xbf16>, vector<256x256xf32> -> vector<256x256xf32>
    %53 = vector.shape_cast %50 : vector<256xf32> to vector<1x256xf32>
    %54 = vector.broadcast %53 : vector<1x256xf32> to vector<256x256xf32>
    %55 = arith.addf %52, %54 : vector<256x256xf32>
    %cst_22 = arith.constant 0.000000e+00 : f32
    %56 = vector.broadcast %cst_22 : f32 to vector<256x256xf32>
    %57 = arith.maximumf %55, %56 : vector<256x256xf32>
    %c4 = arith.constant 4 : index
    %c0_23 = arith.constant 0 : index
    %c0_24 = arith.constant 0 : index
    %58 = vector.load %arg3[%c4, %c0_23, %c0_24] : memref<7x256x256xbf16, #tpu.memory_space<vmem>>, vector<1x256x256xbf16>
    %59 = vector.shape_cast %58 : vector<1x256x256xbf16> to vector<256x256xbf16>
    %60 = vector.extract_strided_slice %0 {offsets = [5, 0], sizes = [1, 256], strides = [1, 1]} : vector<8x256xf32> to vector<1x256xf32>
    %61 = vector.shape_cast %60 : vector<1x256xf32> to vector<256xf32>
    %62 = arith.truncf %57 : vector<256x256xf32> to vector<256x256xbf16>
    %cst_25 = arith.constant dense<0.000000e+00> : vector<256x256xf32>
    %63 = tpu.matmul %62, %59, %cst_25 {dimension_numbers = #tpu.dot_dimension_numbers<[1], [0], [0], [1], [0, 0, 1, 1], [], []>} : vector<256x256xbf16>, vector<256x256xbf16>, vector<256x256xf32> -> vector<256x256xf32>
    %64 = arith.addf %63, %13 : vector<256x256xf32>
    %65 = vector.shape_cast %61 : vector<256xf32> to vector<1x256xf32>
    %66 = vector.broadcast %65 : vector<1x256xf32> to vector<256x256xf32>
    %67 = arith.addf %64, %66 : vector<256x256xf32>
    %cst_26 = arith.constant 0.000000e+00 : f32
    %68 = vector.broadcast %cst_26 : f32 to vector<256x256xf32>
    %69 = arith.maximumf %67, %68 : vector<256x256xf32>
    %c5 = arith.constant 5 : index
    %c0_27 = arith.constant 0 : index
    %c0_28 = arith.constant 0 : index
    %70 = vector.load %arg3[%c5, %c0_27, %c0_28] : memref<7x256x256xbf16, #tpu.memory_space<vmem>>, vector<1x256x256xbf16>
    %71 = vector.shape_cast %70 : vector<1x256x256xbf16> to vector<256x256xbf16>
    %72 = vector.extract_strided_slice %0 {offsets = [6, 0], sizes = [1, 256], strides = [1, 1]} : vector<8x256xf32> to vector<1x256xf32>
    %73 = vector.shape_cast %72 : vector<1x256xf32> to vector<256xf32>
    %74 = arith.truncf %69 : vector<256x256xf32> to vector<256x256xbf16>
    %cst_29 = arith.constant dense<0.000000e+00> : vector<256x256xf32>
    %75 = tpu.matmul %74, %71, %cst_29 {dimension_numbers = #tpu.dot_dimension_numbers<[1], [0], [0], [1], [0, 0, 1, 1], [], []>} : vector<256x256xbf16>, vector<256x256xbf16>, vector<256x256xf32> -> vector<256x256xf32>
    %76 = vector.shape_cast %73 : vector<256xf32> to vector<1x256xf32>
    %77 = vector.broadcast %76 : vector<1x256xf32> to vector<256x256xf32>
    %78 = arith.addf %75, %77 : vector<256x256xf32>
    %cst_30 = arith.constant 0.000000e+00 : f32
    %79 = vector.broadcast %cst_30 : f32 to vector<256x256xf32>
    %80 = arith.maximumf %78, %79 : vector<256x256xf32>
    %c6 = arith.constant 6 : index
    %c0_31 = arith.constant 0 : index
    %c0_32 = arith.constant 0 : index
    %81 = vector.load %arg3[%c6, %c0_31, %c0_32] : memref<7x256x256xbf16, #tpu.memory_space<vmem>>, vector<1x256x256xbf16>
    %82 = vector.shape_cast %81 : vector<1x256x256xbf16> to vector<256x256xbf16>
    %83 = vector.extract_strided_slice %0 {offsets = [7, 0], sizes = [1, 256], strides = [1, 1]} : vector<8x256xf32> to vector<1x256xf32>
    %84 = vector.shape_cast %83 : vector<1x256xf32> to vector<256xf32>
    %85 = arith.truncf %80 : vector<256x256xf32> to vector<256x256xbf16>
    %cst_33 = arith.constant dense<0.000000e+00> : vector<256x256xf32>
    %86 = tpu.matmul %85, %82, %cst_33 {dimension_numbers = #tpu.dot_dimension_numbers<[1], [0], [0], [1], [0, 0, 1, 1], [], []>} : vector<256x256xbf16>, vector<256x256xbf16>, vector<256x256xf32> -> vector<256x256xf32>
    %87 = vector.shape_cast %84 : vector<256xf32> to vector<1x256xf32>
    %88 = vector.broadcast %87 : vector<1x256xf32> to vector<256x256xf32>
    %89 = arith.addf %86, %88 : vector<256x256xf32>
    %cst_34 = arith.constant 0.000000e+00 : f32
    %90 = vector.broadcast %cst_34 : f32 to vector<256x256xf32>
    %91 = arith.maximumf %89, %90 : vector<256x256xf32>
    %c0_35 = arith.constant 0 : index
    %c0_36 = arith.constant 0 : index
    %92 = vector.load %arg5[%c0_35, %c0_36] : memref<256x256xf32, #tpu.memory_space<vmem>>, vector<256x256xf32>
    tpu.vector_store %arg5[%c0_35, %c0_36], %91 {strides = array<i32>} : memref<256x256xf32, #tpu.memory_space<vmem>>, vector<256x256xf32>,
    return
  }
  func.func @transform_0(%arg0: i32) -> (i32, i32) {
    %c0_i32 = arith.constant 0 : i32
    %c0_i32_0 = arith.constant 0 : i32
    return %arg0, %c0_i32 : i32, i32
  }
  func.func @transform_1(%arg0: i32) -> (i32, i32) {
    %c0_i32 = arith.constant 0 : i32
    %c0_i32_0 = arith.constant 0 : i32
    %c0_i32_1 = arith.constant 0 : i32
    return %c0_i32, %c0_i32_0 : i32, i32
  }
  func.func @transform_2(%arg0: i32) -> (i32, i32, i32) {
    %c0_i32 = arith.constant 0 : i32
    %c0_i32_0 = arith.constant 0 : i32
    %c0_i32_1 = arith.constant 0 : i32
    %c0_i32_2 = arith.constant 0 : i32
    return %c0_i32, %c0_i32_0, %c0_i32_1 : i32, i32, i32
  }
  func.func @transform_3(%arg0: i32) -> (i32, i32) {
    %c0_i32 = arith.constant 0 : i32
    %c0_i32_0 = arith.constant 0 : i32
    %c0_i32_1 = arith.constant 0 : i32
    return %c0_i32, %c0_i32_0 : i32, i32
  }
  func.func @transform_4(%arg0: i32) -> (i32, i32) {
    %c0_i32 = arith.constant 0 : i32
    %c0_i32_0 = arith.constant 0 : i32
    return %arg0, %c0_i32 : i32, i32
  }
}

</mosaic_0001>

<bundles_post_ra>
// kernel: tpu_custom_call.1
= control target key start
LH: loop header
LB: loop body
LE: loop exit
PB: predicated region body
PF: predicated region fallthrough
CT: control target
= control target key end

     0   :  { %9 = vsyncpa [#allocation3], 0  ;;  %s6698_s0 = inlined_call_operand.vmem [shape: f32[1024,60], index: 0, kind: input, shape index: {}]   ;;  %s6699_s1 = inlined_call_operand.vmem [shape: bf16[60,512], index: 1, kind: input, shape index: {}]   ;;  %s6700_s2 = inlined_call_operand.hbm [shape: bf16[7,256,256], index: 2, kind: input, shape index: {}]   ;;  %s6701_s3 = inlined_call_operand.vmem [shape: f32[8,256], index: 3, kind: input, shape index: {}]   ;;  %s6702_s4 = inlined_call_operand.hbm [shape: f32[1024,256], index: 4, kind: output, shape index: {}]  }
   0x1   :  { %10 = vsyncpa [#allocation4], 0 }
   0x2   :  { %12 = vsyncpa [#allocation4 + $0x1], 0  ;;  %s5431_s15 = smov 0   ;;  %s5433_s16 = smov 0  }
   0x3   :  { %s5435_s17 = smov 0   ;;  %s5437_s18 = smov 0  }
   0x4 LB: > { %s5452_s19 = sadd.s32 4294967295, %s5397_s18   ;;  %s4587_s20 = sadd.s32 4294967294, %s5397_s18   ;;  %s5397_s18 = sphi %s5437_s18, %s6762_s18   ;;  %s5393_s17 = sphi %s5435_s17, %s6761_s17   ;;  %s5389_s16 = sphi %s5433_s16, %s6760_s16   ;;  %s5385_s15 = sphi %s5431_s15, %s6759_s15  }
   0x5   : > { %s5456_s21 = sadd.s32 1, %s5397_s18   ;;  %s114_s22 = sadd.s32 1, %s5393_s17 }
   0x6   : > { %s111_s23 = ssub.s32 %s5397_s18, %s5456_s21  ;;  %p124_p0 = scmp.ne.s32.totalorder %s5393_s17, %s5389_s16 }
   0x7   : > { %p112_p1 = scmp.eq.s32.totalorder %s111_s23, 0  ;;  %p125_p2 = scmp.eq.s32.totalorder %s5452_s19, 3 }
   0x8   : > { %p130_p3 = scmp.ne.s32.totalorder %s5389_s16, %s5385_s15  ;;  %p131_p4 = scmp.eq.s32.totalorder %s4587_s20, 3 }
   0x9   : > { %s5467_s24 = scalar_select %p112_p1, %s5393_s17, %s114_s22  }
   0xa   : > { %p5469_p5 = por %p125_p2, %p124_p0  ;;  %p5473_p6 = por %p131_p4, %p130_p3 }
   0xb   : > { %p4588_p7 = scmp.ge.s32.totalorder %s5397_s18, 1  ;;  %p138_p8 = scmp.lt.s32.totalorder %s5397_s18, 5 }
   0xc   : > { %s6704_s26 = scalar_select %p5473_p6, 1, 0 }
   0xd   : > { %p4900_p9 = scmp.eq.s32.totalorder %s5452_s19, 0  ;;  %p5480_p10 = pnand %p4588_p7, %p138_p8 }
   0xe   : > { %s5399_s28 = smov [#allocation2]  }
   0xf   : > { %s153_s29 = sshll.u32 %s5399_s28, 4  ;;  %p4892_p11 = pneg %p5480_p10  ;;  %s154_s29 = int_to_ptr.vmem [resolvable:$true] %s153_s29 }
  0x10   : > { %s5318_s30 = scalar_lea.vmem %s154_s29, 28672  ;;  %p5326_p3 = scmp.lt.s32.totalorder %s154_s29, %s154_s29 }
  0x11   : > { %p4893_p12 = pnand %p4900_p9, %p4892_p11  ;;  %p5319_p0 = scmp.ne.s32.totalorder %s154_s29, %s5318_s30 }
  0x12   : > { %p5327_p4 = scmp.lt.s32.totalorder %s5318_s30, %s5318_s30 }
  0x13   : > { %p5309_p13 = pneg %p4893_p12 }
  0x14   : > { %p5328_p6 = por %p5327_p4, %p5326_p3 }
  0x15   : > { %p5321_p1 = pnand %p5319_p0, %p5309_p13 }
  0x17   : > { %p5322_p2 = pneg %p5321_p1 }
  0x19   : > { %p5329_p7 = pnand %p5328_p6, %p5322_p2 }
  0x1b   : > { %5332 = shalt.err (!%p5329_p7)
}
  0x1c   : > { %s5400_s5 = smov 128   ;;  %s5401_s6 = smov 8  }
  0x1d   : > { %4895 = dma.hbm_to_vmem [thread:$0]  (!%p4893_p12), %s6700_s2, 28672, %s154_s29, [#allocation3], %s5400_s5, %s5400_s5, %s5401_s6  }
  0x1e   : > { %181 = sbr.rel (%p5480_p10) target bundleno = 1836 (0x72c), region = 36 }
  0x23   : > { %5376 = dma.done.wait (%p4900_p9), [#allocation3], 28672  }
  0x24   : > { %5378 = vsyncadd (%p4900_p9), [#allocation3], 4294938624  ;;  %v5402_v0 = vmov 0   ;;  %s4594_s9 = sshll.u32 %s5452_s19, 5  ;;  %vm406_vm0 = vcmask 1045504   ;;  %vm357_vm1 = vcmask 490496  }
  0x25   : > { %451 = vmatprep.mubr.bf16.mxu0 %v5402_v0  ;;  %531 = vmatprep.mubr.bf16.mxu1 %v5402_v0  ;;  %p208_p6 = scmp.lt.s32.totalorder %s4594_s9, 127  ;;  %v4941_v1 = vld [vmem:[%s6699_s1 + $0x64] ss:$16 sps:$4 sm:$0x3f]   ;;  %v4946_v5 = vld [vmem:[%s6699_s1 + $0x40] ss:$16 sps:$4 sm:$0xff]  }
  0x26   : > { %v4943_v2 = vld [vmem:[%s6699_s1 + $0x60] ss:$16 sps:$4 sm:$0x3f]   ;;  %4612 = vmatprep.subr.msk.bf16.mxu0 %vm406_vm0, %v4941_v1  ;;  %v4944_v3 = vld [vmem:[%s6699_s1 + $0x44] ss:$16 sps:$4 sm:$0xff]   ;;  %4878 = vmatprep.subr.msk.bf16.mxu1 %vm406_vm0, %v4941_v1  ;;  %s4877_s14 = sshll.u32 %s5452_s19, 13 }
  0x27   : > { %s6764_s9 = smov (!%p208_p6, %s4594_s9), 127  ;;  %v408_v4 = vsel %vm406_vm0, %v4943_v2, 0  ;;  %v4947_v6 = vld [vmem:[%s6699_s1 + $0x24] ss:$16 sps:$4 sm:$0xff]   ;;  %v4949_v7 = vld [vmem:[%s6699_s1 + $0x20] ss:$16 sps:$4 sm:$0xff]   ;;  %s6650_s27 = scalar_lea.hbm %s6702_s4, %s4877_s14 }
  0x28   : > { %428 = vmatpush1.bf16.msra.mxu0 %v408_v4  ;;  %4882 = vmatpush1.bf16.msra.mxu1 %v408_v4  ;;  %s4595_s29 = sshll.u32 %s6764_s9, 3  ;;  %v4950_v8 = vld [vmem:[%s6699_s1 + $0x4] ss:$16 sps:$4 sm:$0xff]   ;;  %v4952_v9 = vld [vmem:[%s6699_s1] ss:$16 sps:$4 sm:$0xff]   ;;  %s204_s9 = sand.u32 1, %s5389_s16  }
  0x29   : > { %429 = vmatprep.subr.bf16.mxu0 %v4944_v3  ;;  %4879 = vmatprep.subr.bf16.mxu1 %v4944_v3  ;;  %s5524_s8 = scalar_lea.vmem %s6698_s0, %s4595_s29  ;;  %v4955_v16 = vld [vmem:[#allocation2 + $0x74] ss:$8 sps:$4 sm:$0xff]   ;;  %v4953_v19 = vld [vmem:[#allocation2 + $0x70] ss:$8 sps:$4 sm:$0xff]   ;;  %v4958_v21 = vld [vmem:[#allocation2 + $0x64] ss:$8 sps:$4 sm:$0xff]  }
  0x2a   : > { %v233_v10 = vld [vmem:[%s5524_s8] sm:$0xff]  ;;  %v234_v11 = vld [vmem:[%s5524_s8 + $0x8] sm:$0xff]  ;;  %v235_v17 = vld [vmem:[%s5524_s8 + $0x10] sm:$0xff]  ;;  %s4593_s12 = sshll.u32 %s204_s9, 9  ;;  %s6658_s19 = scalar_lea.sflag [#allocation4], %s204_s9 }
  0x2b   : > { %v249_v12 = vld [vmem:[%s5524_s8 + $0x80] sm:$0xff]  ;;  %v250_v13 = vld [vmem:[%s5524_s8 + $0x88] sm:$0xff]  ;;  %v5536_v14 = vpack.c.bf16 %v234_v11, %v233_v10  ;;  %v236_v18 = vld [vmem:[%s5524_s8 + $0x18] sm:$0xff]  ;;  %s6519_s13 = scalar_lea.vmem [#allocation5], %s4593_s12  ;;  %s5403_s29 = smov [#allocation5]  }
  0x2c   : > { %430 = vmatpush1.bf16.msra.mxu0 %v4946_v5  ;;  %4883 = vmatpush1.bf16.msra.mxu1 %v4946_v5  ;;  %v5538_v15 = vpack.c.bf16 %v250_v13, %v249_v12  ;;  %v251_v20 = vld [vmem:[%s5524_s8 + $0x90] sm:$0xff]  ;;  %v252_v22 = vld [vmem:[%s5524_s8 + $0x98] sm:$0xff]  ;;  %v4956_v23 = vld [vmem:[#allocation2 + $0x60] ss:$8 sps:$4 sm:$0xff]   ;;  %v5550_v24 = vpack.c.bf16 %v236_v18, %v235_v17  ;;  %s4513_s20 = sshll.u32 %s6519_s13, 4  ;;  %s5337_s30 = sshll.u32 %s5403_s29, 4  ;;  %s6652_s20 = int_to_ptr.vmem [resolvable:$true] %s4513_s20  ;;  %s5338_s30 = int_to_ptr.vmem [resolvable:$false] %s5337_s30 }
  0x2d   : > { %431 = vmatprep.subr.bf16.mxu0 %v4947_v6  ;;  %4880 = vmatprep.subr.bf16.mxu1 %v4947_v6  ;;  %v5552_v25 = vpack.c.bf16 %v252_v22, %v251_v20  ;;  %v4961_v26 = vld [vmem:[#allocation2 + $0x54] ss:$8 sps:$4 sm:$0xff]   ;;  %v237_v27 = vld [vmem:[%s5524_s8 + $0x20] sm:$0xff]  ;;  %v238_v28 = vld [vmem:[%s5524_s8 + $0x28] sm:$0xff]  ;;  %s5333_s28 = scalar_lea.vmem %s6652_s20, 8192  ;;  %s5339_s5 = scalar_lea.vmem %s5338_s30, 16384 }
  0x2e   : > { %v4959_v29 = vld [vmem:[#allocation2 + $0x50] ss:$8 sps:$4 sm:$0xff]   ;;  %v253_v30 = vld [vmem:[%s5524_s8 + $0xa0] sm:$0xff]  ;;  %v254_v32 = vld [vmem:[%s5524_s8 + $0xa8] sm:$0xff]  ;;  %v5564_v34 = vpack.c.bf16 %v238_v28, %v237_v27  ;;  %p5334_p8 = scmp.ne.s32.totalorder %s6652_s20, %s5333_s28  ;;  %p5340_p11 = scmp.lt.s32.totalorder %s6652_s20, %s5338_s30 }
  0x2f   : > { %v4964_v31 = vld [vmem:[#allocation2 + $0x44] ss:$8 sps:$4 sm:$0xff]   ;;  %v4962_v33 = vld [vmem:[#allocation2 + $0x40] ss:$8 sps:$4 sm:$0xff]   ;;  %v5566_v35 = vpack.c.bf16 %v254_v32, %v253_v30  ;;  %v4965_v36 = vld [vmem:[#allocation2 + $0x30] ss:$8 sps:$4 sm:$0xff]   ;;  %p5341_p12 = scmp.lt.s32.totalorder %s5339_s5, %s5333_s28 }
  0x30   : > { %432 = vmatpush1.bf16.msra.mxu0 %v4949_v7  ;;  %4884 = vmatpush1.bf16.msra.mxu1 %v4949_v7  ;;  %v4967_v37 = vld [vmem:[#allocation2 + $0x34] ss:$8 sps:$4 sm:$0xff]   ;;  %v4970_v38 = vld [vmem:[#allocation2 + $0x24] ss:$8 sps:$4 sm:$0xff]   ;;  %v4968_v43 = vld [vmem:[#allocation2 + $0x20] ss:$8 sps:$4 sm:$0xff]   ;;  %p5335_p9 = pnand %p5334_p8, %p5469_p5 }
  0x31   : > { %433 = vmatprep.subr.bf16.mxu0 %v4950_v8  ;;  %4881 = vmatprep.subr.bf16.mxu1 %v4950_v8  ;;  %v239_v39 = vld [vmem:[%s5524_s8 + $0x30] sm:$0xff]  ;;  %v240_v40 = vld [vmem:[%s5524_s8 + $0x38] sm:$0xff]  ;;  %v4976_v48 = vld [vmem:[#allocation2 + $0x4] ss:$8 sps:$4 sm:$0xff]   ;;  %p5342_p13 = por %p5341_p12, %p5340_p11 }
  0x32   : > { %v255_v41 = vld [vmem:[%s5524_s8 + $0xb0] sm:$0xff]  ;;  %v256_v42 = vld [vmem:[%s5524_s8 + $0xb8] sm:$0xff]  ;;  %v5578_v44 = vpack.c.bf16 %v240_v40, %v239_v39  ;;  %v241_v49 = vld [vmem:[%s5524_s8 + $0x40] sm:$0xff]  ;;  %p5336_p10 = pneg %p5335_p9 }
  0x33   : > { %v5580_v45 = vpack.c.bf16 %v256_v42, %v255_v41  ;;  %v4973_v46 = vld [vmem:[#allocation2 + $0x14] ss:$8 sps:$4 sm:$0xff]   ;;  %v4971_v47 = vld [vmem:[#allocation2 + $0x10] ss:$8 sps:$4 sm:$0xff]   ;;  %v242_v50 = vld [vmem:[%s5524_s8 + $0x48] sm:$0xff] }
  0x34   : > { %434 = vmatpush1.bf16.msra.mxu0 %v4952_v9  ;;  %4885 = vmatpush1.bf16.msra.mxu1 %v4952_v9  ;;  %v257_v51 = vld [vmem:[%s5524_s8 + $0xc0] sm:$0xff]  ;;  %v258_v52 = vld [vmem:[%s5524_s8 + $0xc8] sm:$0xff]  ;;  %v5592_v54 = vpack.c.bf16 %v242_v50, %v241_v49  ;;  %v4979_v56 = vld [vmem:[#allocation2 + $0xf4] ss:$8 sps:$4 sm:$0xff]   ;;  %v805_v49 = vlaneseq  ;;  %p5343_p0 = pnand %p5342_p13, %p5336_p10 }
  0x35   : > { %1173 = vmatprep.subr.bf16.mxu0 %v4955_v16  ;;  %v4974_v53 = vld [vmem:[#allocation2] ss:$8 sps:$4 sm:$0xff]   ;;  %v5594_v55 = vpack.c.bf16 %v258_v52, %v257_v51  ;;  %v4977_v57 = vld [vmem:[#allocation2 + $0xf0] ss:$8 sps:$4 sm:$0xff]   ;;  %v4982_v58 = vld [vmem:[#allocation2 + $0xe4] ss:$8 sps:$4 sm:$0xff]  }
  0x36   : > { %v243_v59 = vld [vmem:[%s5524_s8 + $0x50] sm:$0xff]  ;;  %v244_v60 = vld [vmem:[%s5524_s8 + $0x58] sm:$0xff]  ;;  %v4980_v63 = vld [vmem:[#allocation2 + $0xe0] ss:$8 sps:$4 sm:$0xff]   ;;  %v5687_v51 = vshrl.u32 %v805_v49, 7 }
  0x37   : > { %4613 = vmatmul.mubr.msk.bf16.vlgmr.msra.gmra.mxu0 %vm357_vm1, %v5536_v14  ;;  %4621 = vmatmul.mubr.msk.bf16.vlgmr.msra.gmra.mxu1 %vm357_vm1, %v5538_v15  ;;  %v259_v61 = vld [vmem:[%s5524_s8 + $0xd0] sm:$0xff]  ;;  %v260_v62 = vld [vmem:[%s5524_s8 + $0xd8] sm:$0xff]  ;;  %v5606_v1 = vpack.c.bf16 %v244_v60, %v243_v59  ;;  %v4988_v5 = vld [vmem:[#allocation2 + $0xc4] ss:$8 sps:$4 sm:$0xff]  }
  0x38   : > { %461 = vmatprep.mubr.bf16.mxu0 %v5402_v0  ;;  %541 = vmatprep.mubr.bf16.mxu1 %v5402_v0  ;;  %v5608_v2 = vpack.c.bf16 %v260_v62, %v259_v61  ;;  %v4985_v3 = vld [vmem:[#allocation2 + $0xd4] ss:$8 sps:$4 sm:$0xff]   ;;  %v4983_v4 = vld [vmem:[#allocation2 + $0xd0] ss:$8 sps:$4 sm:$0xff]   ;;  %v245_v6 = vld [vmem:[%s5524_s8 + $0x60] sm:$0xff]  ;;  %v807_v52 = vsub.s32 0, %v5687_v51 }
  0x39   : > { %1174 = vmatpush1.bf16.msra.mxu0 %v4953_v19  ;;  %v246_v7 = vld [vmem:[%s5524_s8 + $0x68] sm:$0xff]  ;;  %v261_v8 = vld [vmem:[%s5524_s8 + $0xe0] sm:$0xff]  ;;  %v4991_v13 = vld [vmem:[#allocation2 + $0xb4] ss:$8 sps:$4 sm:$0xff]  }
  0x3a   : > { %1175 = vmatprep.subr.bf16.mxu0 %v4958_v21  ;;  %v262_v9 = vld [vmem:[%s5524_s8 + $0xe8] sm:$0xff]  ;;  %v5620_v11 = vpack.c.bf16 %v246_v7, %v245_v6  ;;  %v4989_v16 = vld [vmem:[#allocation2 + $0xb0] ss:$8 sps:$4 sm:$0xff]   ;;  %v4997_v27 = vld [vmem:[#allocation2 + $0x94] ss:$8 sps:$4 sm:$0xff]  }
  0x3b   : > { %v4986_v10 = vld [vmem:[#allocation2 + $0xc0] ss:$8 sps:$4 sm:$0xff]   ;;  %v5622_v12 = vpack.c.bf16 %v262_v9, %v261_v8  ;;  %v247_v17 = vld [vmem:[%s5524_s8 + $0x70] sm:$0xff]  ;;  %v248_v18 = vld [vmem:[%s5524_s8 + $0x78] sm:$0xff] }
  0x3c   : > { %v263_v19 = vld [vmem:[%s5524_s8 + $0xf0] sm:$0xff]  ;;  %v264_v20 = vld [vmem:[%s5524_s8 + $0xf8] sm:$0xff]  ;;  %v5634_v21 = vpack.c.bf16 %v248_v18, %v247_v17  ;;  %v4998_v30 = vld [vmem:[#allocation2 + $0x80] ss:$8 sps:$4 sm:$0xff]  }
  0x3d   : > { %1176 = vmatpush1.bf16.msra.mxu0 %v4956_v23  ;;  %v5636_v22 = vpack.c.bf16 %v264_v20, %v263_v19  ;;  %v4994_v23 = vld [vmem:[#allocation2 + $0xa4] ss:$8 sps:$4 sm:$0xff]   ;;  %v4995_v28 = vld [vmem:[#allocation2 + $0x90] ss:$8 sps:$4 sm:$0xff]   ;;  %v5027_v50 = vld [vmem:[#allocation2 + $0x134] ss:$8 sps:$4 sm:$0xff]  }
  0x3e   : > { %1177 = vmatprep.subr.bf16.mxu0 %v4961_v26  ;;  %v4992_v26 = vld [vmem:[#allocation2 + $0xa0] ss:$8 sps:$4 sm:$0xff]   ;;  %v5009_v39 = vld [vmem:[%s6699_s1 + $0x2c] ss:$16 sps:$4 sm:$0xff]   ;;  %v5013_v42 = vld [vmem:[#allocation2 + $0x170] ss:$8 sps:$4 sm:$0xff]  }
  0x3f   : > { %4614 = vmatmul.mubr.msk.bf16.gmra.mxu0 %vm357_vm1, %v5550_v24  ;;  %4622 = vmatmul.mubr.msk.bf16.gmra.mxu1 %vm357_vm1, %v5552_v25  ;;  %v5003_v32 = vld [vmem:[%s6699_s1 + $0x68] ss:$16 sps:$4 sm:$0x3f]   ;;  %v5012_v41 = vld [vmem:[%s6699_s1 + $0xc] ss:$16 sps:$4 sm:$0xff]  }
  0x40   : > { %471 = vmatprep.mubr.bf16.mxu0 %v5402_v0  ;;  %551 = vmatprep.mubr.bf16.mxu1 %v5402_v0  ;;  %v5010_v40 = vld [vmem:[%s6699_s1 + $0x8] ss:$16 sps:$4 sm:$0xff]  }
  0x41   : > { %1178 = vmatpush1.bf16.msra.mxu0 %v4959_v29  ;;  %v5000_v29 = vld [vmem:[#allocation2 + $0x84] ss:$8 sps:$4 sm:$0xff]   ;;  %v5031_v9 = vld [vmem:[#allocation2 + $0x110] ss:$8 sps:$4 sm:$0xff]  }
  0x42   : > { %1179 = vmatprep.subr.bf16.mxu0 %v4964_v31  ;;  %v5001_v31 = vld [vmem:[%s6699_s1 + $0x6c] ss:$16 sps:$4 sm:$0x3f]  }
  0x43   : > { %4629 = vmatprep.subr.msk.bf16.mxu1 %vm406_vm0, %v5001_v31 }
  0x45   : > { %1180 = vmatpush1.bf16.msra.mxu0 %v4962_v33  ;;  %v414_v33 = vsel %vm406_vm0, %v5003_v32, 0 }
  0x46   : > { %1181 = vmatprep.subr.bf16.mxu0 %v4967_v37  ;;  %621 = vmatpush1.bf16.msra.mxu1 %v414_v33  ;;  %v5006_v37 = vld [vmem:[%s6699_s1 + $0x4c] ss:$16 sps:$4 sm:$0xff]  }
  0x47   : > { %4615 = vmatmul.mubr.msk.bf16.gmra.mxu0 %vm357_vm1, %v5564_v34  ;;  %4623 = vmatmul.mubr.msk.bf16.gmra.mxu1 %vm357_vm1, %v5566_v35 }
  0x48   : > { %481 = vmatprep.mubr.bf16.mxu0 %v5402_v0  ;;  %561 = vmatprep.mubr.bf16.mxu1 %v5402_v0 }
  0x49   : > { %1182 = vmatpush1.bf16.msra.mxu0 %v4965_v36  ;;  %v5004_v36 = vld [vmem:[%s6699_s1 + $0x48] ss:$16 sps:$4 sm:$0xff]   ;;  %622 = vmatprep.subr.bf16.mxu1 %v5006_v37 }
  0x4a   : > { %1183 = vmatprep.subr.bf16.mxu0 %v4970_v38  ;;  %623 = vmatpush1.bf16.msra.mxu1 %v5004_v36  ;;  %v5007_v38 = vld [vmem:[%s6699_s1 + $0x28] ss:$16 sps:$4 sm:$0xff]  }
  0x4b   : > { %624 = vmatprep.subr.bf16.mxu1 %v5009_v39  ;;  %v5037_v37 = vld [vmem:[#allocation2 + $0x1f0] ss:$8 sps:$4 sm:$0xff]  }
  0x4d   : > { %1184 = vmatpush1.bf16.msra.mxu0 %v4968_v43  ;;  %v5015_v43 = vld [vmem:[#allocation2 + $0x174] ss:$8 sps:$4 sm:$0xff]  }
  0x4e   : > { %1185 = vmatprep.subr.bf16.mxu0 %v4973_v46  ;;  %625 = vmatpush1.bf16.msra.mxu1 %v5007_v38  ;;  %v5016_v46 = vld [vmem:[#allocation2 + $0x160] ss:$8 sps:$4 sm:$0xff]  }
  0x4f   : > { %4616 = vmatmul.mubr.msk.bf16.gmra.mxu0 %vm357_vm1, %v5578_v44  ;;  %4624 = vmatmul.mubr.msk.bf16.gmra.mxu1 %vm357_vm1, %v5580_v45 }
  0x50   : > { %491 = vmatprep.mubr.bf16.mxu0 %v5402_v0  ;;  %571 = vmatprep.mubr.bf16.mxu1 %v5402_v0 }
  0x51   : > { %1186 = vmatpush1.bf16.msra.mxu0 %v4971_v47  ;;  %626 = vmatprep.subr.bf16.mxu1 %v5012_v41  ;;  %v5018_v47 = vld [vmem:[#allocation2 + $0x164] ss:$8 sps:$4 sm:$0xff]  }
  0x52   : > { %1187 = vmatprep.subr.bf16.mxu0 %v4976_v48  ;;  %627 = vmatpush1.bf16.msra.mxu1 %v5010_v40  ;;  %v5024_v48 = vld [vmem:[#allocation2 + $0x144] ss:$8 sps:$4 sm:$0xff]  }
  0x53   : > { %1663 = vmatprep.subr.bf16.mxu1 %v5015_v43  ;;  %v5042_v40 = vld [vmem:[#allocation2 + $0x1e4] ss:$8 sps:$4 sm:$0xff]  }
  0x55   : > { %1188 = vmatpush1.bf16.msra.mxu0 %v4974_v53  ;;  %v5695_v53 = vld [vmem:[%s6701_s3 + $0x8] sm:$0xff] }
  0x56   : > { %1189 = vmatprep.subr.bf16.mxu0 %v4979_v56  ;;  %v5028_v56 = vld [vmem:[#allocation2 + $0x120] ss:$8 sps:$4 sm:$0xff]   ;;  %v5706_v60 = vrot.slane %v5695_v53, %v807_v52 }
  0x57   : > { %4617 = vmatmul.mubr.msk.bf16.gmra.mxu0 %vm357_vm1, %v5592_v54  ;;  %4625 = vmatmul.mubr.msk.bf16.gmra.mxu1 %vm357_vm1, %v5594_v55 }
  0x58   : > { %501 = vmatprep.mubr.bf16.mxu0 %v5402_v0  ;;  %581 = vmatprep.mubr.bf16.mxu1 %v5402_v0 }
  0x59   : > { %1190 = vmatpush2.bf16.msra.mxu0 %v4977_v57  ;;  %v5030_v57 = vld [vmem:[#allocation2 + $0x124] ss:$8 sps:$4 sm:$0xff]  }
  0x5a   : > { %1191 = vmatprep.subr.bf16.mxu0 %v4982_v58 }
  0x5d   : > { %1192 = vmatpush2.bf16.msra.mxu0 %v4980_v63 }
  0x5e   : > { %1193 = vmatprep.subr.bf16.mxu0 %v4985_v3 }
  0x5f   : > { %4618 = vmatmul.mubr.msk.bf16.gmra.mxu0 %vm357_vm1, %v5606_v1  ;;  %4626 = vmatmul.mubr.msk.bf16.gmra.mxu1 %vm357_vm1, %v5608_v2 }
  0x60   : > { %511 = vmatprep.mubr.bf16.mxu0 %v5402_v0  ;;  %591 = vmatprep.mubr.bf16.mxu1 %v5402_v0 }
  0x61   : > { %1194 = vmatpush2.bf16.msra.mxu0 %v4983_v4 }
  0x62   : > { %1195 = vmatprep.subr.bf16.mxu0 %v4988_v5 }
  0x65   : > { %1196 = vmatpush2.bf16.msra.mxu0 %v4986_v10  ;;  %v5033_v10 = vld [vmem:[#allocation2 + $0x114] ss:$8 sps:$4 sm:$0xff]  }
  0x66   : > { %1197 = vmatprep.subr.bf16.mxu0 %v4991_v13  ;;  %v5036_v13 = vld [vmem:[#allocation2 + $0x104] ss:$8 sps:$4 sm:$0xff]  }
  0x67   : > { %4619 = vmatmul.mubr.msk.bf16.gmra.mxu0 %vm357_vm1, %v5620_v11  ;;  %4627 = vmatmul.mubr.msk.bf16.gmra.mxu1 %vm357_vm1, %v5622_v12 }
  0x68   : > { %521 = vmatprep.mubr.bf16.mxu0 %v5402_v0  ;;  %601 = vmatprep.mubr.bf16.mxu1 %v5402_v0 }
  0x69   : > { %1198 = vmatpush2.bf16.msra.mxu0 %v4989_v16 }
  0x6a   : > { %1199 = vmatprep.subr.bf16.mxu0 %v4994_v23 }
  0x6d   : > { %1200 = vmatpush2.bf16.msra.mxu0 %v4992_v26 }
  0x6e   : > { %1201 = vmatprep.subr.bf16.mxu0 %v4997_v27 }
  0x6f   : > { %4620 = vmatmul.mubr.msk.bf16.gmra.mxu0 %vm357_vm1, %v5634_v21  ;;  %4628 = vmatmul.mubr.msk.bf16.gmra.mxu1 %vm357_vm1, %v5636_v22 }
  0x70   : > { %644 = vmatprep.mubr.bf16.mxu1 %v5402_v0 }
  0x71   : > { %1202 = vmatpush2.bf16.msra.mxu0 %v4995_v28 }
  0x72   : > { %1203 = vmatprep.subr.bf16.mxu0 %v5000_v29  ;;  %v5039_v29 = vld [vmem:[#allocation2 + $0x1f4] ss:$8 sps:$4 sm:$0xff]  }
  0x75   : > { %1204 = vmatpush2.bf16.msra.mxu0 %v4998_v30 }
  0x77   : > { %4630 = vmatmul.mubr.msk.bf16.vlgmr.msra.gmra.mxu1 %vm357_vm1, %v5536_v14  ;;  %v5019_v14 = vld [vmem:[#allocation2 + $0x150] ss:$8 sps:$4 sm:$0xff]  }
  0x78   : > { %654 = vmatprep.mubr.bf16.mxu1 %v5402_v0  ;;  %1664 = vmatpush1.bf16.msra.mxu1 %v5013_v42 }
  0x79   : > { %1665 = vmatprep.subr.bf16.mxu1 %v5018_v47 }
  0x7c   : > { %1666 = vmatpush1.bf16.msra.mxu1 %v5016_v46 }
  0x7f   : > { %4631 = vmatmul.mubr.msk.bf16.gmra.mxu1 %vm357_vm1, %v5550_v24  ;;  %v5021_v24 = vld [vmem:[#allocation2 + $0x154] ss:$8 sps:$4 sm:$0xff]  }
  0x80   : > { %664 = vmatprep.mubr.bf16.mxu1 %v5402_v0  ;;  %1667 = vmatprep.subr.bf16.mxu1 %v5021_v24  ;;  %v5040_v24 = vld [vmem:[#allocation2 + $0x1e0] ss:$8 sps:$4 sm:$0xff]  }
  0x81   : > { %1668 = vmatpush1.bf16.msra.mxu1 %v5019_v14 }
  0x82   : > { %1669 = vmatprep.subr.bf16.mxu1 %v5024_v48 }
  0x87   : > { %4632 = vmatmul.mubr.msk.bf16.gmra.mxu1 %vm357_vm1, %v5564_v34  ;;  %v5022_v34 = vld [vmem:[#allocation2 + $0x140] ss:$8 sps:$4 sm:$0xff]  }
  0x88   : > { %674 = vmatprep.mubr.bf16.mxu1 %v5402_v0  ;;  %1670 = vmatpush1.bf16.msra.mxu1 %v5022_v34 }
  0x89   : > { %1671 = vmatprep.subr.bf16.mxu1 %v5027_v50 }
  0x8f   : > { %4633 = vmatmul.mubr.msk.bf16.gmra.mxu1 %vm357_vm1, %v5578_v44  ;;  %v5025_v44 = vld [vmem:[#allocation2 + $0x130] ss:$8 sps:$4 sm:$0xff]  }
  0x90   : > { %684 = vmatprep.mubr.bf16.mxu1 %v5402_v0  ;;  %1672 = vmatpush1.bf16.msra.mxu1 %v5025_v44  ;;  %v5045_v44 = vld [vmem:[#allocation2 + $0x1d4] ss:$8 sps:$4 sm:$0xff]  }
  0x91   : > { %1673 = vmatprep.subr.bf16.mxu1 %v5030_v57 }
  0x94   : > { %1674 = vmatpush1.bf16.msra.mxu1 %v5028_v56 }
  0x95   : > { %1675 = vmatprep.subr.bf16.mxu1 %v5033_v10 }
  0x97   : > { %4634 = vmatmul.mubr.msk.bf16.gmra.mxu1 %vm357_vm1, %v5592_v54  ;;  %v5701_v54 = vld [vmem:[%s6701_s3] sm:$0xff] }
  0x98   : > { %694 = vmatprep.mubr.bf16.mxu1 %v5402_v0  ;;  %v5709_v61 = vrot.slane %v5701_v54, %v807_v52  ;;  %1676 = vmatpush1.bf16.msra.mxu1 %v5031_v9 }
  0x99   : > { %1677 = vmatprep.subr.bf16.mxu1 %v5036_v13  ;;  %v5046_v13 = vld [vmem:[#allocation2 + $0x1c0] ss:$8 sps:$4 sm:$0xff]  }
  0x9f   : > { %4635 = vmatmul.mubr.msk.bf16.gmra.mxu1 %vm357_vm1, %v5606_v1 }
  0xa0   : > { %704 = vmatprep.mubr.bf16.mxu1 %v5402_v0 }
  0xa7   : > { %4636 = vmatmul.mubr.msk.bf16.gmra.mxu1 %vm357_vm1, %v5620_v11 }
  0xa8   : > { %714 = vmatprep.mubr.bf16.mxu1 %v5402_v0 }
  0xaf   : > { %4637 = vmatmul.mubr.msk.bf16.gmra.mxu1 %vm357_vm1, %v5634_v21  ;;  %v5034_v21 = vld [vmem:[#allocation2 + $0x100] ss:$8 sps:$4 sm:$0xff]  }
  0xb0   : > { %724 = vmatprep.mubr.bf16.mxu1 %v5402_v0  ;;  %1678 = vmatpush1.bf16.msra.mxu1 %v5034_v21 }
  0xb1   : > { %1679 = vmatprep.subr.bf16.mxu1 %v5039_v29  ;;  %v5049_v29 = vld [vmem:[#allocation2 + $0x1b0] ss:$8 sps:$4 sm:$0xff]  }
  0xb4   : > { %1680 = vmatpush2.bf16.msra.mxu1 %v5037_v37 }
  0xb5   : > { %1681 = vmatprep.subr.bf16.mxu1 %v5042_v40 }
  0xb7   : > { %4638 = vmatmul.mubr.msk.bf16.gmra.mxu1 %vm357_vm1, %v5538_v15 }
  0xb8   : > { %734 = vmatprep.mubr.bf16.mxu1 %v5402_v0  ;;  %1682 = vmatpush2.bf16.msra.mxu1 %v5040_v24  ;;  %v5057_v24 = vld [vmem:[#allocation2 + $0x194] ss:$8 sps:$4 sm:$0xff]  }
  0xb9   : > { %1683 = vmatprep.subr.bf16.mxu1 %v5045_v44 }
  0xbf   : > { %4639 = vmatmul.mubr.msk.bf16.gmra.mxu1 %vm357_vm1, %v5552_v25 }
  0xc0   : > { %744 = vmatprep.mubr.bf16.mxu1 %v5402_v0 }
  0xc7   : > { %4640 = vmatmul.mubr.msk.bf16.gmra.mxu1 %vm357_vm1, %v5566_v35 }
  0xc8   : > { %754 = vmatprep.mubr.bf16.mxu1 %v5402_v0 }
  0xcf   : > { %4641 = vmatmul.mubr.msk.bf16.gmra.mxu1 %vm357_vm1, %v5580_v45 }
  0xd0   : > { %764 = vmatprep.mubr.bf16.mxu1 %v5402_v0 }
  0xd7   : > { %4642 = vmatmul.mubr.msk.bf16.gmra.mxu1 %vm357_vm1, %v5594_v55 }
  0xd8   : > { %774 = vmatprep.mubr.bf16.mxu1 %v5402_v0 }
  0xdf   : > { %4643 = vmatmul.mubr.msk.bf16.gmra.mxu1 %vm357_vm1, %v5608_v2 }
  0xe0   : > { %784 = vmatprep.mubr.bf16.mxu1 %v5402_v0 }
  0xe7   : > { %4644 = vmatmul.mubr.msk.bf16.gmra.mxu1 %vm357_vm1, %v5622_v12 }
  0xe8   : > { %794 = vmatprep.mubr.bf16.mxu1 %v5402_v0 }
  0xef   : > { %4645 = vmatmul.mubr.msk.bf16.gmra.mxu1 %vm357_vm1, %v5636_v22 }
  0xf7   : > { %v453_v58 = vpop.f32.mrf.mxu0  ;;  %v5703_v59 = vpop.f32.mrf.mxu1 }
  0xf8   : > { %v813_v6 = vadd.f32 %v5709_v61, %v453_v58  ;;  %v5043_v58 = vld [vmem:[#allocation2 + $0x1d0] ss:$8 sps:$4 sm:$0xff]   ;;  %v845_v12 = vadd.f32 %v5709_v61, %v5703_v59 }
  0xf9   : > { %v455_v62 = vpop.f32.mrf.mxu0  ;;  %v5711_v63 = vpop.f32.mrf.mxu1  ;;  %1684 = vmatpush2.bf16.msra.mxu1 %v5043_v58 }
  0xfa   : > { %v814_v4 = vadd.f32 %v5706_v60, %v455_v62  ;;  %v877_v23 = vmax.f32 %v813_v6, 0.0 }
  0xfb   : > { %v457_v1 = vpop.f32.mrf.mxu0  ;;  %v5713_v3 = vpop.f32.mrf.mxu1 }
  0xfc   : > { %v815_v5 = vadd.f32 %v5709_v61, %v457_v1  ;;  %v878_v19 = vmax.f32 %v814_v4, 0.0  ;;  %v5048_v4 = vld [vmem:[#allocation2 + $0x1c4] ss:$8 sps:$4 sm:$0xff]   ;;  %v847_v0 = vadd.f32 %v5709_v61, %v5713_v3 }
  0xfd   : > { %v459_v7 = vpop.f32.mrf.mxu0  ;;  %v5720_v8 = vpop.f32.mrf.mxu1  ;;  %1685 = vmatprep.subr.bf16.mxu1 %v5048_v4 }
  0xfe   : > { %v816_v11 = vadd.f32 %v5706_v60, %v459_v7  ;;  %v879_v16 = vmax.f32 %v815_v5, 0.0  ;;  %1686 = vmatpush2.bf16.msra.mxu1 %v5046_v13 }
  0xff   : > { %v463_v17 = vpop.f32.mrf.mxu0  ;;  %v5724_v18 = vpop.f32.mrf.mxu1 }
 0x100   : > { %v880_v20 = vmax.f32 %v816_v11, 0.0  ;;  %v973_v30 = vpack.c.bf16 %v879_v16, %v877_v23  ;;  %v817_v38 = vadd.f32 %v5709_v61, %v463_v17 }
 0x101   : > { %v465_v26 = vpop.f32.mrf.mxu0  ;;  %v5726_v27 = vpop.f32.mrf.mxu1 }
 0x102   : > { %v974_v28 = vpack.c.bf16 %v880_v20, %v878_v19  ;;  %v818_v33 = vadd.f32 %v5706_v60, %v465_v26  ;;  %v881_v34 = vmax.f32 %v817_v38, 0.0  ;;  %v5051_v20 = vld [vmem:[#allocation2 + $0x1b4] ss:$8 sps:$4 sm:$0xff]  }
 0x103   : > { %v467_v31 = vpop.f32.mrf.mxu0  ;;  %v5728_v32 = vpop.f32.mrf.mxu1  ;;  %1687 = vmatprep.subr.bf16.mxu1 %v5051_v20 }
 0x104   : > { %v819_v36 = vadd.f32 %v5709_v61, %v467_v31  ;;  %1205 = vmatprep.mubr.bf16.mxu0 %v974_v28  ;;  %v882_v47 = vmax.f32 %v818_v33, 0.0  ;;  %v5054_v33 = vld [vmem:[#allocation2 + $0x1a4] ss:$8 sps:$4 sm:$0xff]   ;;  %1688 = vmatpush2.bf16.msra.mxu1 %v5049_v29  ;;  %v851_v22 = vadd.f32 %v5709_v61, %v5728_v32 }
 0x105   : > { %v469_v39 = vpop.f32.mrf.mxu0  ;;  %1206 = vmatmul.mubr.bf16.vlgmr.msra.gmra.mxu0 %v973_v30  ;;  %v5737_v46 = vpop.f32.mrf.mxu1  ;;  %1689 = vmatprep.subr.bf16.mxu1 %v5054_v33 }
 0x106   : > { %v820_v41 = vadd.f32 %v5706_v60, %v469_v39  ;;  %v883_v42 = vmax.f32 %v819_v36, 0.0 }
 0x107   : > { %v473_v43 = vpop.f32.mrf.mxu0  ;;  %v5739_v52 = vpop.f32.mrf.mxu1 }
 0x108   : > { %v884_v14 = vmax.f32 %v820_v41, 0.0  ;;  %v975_v15 = vpack.c.bf16 %v883_v42, %v881_v34  ;;  %v821_v62 = vadd.f32 %v5709_v61, %v473_v43  ;;  %v5052_v42 = vld [vmem:[#allocation2 + $0x1a0] ss:$8 sps:$4 sm:$0xff]  }
 0x109   : > { %v475_v48 = vpop.f32.mrf.mxu0  ;;  %v5748_v9 = vpop.f32.mrf.mxu1  ;;  %1690 = vmatpush2.bf16.msra.mxu1 %v5052_v42 }
 0x10a   : > { %v976_v49 = vpack.c.bf16 %v884_v14, %v882_v47  ;;  %v822_v56 = vadd.f32 %v5706_v60, %v475_v48  ;;  %v885_v16 = vmax.f32 %v821_v62, 0.0  ;;  %1691 = vmatprep.subr.bf16.mxu1 %v5057_v24  ;;  %v854_v59 = vadd.f32 %v5706_v60, %v5748_v9 }
 0x10b   : > { %v477_v50 = vpop.f32.mrf.mxu0  ;;  %v5750_v23 = vpop.f32.mrf.mxu1 }
 0x10c   : > { %v823_v57 = vadd.f32 %v5709_v61, %v477_v50  ;;  %1215 = vmatprep.mubr.bf16.mxu0 %v976_v49  ;;  %v886_v10 = vmax.f32 %v822_v56, 0.0  ;;  %v855_v32 = vadd.f32 %v5709_v61, %v5750_v23 }
 0x10d   : > { %v479_v1 = vpop.f32.mrf.mxu0  ;;  %1216 = vmatmul.mubr.bf16.gmra.mxu0 %v975_v15  ;;  %v5759_v39 = vpop.f32.mrf.mxu1  ;;  %v5055_v15 = vld [vmem:[#allocation2 + $0x190] ss:$8 sps:$4 sm:$0xff]  }
 0x10e   : > { %v824_v5 = vadd.f32 %v5706_v60, %v479_v1  ;;  %v887_v6 = vmax.f32 %v823_v57, 0.0  ;;  %1692 = vmatpush2.bf16.msra.mxu1 %v5055_v15  ;;  %v856_v3 = vadd.f32 %v5706_v60, %v5759_v39 }
 0x10f   : > { %v483_v7 = vpop.f32.mrf.mxu0  ;;  %v5761_v48 = vpop.f32.mrf.mxu1 }
 0x110   : > { %v888_v11 = vmax.f32 %v824_v5, 0.0  ;;  %v977_v25 = vpack.c.bf16 %v887_v6, %v885_v16  ;;  %v825_v30 = vadd.f32 %v5709_v61, %v483_v7  ;;  %v857_v23 = vadd.f32 %v5709_v61, %v5761_v48 }
 0x111   : > { %v485_v17 = vpop.f32.mrf.mxu0  ;;  %v5770_v1 = vpop.f32.mrf.mxu1 }
 0x112   : > { %v978_v19 = vpack.c.bf16 %v888_v11, %v886_v10  ;;  %v826_v26 = vadd.f32 %v5706_v60, %v485_v17  ;;  %v889_v43 = vmax.f32 %v825_v30, 0.0  ;;  %v858_v9 = vadd.f32 %v5706_v60, %v5770_v1 }
 0x113   : > { %v487_v21 = vpop.f32.mrf.mxu0  ;;  %v5772_v16 = vpop.f32.mrf.mxu1  ;;  %v919_v1 = vmax.f32 %v855_v32, 0.0 }
 0x114   : > { %v827_v28 = vadd.f32 %v5709_v61, %v487_v21  ;;  %1225 = vmatprep.mubr.bf16.mxu0 %v978_v19  ;;  %v890_v40 = vmax.f32 %v826_v26, 0.0 }
 0x115   : > { %v489_v31 = vpop.f32.mrf.mxu0  ;;  %1226 = vmatmul.mubr.bf16.gmra.mxu0 %v977_v25 }
 0x116   : > { %v828_v36 = vadd.f32 %v5706_v60, %v489_v31  ;;  %v891_v37 = vmax.f32 %v827_v28, 0.0  ;;  %v5781_v28 = vpop.f32.mrf.mxu1 }
 0x117   : > { %v493_v38 = vpop.f32.mrf.mxu0  ;;  %v860_v39 = vadd.f32 %v5706_v60, %v5781_v28 }
 0x118   : > { %v892_v41 = vmax.f32 %v828_v36, 0.0  ;;  %v979_v35 = vpack.c.bf16 %v891_v37, %v889_v43  ;;  %v829_v50 = vadd.f32 %v5709_v61, %v493_v38 }
 0x119   : > { %v495_v47 = vpop.f32.mrf.mxu0 }
 0x11a   : > { %v980_v14 = vpack.c.bf16 %v892_v41, %v890_v40  ;;  %v830_v49 = vadd.f32 %v5706_v60, %v495_v47  ;;  %v893_v6 = vmax.f32 %v829_v50, 0.0  ;;  %v5783_v40 = vpop.f32.mrf.mxu1  ;;  %v846_v50 = vadd.f32 %v5706_v60, %v5711_v63 }
 0x11b   : > { %v497_v34 = vpop.f32.mrf.mxu0  ;;  %v861_v48 = vadd.f32 %v5709_v61, %v5783_v40 }
 0x11c   : > { %v831_v44 = vadd.f32 %v5709_v61, %v497_v34  ;;  %1235 = vmatprep.mubr.bf16.mxu0 %v980_v14  ;;  %v894_v4 = vmax.f32 %v830_v49, 0.0  ;;  %v910_v63 = vmax.f32 %v846_v50, 0.0  ;;  %v922_v50 = vmax.f32 %v858_v9, 0.0 }
 0x11d   : > { %v499_v56 = vpop.f32.mrf.mxu0  ;;  %1236 = vmatmul.mubr.bf16.gmra.mxu0 %v979_v35  ;;  %v5792_v35 = vpop.f32.mrf.mxu1 }
 0x11e   : > { %v832_v57 = vadd.f32 %v5706_v60, %v499_v56  ;;  %v895_v58 = vmax.f32 %v831_v44, 0.0  ;;  %v862_v28 = vadd.f32 %v5706_v60, %v5792_v35 }
 0x11f   : > { %v503_v62 = vpop.f32.mrf.mxu0 }
 0x120   : > { %v896_v5 = vmax.f32 %v832_v57, 0.0  ;;  %v981_v11 = vpack.c.bf16 %v895_v58, %v893_v6  ;;  %v833_v19 = vadd.f32 %v5709_v61, %v503_v62  ;;  %v848_v57 = vadd.f32 %v5706_v60, %v5720_v8  ;;  %v5798_v62 = vpop.f32.mrf.mxu1 }
 0x121   : > { %v505_v7 = vpop.f32.mrf.mxu0 }
 0x122   : > { %v982_v10 = vpack.c.bf16 %v896_v5, %v894_v4  ;;  %v834_v45 = vadd.f32 %v5706_v60, %v505_v7  ;;  %v897_v31 = vmax.f32 %v833_v19, 0.0  ;;  %v912_v8 = vmax.f32 %v848_v57, 0.0  ;;  %v5058_v57 = vld [vmem:[#allocation2 + $0x180] ss:$8 sps:$4 sm:$0xff]  }
 0x123   : > { %v507_v13 = vpop.f32.mrf.mxu0 }
 0x124   : > { %v835_v17 = vadd.f32 %v5709_v61, %v507_v13  ;;  %1245 = vmatprep.mubr.bf16.mxu0 %v982_v10  ;;  %v898_v29 = vmax.f32 %v834_v45, 0.0  ;;  %v579_v13 = vpop.f32.mrf.mxu1 }
 0x125   : > { %v509_v20 = vpop.f32.mrf.mxu0  ;;  %1246 = vmatmul.mubr.bf16.gmra.mxu0 %v981_v11 }
 0x126   : > { %v836_v25 = vadd.f32 %v5706_v60, %v509_v20  ;;  %v899_v21 = vmax.f32 %v835_v17, 0.0  ;;  %v850_v20 = vadd.f32 %v5706_v60, %v5726_v27 }
 0x127   : > { %v513_v26 = vpop.f32.mrf.mxu0 }
 0x128   : > { %v900_v30 = vmax.f32 %v836_v25, 0.0  ;;  %v983_v37 = vpack.c.bf16 %v899_v21, %v897_v31  ;;  %v837_v42 = vadd.f32 %v5709_v61, %v513_v26  ;;  %v990_v21 = vpack.c.bf16 %v912_v8, %v910_v63 }
 0x129   : > { %v515_v33 = vpop.f32.mrf.mxu0  ;;  %v852_v26 = vadd.f32 %v5706_v60, %v5737_v46  ;;  %v914_v27 = vmax.f32 %v850_v20, 0.0  ;;  %v926_v63 = vmax.f32 %v862_v28, 0.0  ;;  %v921_v8 = vmax.f32 %v857_v23, 0.0  ;;  %v5064_v28 = vld [vmem:[#allocation2 + $0x260] ss:$8 sps:$4 sm:$0xff]  }
 0x12a   : > { %v984_v36 = vpack.c.bf16 %v900_v30, %v898_v29  ;;  %v838_v41 = vadd.f32 %v5706_v60, %v515_v33  ;;  %v901_v44 = vmax.f32 %v837_v42, 0.0  ;;  %v5815_v30 = vpop.f32.mrf.mxu1  ;;  %v909_v33 = vmax.f32 %v845_v12, 0.0  ;;  %v5067_v23 = vld [vmem:[#allocation2 + $0x250] ss:$8 sps:$4 sm:$0xff]  }
 0x12b   : > { %v517_v38 = vpop.f32.mrf.mxu0  ;;  %v916_v31 = vmax.f32 %v852_v26, 0.0  ;;  %v918_v42 = vmax.f32 %v854_v59, 0.0  ;;  %v925_v26 = vmax.f32 %v861_v48, 0.0  ;;  %v865_v40 = vadd.f32 %v5709_v61, %v5815_v30 }
 0x12c   : > { %v839_v55 = vadd.f32 %v5709_v61, %v517_v38  ;;  %1255 = vmatprep.mubr.bf16.mxu0 %v984_v36  ;;  %v902_v34 = vmax.f32 %v838_v41, 0.0  ;;  %v911_v36 = vmax.f32 %v847_v0, 0.0  ;;  %v585_v46 = vpop.f32.mrf.mxu1  ;;  %v849_v41 = vadd.f32 %v5709_v61, %v5724_v18 }
 0x12d   : > { %v519_v43 = vpop.f32.mrf.mxu0  ;;  %1256 = vmatmul.mubr.bf16.gmra.mxu0 %v983_v37  ;;  %v992_v37 = vpack.c.bf16 %v916_v31, %v914_v27  ;;  %v853_v18 = vadd.f32 %v5709_v61, %v5739_v52  ;;  %v864_v52 = vadd.f32 %v5706_v60, %v579_v13  ;;  %v866_v35 = vadd.f32 %v5706_v60, %v585_v46 }
 0x12e   : > { %v840_v47 = vadd.f32 %v5706_v60, %v519_v43  ;;  %v903_v14 = vmax.f32 %v839_v55, 0.0  ;;  %v989_v38 = vpack.c.bf16 %v911_v36, %v909_v33  ;;  %v587_v55 = vpop.f32.mrf.mxu1  ;;  %v920_v43 = vmax.f32 %v856_v3, 0.0 }
 0x12f   : > { %v523_v24 = vpop.f32.mrf.mxu0  ;;  %v867_v36 = vadd.f32 %v5709_v61, %v587_v55 }
 0x130   : > { %v904_v49 = vmax.f32 %v840_v47, 0.0  ;;  %v985_v2 = vpack.c.bf16 %v903_v14, %v901_v44  ;;  %v841_v6 = vadd.f32 %v5709_v61, %v523_v24  ;;  %v913_v47 = vmax.f32 %v849_v41, 0.0  ;;  %v589_v24 = vpop.f32.mrf.mxu1 }
 0x131   : > { %v525_v15 = vpop.f32.mrf.mxu0  ;;  %v915_v14 = vmax.f32 %v851_v22, 0.0  ;;  %v868_v13 = vadd.f32 %v5706_v60, %v589_v24  ;;  %v931_v3 = vmax.f32 %v867_v36, 0.0 }
 0x132   : > { %v986_v56 = vpack.c.bf16 %v904_v49, %v902_v34  ;;  %v842_v4 = vadd.f32 %v5706_v60, %v525_v15  ;;  %v905_v19 = vmax.f32 %v841_v6, 0.0  ;;  %v994_v34 = vpack.c.bf16 %v920_v43, %v918_v42  ;;  %v593_v44 = vpop.f32.mrf.mxu1  ;;  %v5060_v15 = vld [vmem:[#allocation2 + $0x184] ss:$8 sps:$4 sm:$0xff]  }
 0x133   : > { %v527_v58 = vpop.f32.mrf.mxu0  ;;  %v991_v49 = vpack.c.bf16 %v915_v14, %v913_v47  ;;  %1693 = vmatprep.subr.bf16.mxu1 %v5060_v15  ;;  %v859_v6 = vadd.f32 %v5709_v61, %v5772_v16  ;;  %v863_v16 = vadd.f32 %v5709_v61, %v5798_v62  ;;  %v869_v47 = vadd.f32 %v5709_v61, %v593_v44 }
 0x134   : > { %v843_v5 = vadd.f32 %v5709_v61, %v527_v58  ;;  %1265 = vmatprep.mubr.bf16.mxu0 %v986_v56  ;;  %v906_v45 = vmax.f32 %v842_v4, 0.0  ;;  %v924_v56 = vmax.f32 %v860_v39, 0.0  ;;  %v595_v58 = vpop.f32.mrf.mxu1  ;;  %1694 = vmatpush2.bf16.msra.mxu1 %v5058_v57 }
 0x135   : > { %v529_v7 = vpop.f32.mrf.mxu0  ;;  %1266 = vmatmul.mubr.bf16.gmra.mxu0 %v985_v2  ;;  %v917_v2 = vmax.f32 %v853_v18, 0.0  ;;  %v927_v12 = vmax.f32 %v863_v16, 0.0  ;;  %v870_v0 = vadd.f32 %v5706_v60, %v595_v58  ;;  %v933_v24 = vmax.f32 %v869_v47, 0.0 }
 0x136   : > { %v844_v10 = vadd.f32 %v5706_v60, %v529_v7  ;;  %v907_v11 = vmax.f32 %v843_v5, 0.0  ;;  %v996_v4 = vpack.c.bf16 %v924_v56, %v922_v50  ;;  %v597_v7 = vpop.f32.mrf.mxu1 }
 0x137   : > { %v993_v5 = vpack.c.bf16 %v919_v1, %v917_v2  ;;  %v997_v33 = vpack.c.bf16 %v927_v12, %v925_v26  ;;  %v934_v46 = vmax.f32 %v870_v0, 0.0  ;;  %v871_v30 = vadd.f32 %v5709_v61, %v597_v7  ;;  %v5061_v2 = vld [vmem:[#allocation2 + $0x270] ss:$8 sps:$4 sm:$0xff]   ;;  %v5063_v1 = vld [vmem:[#allocation2 + $0x274] ss:$8 sps:$4 sm:$0xff]  }
 0x138   : > { %v908_v17 = vmax.f32 %v844_v10, 0.0  ;;  %v987_v29 = vpack.c.bf16 %v907_v11, %v905_v19  ;;  %v928_v10 = vmax.f32 %v864_v52, 0.0  ;;  %v923_v11 = vmax.f32 %v859_v6, 0.0  ;;  %2153 = vmatprep.subr.bf16.mxu0 %v5063_v1  ;;  %v5069_v6 = vld [vmem:[#allocation2 + $0x254] ss:$8 sps:$4 sm:$0xff]  }
 0x139   : > { %v935_v9 = vmax.f32 %v871_v30, 0.0  ;;  %2154 = vmatpush1.bf16.msra.mxu0 %v5061_v2 }
 0x13a   : > { %v988_v25 = vpack.c.bf16 %v908_v17, %v906_v45  ;;  %v599_v45 = vpop.f32.mrf.mxu1  ;;  %v998_v17 = vpack.c.bf16 %v928_v10, %v926_v63  ;;  %v995_v19 = vpack.c.bf16 %v923_v11, %v921_v8  ;;  %v5070_v10 = vld [vmem:[#allocation2 + $0x240] ss:$8 sps:$4 sm:$0xff]   ;;  %v5072_v8 = vld [vmem:[#allocation2 + $0x244] ss:$8 sps:$4 sm:$0xff]  }
 0x13b   : > { %v872_v31 = vadd.f32 %v5706_v60, %v599_v45  ;;  %v1001_v39 = vpack.c.bf16 %v935_v9, %v933_v24  ;;  %v5085_v9 = vld [vmem:[#allocation2 + $0x2f0] ss:$8 sps:$4 sm:$0xff]  }
 0x13c   : > { %1275 = vmatprep.mubr.bf16.mxu0 %v988_v25  ;;  %v603_v20 = vpop.f32.mrf.mxu1  ;;  %v930_v25 = vmax.f32 %v866_v35, 0.0  ;;  %v5073_v35 = vld [vmem:[#allocation2 + $0x230] ss:$8 sps:$4 sm:$0xff]  }
 0x13d   : > { %1276 = vmatmul.mubr.bf16.gmra.mxu0 %v987_v29  ;;  %v936_v59 = vmax.f32 %v872_v31, 0.0 }
 0x13e   : > { %1285 = vmatprep.mubr.bf16.mxu0 %v990_v21  ;;  %v932_v21 = vmax.f32 %v868_v13, 0.0  ;;  %v605_v29 = vpop.f32.mrf.mxu1  ;;  %v1007_v13 = vsub.s32 1, %v5687_v51 }
 0x13f   : > { %v874_v41 = vadd.f32 %v5706_v60, %v605_v29  ;;  %v1002_v22 = vpack.c.bf16 %v936_v59, %v934_v46 }
 0x140   : > { %v1000_v27 = vpack.c.bf16 %v932_v21, %v930_v25  ;;  %v607_v62 = vpop.f32.mrf.mxu1  ;;  %v5887_v16 = vrot.slane %v5695_v53, %v1007_v13  ;;  %v5078_v25 = vld [vmem:[#allocation2 + $0x224] ss:$8 sps:$4 sm:$0xff]   ;;  %v5890_v21 = vrot.slane %v5701_v54, %v1007_v13  ;;  %v5079_v53 = vld [vmem:[#allocation2 + $0x210] ss:$8 sps:$4 sm:$0xff]  }
 0x141   : > { %v938_v55 = vmax.f32 %v874_v41, 0.0  ;;  %v875_v18 = vadd.f32 %v5709_v61, %v607_v62  ;;  %v5084_v62 = vld [vmem:[#allocation2 + $0x204] ss:$8 sps:$4 sm:$0xff]  }
 0x143   : > { %v939_v32 = vmax.f32 %v875_v18, 0.0 }
 0x145   : > { %1286 = vmatmul.mubr.bf16.gmra.mxu0 %v989_v38  ;;  %v609_v38 = vpop.f32.mrf.mxu1 }
 0x146   : > { %1295 = vmatprep.mubr.bf16.mxu0 %v992_v37  ;;  %v929_v37 = vmax.f32 %v865_v40, 0.0  ;;  %v876_v42 = vadd.f32 %v5706_v60, %v609_v38  ;;  %v5081_v40 = vld [vmem:[#allocation2 + $0x214] ss:$8 sps:$4 sm:$0xff]   ;;  %v5082_v38 = vld [vmem:[#allocation2 + $0x200] ss:$8 sps:$4 sm:$0xff]  }
 0x147   : > { %v5859_v44 = vpop.f32.mrf.mxu1 }
 0x148   : > { %v999_v43 = vpack.c.bf16 %v931_v3, %v929_v37  ;;  %v940_v14 = vmax.f32 %v876_v42, 0.0  ;;  %v5087_v42 = vld [vmem:[#allocation2 + $0x2f4] ss:$8 sps:$4 sm:$0xff]  }
 0x149   : > { %v5861_v50 = vpop.f32.mrf.mxu1 }
 0x14b   : > { %v5863_v56 = vpop.f32.mrf.mxu1 }
 0x14d   : > { %1296 = vmatmul.mubr.bf16.gmra.mxu0 %v991_v49  ;;  %v873_v49 = vadd.f32 %v5709_v61, %v603_v20  ;;  %v5865_v57 = vpop.f32.mrf.mxu1  ;;  %v5076_v20 = vld [vmem:[#allocation2 + $0x220] ss:$8 sps:$4 sm:$0xff]  }
 0x14e   : > { %1305 = vmatprep.mubr.bf16.mxu0 %v994_v34  ;;  %v1004_v34 = vpack.c.bf16 %v940_v14, %v938_v55 }
 0x14f   : > { %v937_v60 = vmax.f32 %v873_v49, 0.0  ;;  %v5867_v58 = vpop.f32.mrf.mxu1  ;;  %v5090_v49 = vld [vmem:[#allocation2 + $0x2e4] ss:$8 sps:$4 sm:$0xff]  }
 0x151   : > { %v1003_v15 = vpack.c.bf16 %v939_v32, %v937_v60  ;;  %v5869_v61 = vpop.f32.mrf.mxu1 }
 0x153   : > { %v5871_v52 = vpop.f32.mrf.mxu1 }
 0x155   : > { %1306 = vmatmul.mubr.bf16.gmra.mxu0 %v993_v5  ;;  %v5873_v5 = vpop.f32.mrf.mxu1 }
 0x156   : > { %1315 = vmatprep.mubr.bf16.mxu0 %v996_v4  ;;  %v5066_v4 = vld [vmem:[#allocation2 + $0x264] ss:$8 sps:$4 sm:$0xff]  }
 0x157   : > { %2155 = vmatprep.subr.bf16.mxu0 %v5066_v4  ;;  %v5875_v7 = vpop.f32.mrf.mxu1 }
 0x158   : > { %2156 = vmatpush1.bf16.msra.mxu0 %v5064_v28  ;;  %v5088_v28 = vld [vmem:[#allocation2 + $0x2e0] ss:$8 sps:$4 sm:$0xff]  }
 0x159   : > { %2157 = vmatprep.subr.bf16.mxu0 %v5069_v6  ;;  %v5877_v63 = vpop.f32.mrf.mxu1  ;;  %v5093_v6 = vld [vmem:[#allocation2 + $0x2d4] ss:$8 sps:$4 sm:$0xff]  }
 0x15b   : > { %v5879_v11 = vpop.f32.mrf.mxu1 }
 0x15c   : > { %2158 = vmatpush1.bf16.msra.mxu0 %v5067_v23 }
 0x15d   : > { %1316 = vmatmul.mubr.bf16.gmra.mxu0 %v995_v19  ;;  %2159 = vmatprep.subr.bf16.mxu0 %v5072_v8  ;;  %v5881_v45 = vpop.f32.mrf.mxu1 }
 0x15e   : > { %1325 = vmatprep.mubr.bf16.mxu0 %v998_v17  ;;  %v5075_v17 = vld [vmem:[#allocation2 + $0x234] ss:$8 sps:$4 sm:$0xff]  }
 0x15f   : > { %v5884_v48 = vpop.f32.mrf.mxu1 }
 0x160   : > { %2160 = vmatpush1.bf16.msra.mxu0 %v5070_v10 }
 0x161   : > { %2161 = vmatprep.subr.bf16.mxu0 %v5075_v17  ;;  %v5892_v29 = vpop.f32.mrf.mxu1 }
 0x163   : > { %v5898_v59 = vpop.f32.mrf.mxu1 }
 0x164   : > { %2162 = vmatpush1.bf16.msra.mxu0 %v5073_v35 }
 0x165   : > { %1326 = vmatmul.mubr.bf16.gmra.mxu0 %v997_v33  ;;  %2163 = vmatprep.subr.bf16.mxu0 %v5078_v25  ;;  %v5900_v55 = vpop.f32.mrf.mxu1 }
 0x166   : > { %1335 = vmatprep.mubr.bf16.mxu0 %v1000_v27 }
 0x168   : > { %2164 = vmatpush1.bf16.msra.mxu0 %v5076_v20  ;;  %v5091_v20 = vld [vmem:[#allocation2 + $0x2d0] ss:$8 sps:$4 sm:$0xff]  }
 0x169   : > { %2165 = vmatprep.subr.bf16.mxu0 %v5081_v40 }
 0x16c   : > { %2166 = vmatpush1.bf16.msra.mxu0 %v5079_v53 }
 0x16d   : > { %1336 = vmatmul.mubr.bf16.gmra.mxu0 %v999_v43  ;;  %2167 = vmatprep.subr.bf16.mxu0 %v5084_v62 }
 0x16e   : > { %1345 = vmatprep.mubr.bf16.mxu0 %v1002_v22 }
 0x170   : > { %2168 = vmatpush1.bf16.msra.mxu0 %v5082_v38 }
 0x171   : > { %2169 = vmatprep.subr.bf16.mxu0 %v5087_v42 }
 0x174   : > { %2170 = vmatpush2.bf16.msra.mxu0 %v5085_v9 }
 0x175   : > { %1346 = vmatmul.mubr.bf16.gmra.mxu0 %v1001_v39  ;;  %2171 = vmatprep.subr.bf16.mxu0 %v5090_v49 }
 0x176   : > { %1355 = vmatprep.mubr.bf16.mxu0 %v1004_v34 }
 0x178   : > { %2172 = vmatpush2.bf16.msra.mxu0 %v5088_v28 }
 0x179   : > { %2173 = vmatprep.subr.bf16.mxu0 %v5093_v6 }
 0x17c   : > { %2174 = vmatpush2.bf16.msra.mxu0 %v5091_v20 }
 0x17d   : > { %1356 = vmatmul.mubr.bf16.gmra.mxu0 %v1003_v15  ;;  %v5906_v15 = vpop.f32.mrf.mxu1 }
 0x17f   : > { %v5908_v17 = vpop.f32.mrf.mxu1 }
 0x1c5   : > { %v1207_v19 = vpop.f32.mrf.mxu0 }
 0x1c6   : > { %v1208_v31 = vadd.f32 %v1207_v19, %v5890_v21 }
 0x1c7   : > { %v1209_v26 = vpop.f32.mrf.mxu0 }
 0x1c8   : > { %v1210_v0 = vadd.f32 %v1209_v26, %v5887_v16  ;;  %v1366_v41 = vmax.f32 %v1208_v31, 0.0 }
 0x1c9   : > { %v1211_v12 = vpop.f32.mrf.mxu0 }
 0x1ca   : > { %v1212_v27 = vadd.f32 %v1211_v12, %v5890_v21  ;;  %v1367_v37 = vmax.f32 %v1210_v0, 0.0  ;;  %v5096_v12 = vld [vmem:[#allocation2 + $0x2c4] ss:$8 sps:$4 sm:$0xff]  }
 0x1cb   : > { %v1213_v33 = vpop.f32.mrf.mxu0  ;;  %2175 = vmatprep.subr.bf16.mxu0 %v5096_v12 }
 0x1cc   : > { %v1214_v36 = vadd.f32 %v1213_v33, %v5887_v16  ;;  %v1368_v54 = vmax.f32 %v1212_v27, 0.0  ;;  %v5914_v33 = vpop.f32.mrf.mxu1 }
 0x1cd   : > { %v1217_v46 = vpop.f32.mrf.mxu0 }
 0x1ce   : > { %v1369_v3 = vmax.f32 %v1214_v36, 0.0  ;;  %v1463_v47 = vpack.c.bf16 %v1368_v54, %v1366_v41  ;;  %v1218_v34 = vadd.f32 %v1217_v46, %v5890_v21  ;;  %v5094_v36 = vld [vmem:[#allocation2 + $0x2c0] ss:$8 sps:$4 sm:$0xff]   ;;  %v5099_v46 = vld [vmem:[#allocation2 + $0x2b4] ss:$8 sps:$4 sm:$0xff]   ;;  %v5916_v41 = vpop.f32.mrf.mxu1 }
 0x1cf   : > { %v1219_v22 = vpop.f32.mrf.mxu0  ;;  %2176 = vmatpush2.bf16.msra.mxu0 %v5094_v36 }
 0x1d0   : > { %v1464_v43 = vpack.c.bf16 %v1369_v3, %v1367_v37  ;;  %v1220_v14 = vadd.f32 %v1219_v22, %v5887_v16  ;;  %v1370_v4 = vmax.f32 %v1218_v34, 0.0  ;;  %2177 = vmatprep.subr.bf16.mxu0 %v5099_v46 }
 0x1d1   : > { %v1221_v30 = vpop.f32.mrf.mxu0 }
 0x1d2   : > { %v1222_v24 = vadd.f32 %v1221_v30, %v5890_v21  ;;  %1695 = vmatprep.mubr.bf16.mxu1 %v1464_v43  ;;  %v1371_v2 = vmax.f32 %v1220_v14, 0.0  ;;  %v5097_v43 = vld [vmem:[#allocation2 + $0x2b0] ss:$8 sps:$4 sm:$0xff]   ;;  %v5102_v14 = vld [vmem:[#allocation2 + $0x2a4] ss:$8 sps:$4 sm:$0xff]  }
 0x1d3   : > { %v1223_v39 = vpop.f32.mrf.mxu0  ;;  %1696 = vmatmul.mubr.bf16.vlgmr.msra.gmra.mxu1 %v1463_v47  ;;  %2178 = vmatpush2.bf16.msra.mxu0 %v5097_v43 }
 0x1d4   : > { %v1224_v18 = vadd.f32 %v1223_v39, %v5887_v16  ;;  %v1372_v60 = vmax.f32 %v1222_v24, 0.0  ;;  %v5922_v39 = vpop.f32.mrf.mxu1  ;;  %2179 = vmatprep.subr.bf16.mxu0 %v5102_v14 }
 0x1d5   : > { %v1227_v32 = vpop.f32.mrf.mxu0 }
 0x1d6   : > { %v1373_v1 = vmax.f32 %v1224_v18, 0.0  ;;  %v1465_v8 = vpack.c.bf16 %v1372_v60, %v1370_v4  ;;  %v1228_v25 = vadd.f32 %v1227_v32, %v5890_v21  ;;  %v5100_v60 = vld [vmem:[#allocation2 + $0x2a0] ss:$8 sps:$4 sm:$0xff]   ;;  %v5924_v6 = vpop.f32.mrf.mxu1 }
 0x1d7   : > { %v1229_v23 = vpop.f32.mrf.mxu0  ;;  %2180 = vmatpush2.bf16.msra.mxu0 %v5100_v60 }
 0x1d8   : > { %v1466_v10 = vpack.c.bf16 %v1373_v1, %v1371_v2  ;;  %v1230_v13 = vadd.f32 %v1229_v23, %v5887_v16  ;;  %v1374_v62 = vmax.f32 %v1228_v25, 0.0  ;;  %v5105_v1 = vld [vmem:[#allocation2 + $0x294] ss:$8 sps:$4 sm:$0xff]   ;;  %v5930_v12 = vpop.f32.mrf.mxu1 }
 0x1d9   : > { %v1231_v35 = vpop.f32.mrf.mxu0  ;;  %2181 = vmatprep.subr.bf16.mxu0 %v5105_v1 }
 0x1da   : > { %v1232_v19 = vadd.f32 %v1231_v35, %v5890_v21  ;;  %1705 = vmatprep.mubr.bf16.mxu1 %v1466_v10  ;;  %v1375_v53 = vmax.f32 %v1230_v13, 0.0  ;;  %v5103_v35 = vld [vmem:[#allocation2 + $0x290] ss:$8 sps:$4 sm:$0xff]  }
 0x1db   : > { %v1233_v26 = vpop.f32.mrf.mxu0  ;;  %1706 = vmatmul.mubr.bf16.gmra.mxu1 %v1465_v8  ;;  %2182 = vmatpush2.bf16.msra.mxu0 %v5103_v35 }
 0x1dc   : > { %v1234_v0 = vadd.f32 %v1233_v26, %v5887_v16  ;;  %v1376_v27 = vmax.f32 %v1232_v19, 0.0 }
 0x1dd   : > { %v1237_v31 = vpop.f32.mrf.mxu0 }
 0x1de   : > { %v1377_v40 = vmax.f32 %v1234_v0, 0.0  ;;  %v1467_v3 = vpack.c.bf16 %v1376_v27, %v1374_v62  ;;  %v1238_v47 = vadd.f32 %v1237_v31, %v5890_v21 }
 0x1df   : > { %v1239_v54 = vpop.f32.mrf.mxu0 }
 0x1e0   : > { %v1468_v37 = vpack.c.bf16 %v1377_v40, %v1375_v53  ;;  %v1240_v22 = vadd.f32 %v1239_v54, %v5887_v16  ;;  %v1378_v32 = vmax.f32 %v1238_v47, 0.0  ;;  %v5932_v54 = vpop.f32.mrf.mxu1 }
 0x1e1   : > { %v1241_v38 = vpop.f32.mrf.mxu0 }
 0x1e2   : > { %v1242_v42 = vadd.f32 %v1241_v38, %v5890_v21  ;;  %1715 = vmatprep.mubr.bf16.mxu1 %v1468_v37  ;;  %v1379_v49 = vmax.f32 %v1240_v22, 0.0  ;;  %v5938_v47 = vpop.f32.mrf.mxu1 }
 0x1e3   : > { %v1243_v30 = vpop.f32.mrf.mxu0  ;;  %1716 = vmatmul.mubr.bf16.gmra.mxu1 %v1467_v3 }
 0x1e4   : > { %v1244_v24 = vadd.f32 %v1243_v30, %v5887_v16  ;;  %v1380_v9 = vmax.f32 %v1242_v42, 0.0  ;;  %v5940_v60 = vpop.f32.mrf.mxu1 }
 0x1e5   : > { %v1247_v34 = vpop.f32.mrf.mxu0 }
 0x1e6   : > { %v1381_v18 = vmax.f32 %v1244_v24, 0.0  ;;  %v1469_v4 = vpack.c.bf16 %v1380_v9, %v1378_v32  ;;  %v1248_v13 = vadd.f32 %v1247_v34, %v5890_v21 }
 0x1e7   : > { %v1249_v2 = vpop.f32.mrf.mxu0 }
 0x1e8   : > { %v1470_v28 = vpack.c.bf16 %v1381_v18, %v1379_v49  ;;  %v1250_v10 = vadd.f32 %v1249_v2, %v5887_v16  ;;  %v1382_v31 = vmax.f32 %v1248_v13, 0.0 }
 0x1e9   : > { %v1251_v23 = vpop.f32.mrf.mxu0 }
 0x1ea   : > { %v1252_v8 = vadd.f32 %v1251_v23, %v5890_v21  ;;  %1725 = vmatprep.mubr.bf16.mxu1 %v1470_v28  ;;  %v1383_v0 = vmax.f32 %v1250_v10, 0.0 }
 0x1eb   : > { %v1253_v19 = vpop.f32.mrf.mxu0  ;;  %1726 = vmatmul.mubr.bf16.gmra.mxu1 %v1469_v4 }
 0x1ec   : > { %v1254_v20 = vadd.f32 %v1253_v19, %v5887_v16  ;;  %v1384_v25 = vmax.f32 %v1252_v8, 0.0  ;;  %v5946_v8 = vpop.f32.mrf.mxu1 }
 0x1ed   : > { %v1257_v26 = vpop.f32.mrf.mxu0 }
 0x1ee   : > { %v1385_v27 = vmax.f32 %v1254_v20, 0.0  ;;  %v1471_v36 = vpack.c.bf16 %v1384_v25, %v1382_v31  ;;  %v1258_v3 = vadd.f32 %v1257_v26, %v5890_v21 }
 0x1ef   : > { %v1259_v53 = vpop.f32.mrf.mxu0 }
 0x1f0   : > { %v1472_v40 = vpack.c.bf16 %v1385_v27, %v1383_v0  ;;  %v1260_v46 = vadd.f32 %v1259_v53, %v5887_v16  ;;  %v1386_v24 = vmax.f32 %v1258_v3, 0.0  ;;  %v5948_v27 = vpop.f32.mrf.mxu1 }
 0x1f1   : > { %v1261_v62 = vpop.f32.mrf.mxu0 }
 0x1f2   : > { %v1262_v37 = vadd.f32 %v1261_v62, %v5890_v21  ;;  %1735 = vmatprep.mubr.bf16.mxu1 %v1472_v40  ;;  %v1387_v30 = vmax.f32 %v1260_v46, 0.0  ;;  %v5954_v3 = vpop.f32.mrf.mxu1 }
 0x1f3   : > { %v1263_v38 = vpop.f32.mrf.mxu0  ;;  %1736 = vmatmul.mubr.bf16.gmra.mxu1 %v1471_v36 }
 0x1f4   : > { %v1264_v22 = vadd.f32 %v1263_v38, %v5887_v16  ;;  %v1388_v42 = vmax.f32 %v1262_v37, 0.0 }
 0x1f5   : > { %v1267_v43 = vpop.f32.mrf.mxu0 }
 0x1f6   : > { %v1389_v14 = vmax.f32 %v1264_v22, 0.0  ;;  %v1473_v49 = vpack.c.bf16 %v1388_v42, %v1386_v24  ;;  %v1268_v1 = vadd.f32 %v1267_v43, %v5890_v21 }
 0x1f7   : > { %v1269_v9 = vpop.f32.mrf.mxu0 }
 0x1f8   : > { %v1474_v34 = vpack.c.bf16 %v1389_v14, %v1387_v30  ;;  %v1270_v32 = vadd.f32 %v1269_v9, %v5887_v16  ;;  %v1390_v19 = vmax.f32 %v1268_v1, 0.0  ;;  %v5956_v9 = vpop.f32.mrf.mxu1 }
 0x1f9   : > { %v1271_v18 = vpop.f32.mrf.mxu0 }
 0x1fa   : > { %v1272_v2 = vadd.f32 %v1271_v18, %v5890_v21  ;;  %1745 = vmatprep.mubr.bf16.mxu1 %v1474_v34  ;;  %v1391_v35 = vmax.f32 %v1270_v32, 0.0 }
 0x1fb   : > { %v1273_v28 = vpop.f32.mrf.mxu0  ;;  %1746 = vmatmul.mubr.bf16.gmra.mxu1 %v1473_v49 }
 0x1fc   : > { %v1274_v4 = vadd.f32 %v1273_v28, %v5887_v16  ;;  %v1392_v23 = vmax.f32 %v1272_v2, 0.0 }
 0x1fd   : > { %v1277_v10 = vpop.f32.mrf.mxu0 }
 0x1fe   : > { %v1393_v13 = vmax.f32 %v1274_v4, 0.0  ;;  %v1475_v26 = vpack.c.bf16 %v1392_v23, %v1390_v19  ;;  %v1278_v40 = vadd.f32 %v1277_v10, %v5890_v21  ;;  %v5962_v4 = vpop.f32.mrf.mxu1 }
 0x1ff   : > { %v1279_v20 = vpop.f32.mrf.mxu0 }
 0x200   : > { %v1476_v25 = vpack.c.bf16 %v1393_v13, %v1391_v35  ;;  %v1280_v31 = vadd.f32 %v1279_v20, %v5887_v16  ;;  %v1394_v42 = vmax.f32 %v1278_v40, 0.0 }
 0x201   : > { %v1281_v0 = vpop.f32.mrf.mxu0 }
 0x202   : > { %v1282_v53 = vadd.f32 %v1281_v0, %v5890_v21  ;;  %1755 = vmatprep.mubr.bf16.mxu1 %v1476_v25  ;;  %v1395_v38 = vmax.f32 %v1280_v31, 0.0 }
 0x203   : > { %v1283_v36 = vpop.f32.mrf.mxu0  ;;  %1756 = vmatmul.mubr.bf16.gmra.mxu1 %v1475_v26  ;;  %v5964_v26 = vpop.f32.mrf.mxu1 }
 0x204   : > { %v1284_v62 = vadd.f32 %v1283_v36, %v5887_v16  ;;  %v1396_v46 = vmax.f32 %v1282_v53, 0.0 }
 0x205   : > { %v1287_v37 = vpop.f32.mrf.mxu0 }
 0x206   : > { %v1397_v22 = vmax.f32 %v1284_v62, 0.0  ;;  %v1477_v14 = vpack.c.bf16 %v1396_v46, %v1394_v42  ;;  %v1288_v18 = vadd.f32 %v1287_v37, %v5890_v21  ;;  %v5970_v37 = vpop.f32.mrf.mxu1 }
 0x207   : > { %v1289_v43 = vpop.f32.mrf.mxu0 }
 0x208   : > { %v1478_v30 = vpack.c.bf16 %v1397_v22, %v1395_v38  ;;  %v1290_v34 = vadd.f32 %v1289_v43, %v5887_v16  ;;  %v1398_v35 = vmax.f32 %v1288_v18, 0.0 }
 0x209   : > { %v1291_v24 = vpop.f32.mrf.mxu0 }
 0x20a   : > { %v1292_v49 = vadd.f32 %v1291_v24, %v5890_v21  ;;  %1765 = vmatprep.mubr.bf16.mxu1 %v1478_v30  ;;  %v1399_v23 = vmax.f32 %v1290_v34, 0.0  ;;  %v5972_v34 = vpop.f32.mrf.mxu1 }
 0x20b   : > { %v1293_v32 = vpop.f32.mrf.mxu0  ;;  %1766 = vmatmul.mubr.bf16.gmra.mxu1 %v1477_v14 }
 0x20c   : > { %v1294_v2 = vadd.f32 %v1293_v32, %v5887_v16  ;;  %v1400_v1 = vmax.f32 %v1292_v49, 0.0 }
 0x20d   : > { %v1297_v28 = vpop.f32.mrf.mxu0 }
 0x20e   : > { %v1401_v10 = vmax.f32 %v1294_v2, 0.0  ;;  %v1479_v20 = vpack.c.bf16 %v1400_v1, %v1398_v35  ;;  %v1298_v53 = vadd.f32 %v1297_v28, %v5890_v21  ;;  %v5108_v1 = vld [vmem:[#allocation2 + $0x284] ss:$8 sps:$4 sm:$0xff]  }
 0x20f   : > { %v1299_v13 = vpop.f32.mrf.mxu0  ;;  %2183 = vmatprep.subr.bf16.mxu0 %v5108_v1 }
 0x210   : > { %v1480_v19 = vpack.c.bf16 %v1401_v10, %v1399_v23  ;;  %v1300_v0 = vadd.f32 %v1299_v13, %v5887_v16  ;;  %v1402_v42 = vmax.f32 %v1298_v53, 0.0  ;;  %v5106_v23 = vld [vmem:[#allocation2 + $0x280] ss:$8 sps:$4 sm:$0xff]   ;;  %v5978_v13 = vpop.f32.mrf.mxu1 }
 0x211   : > { %v1301_v25 = vpop.f32.mrf.mxu0  ;;  %2184 = vmatpush2.bf16.msra.mxu0 %v5106_v23 }
 0x212   : > { %v1302_v31 = vadd.f32 %v1301_v25, %v5890_v21  ;;  %1775 = vmatprep.mubr.bf16.mxu1 %v1480_v19  ;;  %v1403_v38 = vmax.f32 %v1300_v0, 0.0 }
 0x213   : > { %v1303_v40 = vpop.f32.mrf.mxu0  ;;  %1776 = vmatmul.mubr.bf16.gmra.mxu1 %v1479_v20 }
 0x214   : > { %v1304_v36 = vadd.f32 %v1303_v40, %v5887_v16  ;;  %v1404_v62 = vmax.f32 %v1302_v31, 0.0 }
 0x215   : > { %v1307_v46 = vpop.f32.mrf.mxu0 }
 0x216   : > { %v1405_v22 = vmax.f32 %v1304_v36, 0.0  ;;  %v1481_v14 = vpack.c.bf16 %v1404_v62, %v1402_v42  ;;  %v1308_v32 = vadd.f32 %v1307_v46, %v5890_v21  ;;  %v5980_v36 = vpop.f32.mrf.mxu1 }
 0x217   : > { %v1309_v43 = vpop.f32.mrf.mxu0 }
 0x218   : > { %v1482_v30 = vpack.c.bf16 %v1405_v22, %v1403_v38  ;;  %v1310_v49 = vadd.f32 %v1309_v43, %v5887_v16  ;;  %v1406_v25 = vmax.f32 %v1308_v32, 0.0 }
 0x219   : > { %v1311_v24 = vpop.f32.mrf.mxu0 }
 0x21a   : > { %v1312_v18 = vadd.f32 %v1311_v24, %v5890_v21  ;;  %1785 = vmatprep.mubr.bf16.mxu1 %v1482_v30  ;;  %v1407_v19 = vmax.f32 %v1310_v49, 0.0 }
 0x21b   : > { %v1313_v2 = vpop.f32.mrf.mxu0  ;;  %1786 = vmatmul.mubr.bf16.gmra.mxu1 %v1481_v14  ;;  %v5986_v14 = vpop.f32.mrf.mxu1 }
 0x21c   : > { %v1314_v28 = vadd.f32 %v1313_v2, %v5887_v16  ;;  %v1408_v10 = vmax.f32 %v1312_v18, 0.0 }
 0x21d   : > { %v1317_v35 = vpop.f32.mrf.mxu0  ;;  %v5988_v23 = vpop.f32.mrf.mxu1 }
 0x21e   : > { %v1409_v20 = vmax.f32 %v1314_v28, 0.0  ;;  %v1483_v53 = vpack.c.bf16 %v1408_v10, %v1406_v25  ;;  %v1318_v38 = vadd.f32 %v1317_v35, %v5890_v21 }
 0x21f   : > { %v1319_v0 = vpop.f32.mrf.mxu0 }
 0x220   : > { %v1484_v31 = vpack.c.bf16 %v1409_v20, %v1407_v19  ;;  %v1320_v62 = vadd.f32 %v1319_v0, %v5887_v16  ;;  %v1410_v18 = vmax.f32 %v1318_v38, 0.0 }
 0x221   : > { %v1321_v40 = vpop.f32.mrf.mxu0 }
 0x222   : > { %v1322_v46 = vadd.f32 %v1321_v40, %v5890_v21  ;;  %1795 = vmatprep.mubr.bf16.mxu1 %v1484_v31  ;;  %v1411_v24 = vmax.f32 %v1320_v62, 0.0 }
 0x223   : > { %v1323_v22 = vpop.f32.mrf.mxu0  ;;  %1796 = vmatmul.mubr.bf16.gmra.mxu1 %v1483_v53  ;;  %v5994_v53 = vpop.f32.mrf.mxu1 }
 0x224   : > { %v1324_v42 = vadd.f32 %v1323_v22, %v5887_v16  ;;  %v1412_v43 = vmax.f32 %v1322_v46, 0.0  ;;  %6706 = vst [vmem:[#allocation8_spill] sm:$0xff] %v5994_v53 }
 0x225   : > { %v1327_v30 = vpop.f32.mrf.mxu0 }
 0x226   : > { %v1413_v49 = vmax.f32 %v1324_v42, 0.0  ;;  %v1485_v1 = vpack.c.bf16 %v1412_v43, %v1410_v18  ;;  %v1328_v19 = vadd.f32 %v1327_v30, %v5890_v21 }
 0x227   : > { %v1329_v32 = vpop.f32.mrf.mxu0 }
 0x228   : > { %v1486_v2 = vpack.c.bf16 %v1413_v49, %v1411_v24  ;;  %v1330_v10 = vadd.f32 %v1329_v32, %v5887_v16  ;;  %v1414_v46 = vmax.f32 %v1328_v19, 0.0  ;;  %v5996_v24 = vpop.f32.mrf.mxu1 }
 0x229   : > { %v1331_v28 = vpop.f32.mrf.mxu0  ;;  %6707 = vst [vmem:[#allocation9_spill] sm:$0xff] %v5996_v24 }
 0x22a   : > { %v1332_v35 = vadd.f32 %v1331_v28, %v5890_v21  ;;  %1805 = vmatprep.mubr.bf16.mxu1 %v1486_v2  ;;  %v1415_v40 = vmax.f32 %v1330_v10, 0.0  ;;  %v6002_v10 = vpop.f32.mrf.mxu1 }
 0x22b   : > { %v1333_v20 = vpop.f32.mrf.mxu0  ;;  %1806 = vmatmul.mubr.bf16.gmra.mxu1 %v1485_v1  ;;  %6708 = vst [vmem:[#allocation10_spill] sm:$0xff] %v6002_v10 }
 0x22c   : > { %v1334_v25 = vadd.f32 %v1333_v20, %v5887_v16  ;;  %v1416_v0 = vmax.f32 %v1332_v35, 0.0 }
 0x22d   : > { %v1337_v31 = vpop.f32.mrf.mxu0 }
 0x22e   : > { %v1417_v62 = vmax.f32 %v1334_v25, 0.0  ;;  %v1487_v42 = vpack.c.bf16 %v1416_v0, %v1414_v46  ;;  %v1338_v18 = vadd.f32 %v1337_v31, %v5890_v21  ;;  %v6004_v46 = vpop.f32.mrf.mxu1 }
 0x22f   : > { %v1339_v38 = vpop.f32.mrf.mxu0  ;;  %6709 = vst [vmem:[#allocation11_spill] sm:$0xff] %v6004_v46 }
 0x230   : > { %v1488_v22 = vpack.c.bf16 %v1417_v62, %v1415_v40  ;;  %v1340_v49 = vadd.f32 %v1339_v38, %v5887_v16  ;;  %v1418_v20 = vmax.f32 %v1338_v18, 0.0  ;;  %v6010_v18 = vpop.f32.mrf.mxu1 }
 0x231   : > { %v1341_v43 = vpop.f32.mrf.mxu0  ;;  %6710 = vst [vmem:[#allocation12_spill] sm:$0xff] %v6010_v18 }
 0x232   : > { %v1342_v30 = vadd.f32 %v1341_v43, %v5890_v21  ;;  %1815 = vmatprep.mubr.bf16.mxu1 %v1488_v22  ;;  %v1419_v35 = vmax.f32 %v1340_v49, 0.0  ;;  %v6012_v10 = vpop.f32.mrf.mxu1 }
 0x233   : > { %v1343_v32 = vpop.f32.mrf.mxu0  ;;  %1816 = vmatmul.mubr.bf16.gmra.mxu1 %v1487_v42  ;;  %6711 = vst [vmem:[#allocation13_spill] sm:$0xff] %v6012_v10 }
 0x234   : > { %v1344_v2 = vadd.f32 %v1343_v32, %v5887_v16  ;;  %v1420_v1 = vmax.f32 %v1342_v30, 0.0 }
 0x235   : > { %v1347_v28 = vpop.f32.mrf.mxu0 }
 0x236   : > { %v1421_v19 = vmax.f32 %v1344_v2, 0.0  ;;  %v1489_v40 = vpack.c.bf16 %v1420_v1, %v1418_v20  ;;  %v1348_v22 = vadd.f32 %v1347_v28, %v5890_v21 }
 0x237   : > { %v1349_v25 = vpop.f32.mrf.mxu0 }
 0x238   : > { %v1490_v0 = vpack.c.bf16 %v1421_v19, %v1419_v35  ;;  %v1350_v38 = vadd.f32 %v1349_v25, %v5887_v16  ;;  %v1422_v1 = vmax.f32 %v1348_v22, 0.0 }
 0x239   : > { %v1351_v62 = vpop.f32.mrf.mxu0 }
 0x23a   : > { %v1352_v31 = vadd.f32 %v1351_v62, %v5890_v21  ;;  %1825 = vmatprep.mubr.bf16.mxu1 %v1490_v0  ;;  %v1423_v32 = vmax.f32 %v1350_v38, 0.0 }
 0x23b   : > { %v1353_v42 = vpop.f32.mrf.mxu0  ;;  %1826 = vmatmul.mubr.bf16.gmra.mxu1 %v1489_v40 }
 0x23c   : > { %v1354_v43 = vadd.f32 %v1353_v42, %v5887_v16  ;;  %v1424_v49 = vmax.f32 %v1352_v31, 0.0  ;;  %v6018_v42 = vpop.f32.mrf.mxu1 }
 0x23d   : > { %v1357_v30 = vpop.f32.mrf.mxu0  ;;  %6712 = vst [vmem:[#allocation14_spill] sm:$0xff] %v6018_v42 }
 0x23e   : > { %v1425_v2 = vmax.f32 %v1354_v43, 0.0  ;;  %v1491_v20 = vpack.c.bf16 %v1424_v49, %v1422_v1  ;;  %v1358_v40 = vadd.f32 %v1357_v30, %v5890_v21  ;;  %v6020_v1 = vpop.f32.mrf.mxu1 }
 0x23f   : > { %v1359_v35 = vpop.f32.mrf.mxu0  ;;  %6713 = vst [vmem:[#allocation15_spill] sm:$0xff] %v6020_v1 }
 0x240   : > { %v1492_v19 = vpack.c.bf16 %v1425_v2, %v1423_v32  ;;  %v1360_v0 = vadd.f32 %v1359_v35, %v5887_v16  ;;  %v1426_v49 = vmax.f32 %v1358_v40, 0.0  ;;  %v6022_v35 = vpop.f32.mrf.mxu1  ;;  %v5109_v40 = vld [vmem:[#allocation2 + $0x370] ss:$8 sps:$4 sm:$0xff]  }
 0x241   : > { %v1361_v25 = vpop.f32.mrf.mxu0  ;;  %6714 = vst [vmem:[#allocation16_spill] sm:$0xff] %v6022_v35  ;;  %v5132_v35 = vld [vmem:[#allocation2 + $0x304] ss:$8 sps:$4 sm:$0xff]  }
 0x242   : > { %v1362_v28 = vadd.f32 %v1361_v25, %v5890_v21  ;;  %1835 = vmatprep.mubr.bf16.mxu1 %v1492_v19  ;;  %v1427_v22 = vmax.f32 %v1360_v0, 0.0  ;;  %v6024_v19 = vpop.f32.mrf.mxu1 }
 0x243   : > { %v1363_v62 = vpop.f32.mrf.mxu0  ;;  %1836 = vmatmul.mubr.bf16.gmra.mxu1 %v1491_v20  ;;  %6715 = vst [vmem:[#allocation17_spill] sm:$0xff] %v6024_v19 }
 0x244   : > { %v1364_v31 = vadd.f32 %v1363_v62, %v5887_v16  ;;  %v1428_v38 = vmax.f32 %v1362_v28, 0.0  ;;  %v6026_v21 = vpop.f32.mrf.mxu1  ;;  %v5111_v62 = vld [vmem:[#allocation2 + $0x374] ss:$8 sps:$4 sm:$0xff]  }
 0x245   : > { %6716 = vst [vmem:[#allocation18_spill] sm:$0xff] %v6026_v21  ;;  %2643 = vmatprep.subr.bf16.mxu1 %v5111_v62  ;;  %v5118_v62 = vld [vmem:[#allocation2 + $0x340] ss:$8 sps:$4 sm:$0xff]   ;;  %v5127_v21 = vld [vmem:[#allocation2 + $0x310] ss:$8 sps:$4 sm:$0xff]  }
 0x246   : > { %v1429_v43 = vmax.f32 %v1364_v31, 0.0  ;;  %v1493_v2 = vpack.c.bf16 %v1428_v38, %v1426_v49  ;;  %v6028_v30 = vpop.f32.mrf.mxu1  ;;  %2644 = vmatpush1.bf16.msra.mxu1 %v5109_v40  ;;  %v5120_v40 = vld [vmem:[#allocation2 + $0x344] ss:$8 sps:$4 sm:$0xff]  }
 0x247   : > { %6717 = vst [vmem:[#allocation19_spill] sm:$0xff] %v6028_v30  ;;  %v5129_v30 = vld [vmem:[#allocation2 + $0x314] ss:$8 sps:$4 sm:$0xff]  }
 0x248   : > { %v1494_v32 = vpack.c.bf16 %v1429_v43, %v1427_v22  ;;  %v6030_v16 = vpop.f32.mrf.mxu1  ;;  %v5112_v22 = vld [vmem:[#allocation2 + $0x360] ss:$8 sps:$4 sm:$0xff]   ;;  %v5114_v43 = vld [vmem:[#allocation2 + $0x364] ss:$8 sps:$4 sm:$0xff]  }
 0x249   : > { %6718 = vst [vmem:[#allocation20_spill] sm:$0xff] %v6030_v16  ;;  %2645 = vmatprep.subr.bf16.mxu1 %v5114_v43  ;;  %v5121_v43 = vld [vmem:[#allocation2 + $0x330] ss:$8 sps:$4 sm:$0xff]  }
 0x24a   : > { %1845 = vmatprep.mubr.bf16.mxu1 %v1494_v32  ;;  %v6032_v20 = vpop.f32.mrf.mxu1  ;;  %2646 = vmatpush1.bf16.msra.mxu1 %v5112_v22  ;;  %v5123_v22 = vld [vmem:[#allocation2 + $0x334] ss:$8 sps:$4 sm:$0xff]  }
 0x24b   : > { %1846 = vmatmul.mubr.bf16.gmra.mxu1 %v1493_v2  ;;  %6719 = vst [vmem:[#allocation21_spill] sm:$0xff] %v6032_v20  ;;  %v5115_v2 = vld [vmem:[#allocation2 + $0x350] ss:$8 sps:$4 sm:$0xff]  }
 0x24c   : > { %v6034_v25 = vpop.f32.mrf.mxu1 }
 0x24d   : > { %6720 = vst [vmem:[#allocation22_spill] sm:$0xff] %v6034_v25  ;;  %v5117_v25 = vld [vmem:[#allocation2 + $0x354] ss:$8 sps:$4 sm:$0xff]  }
 0x24e   : > { %v6036_v0 = vpop.f32.mrf.mxu1  ;;  %2647 = vmatprep.subr.bf16.mxu1 %v5117_v25  ;;  %v6062_v25 = vld [vmem:[%s6701_s3 + $0x8] sm:$0xff] }
 0x24f   : > { %6721 = vst [vmem:[#allocation23_spill] sm:$0xff] %v6036_v0  ;;  %2648 = vmatpush1.bf16.msra.mxu1 %v5115_v2 }
 0x250   : > { %v6038_v28 = vpop.f32.mrf.mxu1  ;;  %2649 = vmatprep.subr.bf16.mxu1 %v5120_v40  ;;  %v5126_v40 = vld [vmem:[#allocation2 + $0x324] ss:$8 sps:$4 sm:$0xff]  }
 0x251   : > { %6722 = vst [vmem:[#allocation24_spill] sm:$0xff] %v6038_v28 }
 0x252   : > { %v6040_v31 = vpop.f32.mrf.mxu1 }
 0x253   : > { %6723 = vst [vmem:[#allocation25_spill] sm:$0xff] %v6040_v31  ;;  %2650 = vmatpush1.bf16.msra.mxu1 %v5118_v62  ;;  %v5124_v62 = vld [vmem:[#allocation2 + $0x320] ss:$8 sps:$4 sm:$0xff]  }
 0x254   : > { %v6042_v38 = vpop.f32.mrf.mxu1  ;;  %2651 = vmatprep.subr.bf16.mxu1 %v5123_v22 }
 0x255   : > { %6724 = vst [vmem:[#allocation26_spill] sm:$0xff] %v6042_v38 }
 0x256   : > { %v6044_v49 = vpop.f32.mrf.mxu1 }
 0x257   : > { %6725 = vst [vmem:[#allocation27_spill] sm:$0xff] %v6044_v49  ;;  %2652 = vmatpush1.bf16.msra.mxu1 %v5121_v43 }
 0x258   : > { %v6046_v32 = vpop.f32.mrf.mxu1  ;;  %2653 = vmatprep.subr.bf16.mxu1 %v5126_v40  ;;  %v5130_v40 = vld [vmem:[#allocation2 + $0x300] ss:$8 sps:$4 sm:$0xff]  }
 0x259   : > { %6726 = vst [vmem:[#allocation28_spill] sm:$0xff] %v6046_v32  ;;  %v1497_v32 = vsub.s32 2, %v5687_v51 }
 0x25a   : > { %v6048_v0 = vpop.f32.mrf.mxu1 }
 0x25b   : > { %6727 = vst [vmem:[#allocation29_spill] sm:$0xff] %v6048_v0  ;;  %v6065_v2 = vrot.slane %v6062_v25, %v1497_v32  ;;  %2654 = vmatpush1.bf16.msra.mxu1 %v5124_v62 }
 0x25c   : > { %v6050_v28 = vpop.f32.mrf.mxu1  ;;  %2655 = vmatprep.subr.bf16.mxu1 %v5129_v30 }
 0x25d   : > { %6728 = vst [vmem:[#allocation30_spill] sm:$0xff] %v6050_v28 }
 0x25e   : > { %v6052_v31 = vpop.f32.mrf.mxu1 }
 0x25f   : > { %6729 = vst [vmem:[#allocation31_spill] sm:$0xff] %v6052_v31  ;;  %2656 = vmatpush1.bf16.msra.mxu1 %v5127_v21 }
 0x260   : > { %v6054_v38 = vpop.f32.mrf.mxu1  ;;  %2657 = vmatprep.subr.bf16.mxu1 %v5132_v35 }
 0x261   : > { %6730 = vst [vmem:[#allocation32_spill] sm:$0xff] %v6054_v38  ;;  %v6070_v38 = vld [vmem:[%s6701_s3] sm:$0xff] }
 0x262   : > { %v6056_v49 = vpop.f32.mrf.mxu1 }
 0x263   : > { %6731 = vst [vmem:[#allocation33_spill] sm:$0xff] %v6056_v49  ;;  %v6073_v49 = vrot.slane %v6070_v38, %v1497_v32  ;;  %2658 = vmatpush1.bf16.msra.mxu1 %v5130_v40 }
 0x293   : > { %v1697_v0 = vpop.f32.mrf.mxu1 }
 0x294   : > { %v1698_v20 = vadd.f32 %v1697_v0, %v6073_v49 }
 0x295   : > { %v1699_v22 = vpop.f32.mrf.mxu1 }
 0x296   : > { %v1700_v28 = vadd.f32 %v1699_v22, %v6065_v2  ;;  %v1856_v62 = vmax.f32 %v1698_v20, 0.0  ;;  %v5135_v22 = vld [vmem:[#allocation2 + $0x3f4] ss:$8 sps:$4 sm:$0xff]  }
 0x297   : > { %v1701_v43 = vpop.f32.mrf.mxu1  ;;  %2659 = vmatprep.subr.bf16.mxu1 %v5135_v22  ;;  %v5139_v22 = vld [vmem:[#allocation2 + $0x3d0] ss:$8 sps:$4 sm:$0xff]  }
 0x298   : > { %v1702_v31 = vadd.f32 %v1701_v43, %v6073_v49  ;;  %v1857_v32 = vmax.f32 %v1700_v28, 0.0 }
 0x299   : > { %v1703_v16 = vpop.f32.mrf.mxu1 }
 0x29a   : > { %v1704_v19 = vadd.f32 %v1703_v16, %v6065_v2  ;;  %v1858_v42 = vmax.f32 %v1702_v31, 0.0  ;;  %v5133_v16 = vld [vmem:[#allocation2 + $0x3f0] ss:$8 sps:$4 sm:$0xff]   ;;  %v5136_v31 = vld [vmem:[#allocation2 + $0x3e0] ss:$8 sps:$4 sm:$0xff]  }
 0x29b   : > { %v1707_v1 = vpop.f32.mrf.mxu1  ;;  %2660 = vmatpush2.bf16.msra.mxu1 %v5133_v16  ;;  %v5144_v16 = vld [vmem:[#allocation2 + $0x3c4] ss:$8 sps:$4 sm:$0xff]  }
 0x29c   : > { %v1859_v10 = vmax.f32 %v1704_v19, 0.0  ;;  %v1953_v46 = vpack.c.bf16 %v1858_v42, %v1856_v62  ;;  %v1708_v30 = vadd.f32 %v1707_v1, %v6073_v49  ;;  %v5138_v19 = vld [vmem:[#allocation2 + $0x3e4] ss:$8 sps:$4 sm:$0xff]   ;;  %v5141_v62 = vld [vmem:[#allocation2 + $0x3d4] ss:$8 sps:$4 sm:$0xff]  }
 0x29d   : > { %v1709_v18 = vpop.f32.mrf.mxu1  ;;  %2661 = vmatprep.subr.bf16.mxu1 %v5138_v19 }
 0x29e   : > { %v1954_v43 = vpack.c.bf16 %v1859_v10, %v1857_v32  ;;  %v1710_v24 = vadd.f32 %v1709_v18, %v6065_v2  ;;  %v1860_v18 = vmax.f32 %v1708_v30, 0.0 }
 0x29f   : > { %v1711_v0 = vpop.f32.mrf.mxu1  ;;  %2662 = vmatpush2.bf16.msra.mxu1 %v5136_v31 }
 0x2a0   : > { %v1712_v53 = vadd.f32 %v1711_v0, %v6073_v49  ;;  %2185 = vmatprep.mubr.bf16.mxu0 %v1954_v43  ;;  %v1861_v10 = vmax.f32 %v1710_v24, 0.0  ;;  %2663 = vmatprep.subr.bf16.mxu1 %v5141_v62 }
 0x2a1   : > { %v1713_v28 = vpop.f32.mrf.mxu1  ;;  %2186 = vmatmul.mubr.bf16.vlgmr.msra.gmra.mxu0 %v1953_v46 }
 0x2a2   : > { %v1714_v21 = vadd.f32 %v1713_v28, %v6065_v2  ;;  %v1862_v35 = vmax.f32 %v1712_v53, 0.0 }
 0x2a3   : > { %v1717_v20 = vpop.f32.mrf.mxu1  ;;  %2664 = vmatpush2.bf16.msra.mxu1 %v5139_v22  ;;  %v5150_v22 = vld [vmem:[#allocation2 + $0x3a4] ss:$8 sps:$4 sm:$0xff]  }
 0x2a4   : > { %v1863_v42 = vmax.f32 %v1714_v21, 0.0  ;;  %v1955_v43 = vpack.c.bf16 %v1862_v35, %v1860_v18  ;;  %v1718_v53 = vadd.f32 %v1717_v20, %v6073_v49  ;;  %2665 = vmatprep.subr.bf16.mxu1 %v5144_v16 }
 0x2a5   : > { %v1719_v32 = vpop.f32.mrf.mxu1 }
 0x2a6   : > { %v1956_v40 = vpack.c.bf16 %v1863_v42, %v1861_v10  ;;  %v1720_v1 = vadd.f32 %v1719_v32, %v6065_v2  ;;  %v5142_v10 = vld [vmem:[#allocation2 + $0x3c0] ss:$8 sps:$4 sm:$0xff]   ;;  %v1864_v42 = vmax.f32 %v1718_v53, 0.0  ;;  %v5147_v32 = vld [vmem:[#allocation2 + $0x3b4] ss:$8 sps:$4 sm:$0xff]  }
 0x2a7   : > { %v1721_v0 = vpop.f32.mrf.mxu1  ;;  %2666 = vmatpush2.bf16.msra.mxu1 %v5142_v10 }
 0x2a8   : > { %v1722_v46 = vadd.f32 %v1721_v0, %v6073_v49  ;;  %2195 = vmatprep.mubr.bf16.mxu0 %v1956_v40  ;;  %v1865_v21 = vmax.f32 %v1720_v1, 0.0  ;;  %2667 = vmatprep.subr.bf16.mxu1 %v5147_v32 }
 0x2a9   : > { %v1723_v24 = vpop.f32.mrf.mxu1  ;;  %2196 = vmatmul.mubr.bf16.gmra.mxu0 %v1955_v43  ;;  %v5145_v43 = vld [vmem:[#allocation2 + $0x3b0] ss:$8 sps:$4 sm:$0xff]  }
 0x2aa   : > { %v1724_v30 = vadd.f32 %v1723_v24, %v6065_v2  ;;  %v1866_v28 = vmax.f32 %v1722_v46, 0.0 }
 0x2ab   : > { %v1727_v19 = vpop.f32.mrf.mxu1  ;;  %2668 = vmatpush2.bf16.msra.mxu1 %v5145_v43 }
 0x2ac   : > { %v1867_v35 = vmax.f32 %v1724_v30, 0.0  ;;  %v1957_v40 = vpack.c.bf16 %v1866_v28, %v1864_v42  ;;  %v1728_v46 = vadd.f32 %v1727_v19, %v6073_v49  ;;  %2669 = vmatprep.subr.bf16.mxu1 %v5150_v22 }
 0x2ad   : > { %v1729_v18 = vpop.f32.mrf.mxu1 }
 0x2ae   : > { %v1958_v31 = vpack.c.bf16 %v1867_v35, %v1865_v21  ;;  %v1730_v20 = vadd.f32 %v1729_v18, %v6065_v2  ;;  %v5148_v21 = vld [vmem:[#allocation2 + $0x3a0] ss:$8 sps:$4 sm:$0xff]   ;;  %v1868_v35 = vmax.f32 %v1728_v46, 0.0  ;;  %v5153_v18 = vld [vmem:[#allocation2 + $0x394] ss:$8 sps:$4 sm:$0xff]  }
 0x2af   : > { %v1731_v0 = vpop.f32.mrf.mxu1  ;;  %2670 = vmatpush2.bf16.msra.mxu1 %v5148_v21 }
 0x2b0   : > { %v1732_v62 = vadd.f32 %v1731_v0, %v6073_v49  ;;  %2205 = vmatprep.mubr.bf16.mxu0 %v1958_v31  ;;  %v1869_v30 = vmax.f32 %v1730_v20, 0.0  ;;  %2671 = vmatprep.subr.bf16.mxu1 %v5153_v18 }
 0x2b1   : > { %v1733_v1 = vpop.f32.mrf.mxu1  ;;  %2206 = vmatmul.mubr.bf16.gmra.mxu0 %v1957_v40  ;;  %v5151_v40 = vld [vmem:[#allocation2 + $0x390] ss:$8 sps:$4 sm:$0xff]  }
 0x2b2   : > { %v1734_v53 = vadd.f32 %v1733_v1, %v6065_v2  ;;  %v1870_v24 = vmax.f32 %v1732_v62, 0.0 }
 0x2b3   : > { %v1737_v16 = vpop.f32.mrf.mxu1  ;;  %2672 = vmatpush2.bf16.msra.mxu1 %v5151_v40 }
 0x2b4   : > { %v1871_v28 = vmax.f32 %v1734_v53, 0.0  ;;  %v1959_v31 = vpack.c.bf16 %v1870_v24, %v1868_v35  ;;  %v1738_v62 = vadd.f32 %v1737_v16, %v6073_v49 }
 0x2b5   : > { %v1739_v42 = vpop.f32.mrf.mxu1 }
 0x2b6   : > { %v1960_v10 = vpack.c.bf16 %v1871_v28, %v1869_v30  ;;  %v1740_v19 = vadd.f32 %v1739_v42, %v6065_v2  ;;  %v1872_v24 = vmax.f32 %v1738_v62, 0.0 }
 0x2b7   : > { %v1741_v0 = vpop.f32.mrf.mxu1 }
 0x2b8   : > { %v1742_v32 = vadd.f32 %v1741_v0, %v6073_v49  ;;  %2215 = vmatprep.mubr.bf16.mxu0 %v1960_v10  ;;  %v1873_v22 = vmax.f32 %v1740_v19, 0.0 }
 0x2b9   : > { %v1743_v20 = vpop.f32.mrf.mxu1  ;;  %2216 = vmatmul.mubr.bf16.gmra.mxu0 %v1959_v31 }
 0x2ba   : > { %v1744_v43 = vadd.f32 %v1743_v20, %v6065_v2  ;;  %v1874_v46 = vmax.f32 %v1742_v32, 0.0 }
 0x2bb   : > { %v1747_v1 = vpop.f32.mrf.mxu1 }
 0x2bc   : > { %v1875_v53 = vmax.f32 %v1744_v43, 0.0  ;;  %v1961_v35 = vpack.c.bf16 %v1874_v46, %v1872_v24  ;;  %v1748_v16 = vadd.f32 %v1747_v1, %v6073_v49 }
 0x2bd   : > { %v1749_v30 = vpop.f32.mrf.mxu1 }
 0x2be   : > { %v1962_v28 = vpack.c.bf16 %v1875_v53, %v1873_v22  ;;  %v1750_v21 = vadd.f32 %v1749_v30, %v6065_v2  ;;  %v1876_v62 = vmax.f32 %v1748_v16, 0.0 }
 0x2bf   : > { %v1751_v42 = vpop.f32.mrf.mxu1 }
 0x2c0   : > { %v1752_v10 = vadd.f32 %v1751_v42, %v6073_v49  ;;  %2225 = vmatprep.mubr.bf16.mxu0 %v1962_v28  ;;  %v1877_v32 = vmax.f32 %v1750_v21, 0.0 }
 0x2c1   : > { %v1753_v18 = vpop.f32.mrf.mxu1  ;;  %2226 = vmatmul.mubr.bf16.gmra.mxu0 %v1961_v35 }
 0x2c2   : > { %v1754_v31 = vadd.f32 %v1753_v18, %v6065_v2  ;;  %v1878_v0 = vmax.f32 %v1752_v10, 0.0 }
 0x2c3   : > { %v1757_v19 = vpop.f32.mrf.mxu1 }
 0x2c4   : > { %v1879_v40 = vmax.f32 %v1754_v31, 0.0  ;;  %v1963_v46 = vpack.c.bf16 %v1878_v0, %v1876_v62  ;;  %v1758_v1 = vadd.f32 %v1757_v19, %v6073_v49 }
 0x2c5   : > { %v1759_v20 = vpop.f32.mrf.mxu1 }
 0x2c6   : > { %v1964_v43 = vpack.c.bf16 %v1879_v40, %v1877_v32  ;;  %v1760_v53 = vadd.f32 %v1759_v20, %v6065_v2  ;;  %v1880_v16 = vmax.f32 %v1758_v1, 0.0 }
 0x2c7   : > { %v1761_v22 = vpop.f32.mrf.mxu1 }
 0x2c8   : > { %v1762_v24 = vadd.f32 %v1761_v22, %v6073_v49  ;;  %2235 = vmatprep.mubr.bf16.mxu0 %v1964_v43  ;;  %v1881_v21 = vmax.f32 %v1760_v53, 0.0 }
 0x2c9   : > { %v1763_v30 = vpop.f32.mrf.mxu1  ;;  %2236 = vmatmul.mubr.bf16.gmra.mxu0 %v1963_v46 }
 0x2ca   : > { %v1764_v28 = vadd.f32 %v1763_v30, %v6065_v2  ;;  %v1882_v35 = vmax.f32 %v1762_v24, 0.0 }
 0x2cb   : > { %v1767_v42 = vpop.f32.mrf.mxu1 }
 0x2cc   : > { %v1883_v10 = vmax.f32 %v1764_v28, 0.0  ;;  %v1965_v0 = vpack.c.bf16 %v1882_v35, %v1880_v16  ;;  %v1768_v19 = vadd.f32 %v1767_v42, %v6073_v49 }
 0x2cd   : > { %v1769_v18 = vpop.f32.mrf.mxu1 }
 0x2ce   : > { %v1966_v31 = vpack.c.bf16 %v1883_v10, %v1881_v21  ;;  %v1770_v40 = vadd.f32 %v1769_v18, %v6065_v2  ;;  %v1884_v1 = vmax.f32 %v1768_v19, 0.0 }
 0x2cf   : > { %v1771_v32 = vpop.f32.mrf.mxu1 }
 0x2d0   : > { %v1772_v62 = vadd.f32 %v1771_v32, %v6073_v49  ;;  %2245 = vmatprep.mubr.bf16.mxu0 %v1966_v31  ;;  %v1885_v53 = vmax.f32 %v1770_v40, 0.0 }
 0x2d1   : > { %v1773_v20 = vpop.f32.mrf.mxu1  ;;  %2246 = vmatmul.mubr.bf16.gmra.mxu0 %v1965_v0 }
 0x2d2   : > { %v1774_v43 = vadd.f32 %v1773_v20, %v6065_v2  ;;  %v1886_v46 = vmax.f32 %v1772_v62, 0.0 }
 0x2d3   : > { %v1777_v22 = vpop.f32.mrf.mxu1 }
 0x2d4   : > { %v1887_v24 = vmax.f32 %v1774_v43, 0.0  ;;  %v1967_v35 = vpack.c.bf16 %v1886_v46, %v1884_v1  ;;  %v1778_v42 = vadd.f32 %v1777_v22, %v6073_v49 }
 0x2d5   : > { %v1779_v30 = vpop.f32.mrf.mxu1 }
 0x2d6   : > { %v1968_v28 = vpack.c.bf16 %v1887_v24, %v1885_v53  ;;  %v1780_v10 = vadd.f32 %v1779_v30, %v6065_v2  ;;  %v1888_v19 = vmax.f32 %v1778_v42, 0.0 }
 0x2d7   : > { %v1781_v21 = vpop.f32.mrf.mxu1 }
 0x2d8   : > { %v1782_v16 = vadd.f32 %v1781_v21, %v6073_v49  ;;  %2255 = vmatprep.mubr.bf16.mxu0 %v1968_v28  ;;  %v1889_v40 = vmax.f32 %v1780_v10, 0.0 }
 0x2d9   : > { %v1783_v18 = vpop.f32.mrf.mxu1  ;;  %2256 = vmatmul.mubr.bf16.gmra.mxu0 %v1967_v35 }
 0x2da   : > { %v1784_v31 = vadd.f32 %v1783_v18, %v6065_v2  ;;  %v1890_v0 = vmax.f32 %v1782_v16, 0.0 }
 0x2db   : > { %v1787_v32 = vpop.f32.mrf.mxu1 }
 0x2dc   : > { %v1891_v62 = vmax.f32 %v1784_v31, 0.0  ;;  %v1969_v46 = vpack.c.bf16 %v1890_v0, %v1888_v19  ;;  %v1788_v22 = vadd.f32 %v1787_v32, %v6073_v49 }
 0x2dd   : > { %v1789_v20 = vpop.f32.mrf.mxu1 }
 0x2de   : > { %v1970_v43 = vpack.c.bf16 %v1891_v62, %v1889_v40  ;;  %v1790_v24 = vadd.f32 %v1789_v20, %v6065_v2  ;;  %v1892_v42 = vmax.f32 %v1788_v22, 0.0 }
 0x2df   : > { %v1791_v53 = vpop.f32.mrf.mxu1 }
 0x2e0   : > { %v1792_v1 = vadd.f32 %v1791_v53, %v6073_v49  ;;  %2265 = vmatprep.mubr.bf16.mxu0 %v1970_v43  ;;  %v1893_v10 = vmax.f32 %v1790_v24, 0.0  ;;  %v5156_v43 = vld [vmem:[#allocation2 + $0x384] ss:$8 sps:$4 sm:$0xff]   ;;  %v5154_v53 = vld [vmem:[#allocation2 + $0x380] ss:$8 sps:$4 sm:$0xff]  }
 0x2e1   : > { %v1793_v30 = vpop.f32.mrf.mxu1  ;;  %2266 = vmatmul.mubr.bf16.gmra.mxu0 %v1969_v46  ;;  %2673 = vmatprep.subr.bf16.mxu1 %v5156_v43 }
 0x2e2   : > { %v1794_v28 = vadd.f32 %v1793_v30, %v6065_v2  ;;  %v1894_v35 = vmax.f32 %v1792_v1, 0.0  ;;  %2674 = vmatpush2.bf16.msra.mxu1 %v5154_v53 }
 0x2e3   : > { %v1797_v21 = vpop.f32.mrf.mxu1 }
 0x2e4   : > { %v1895_v16 = vmax.f32 %v1794_v28, 0.0  ;;  %v1971_v0 = vpack.c.bf16 %v1894_v35, %v1892_v42  ;;  %v1798_v32 = vadd.f32 %v1797_v21, %v6073_v49 }
 0x2e5   : > { %v1799_v18 = vpop.f32.mrf.mxu1 }
 0x2e6   : > { %v1972_v31 = vpack.c.bf16 %v1895_v16, %v1893_v10  ;;  %v1800_v62 = vadd.f32 %v1799_v18, %v6065_v2  ;;  %v1896_v28 = vmax.f32 %v1798_v32, 0.0 }
 0x2e7   : > { %v1801_v40 = vpop.f32.mrf.mxu1 }
 0x2e8   : > { %v1802_v19 = vadd.f32 %v1801_v40, %v6073_v49  ;;  %2275 = vmatprep.mubr.bf16.mxu0 %v1972_v31  ;;  %v1897_v22 = vmax.f32 %v1800_v62, 0.0 }
 0x2e9   : > { %v1803_v20 = vpop.f32.mrf.mxu1  ;;  %2276 = vmatmul.mubr.bf16.gmra.mxu0 %v1971_v0 }
 0x2ea   : > { %v1804_v46 = vadd.f32 %v1803_v20, %v6065_v2  ;;  %v1898_v24 = vmax.f32 %v1802_v19, 0.0 }
 0x2eb   : > { %v1807_v1 = vpop.f32.mrf.mxu1 }
 0x2ec   : > { %v1899_v30 = vmax.f32 %v1804_v46, 0.0  ;;  %v1973_v16 = vpack.c.bf16 %v1898_v24, %v1896_v28  ;;  %v1808_v31 = vadd.f32 %v1807_v1, %v6073_v49 }
 0x2ed   : > { %v1809_v35 = vpop.f32.mrf.mxu1 }
 0x2ee   : > { %v1974_v10 = vpack.c.bf16 %v1899_v30, %v1897_v22  ;;  %v1810_v18 = vadd.f32 %v1809_v35, %v6065_v2  ;;  %v1900_v32 = vmax.f32 %v1808_v31, 0.0 }
 0x2ef   : > { %v1811_v42 = vpop.f32.mrf.mxu1 }
 0x2f0   : > { %v1812_v21 = vadd.f32 %v1811_v42, %v6073_v49  ;;  %2285 = vmatprep.mubr.bf16.mxu0 %v1974_v10  ;;  %v1901_v20 = vmax.f32 %v1810_v18, 0.0 }
 0x2f1   : > { %v1813_v0 = vpop.f32.mrf.mxu1  ;;  %2286 = vmatmul.mubr.bf16.gmra.mxu0 %v1973_v16 }
 0x2f2   : > { %v1814_v40 = vadd.f32 %v1813_v0, %v6065_v2  ;;  %v1902_v19 = vmax.f32 %v1812_v21, 0.0 }
 0x2f3   : > { %v1817_v62 = vpop.f32.mrf.mxu1 }
 0x2f4   : > { %v1903_v43 = vmax.f32 %v1814_v40, 0.0  ;;  %v1975_v24 = vpack.c.bf16 %v1902_v19, %v1900_v32  ;;  %v1818_v1 = vadd.f32 %v1817_v62, %v6073_v49 }
 0x2f5   : > { %v1819_v46 = vpop.f32.mrf.mxu1 }
 0x2f6   : > { %v1976_v53 = vpack.c.bf16 %v1903_v43, %v1901_v20  ;;  %v1820_v30 = vadd.f32 %v1819_v46, %v6065_v2  ;;  %v1904_v31 = vmax.f32 %v1818_v1, 0.0 }
 0x2f7   : > { %v1821_v22 = vpop.f32.mrf.mxu1 }
 0x2f8   : > { %v1822_v28 = vadd.f32 %v1821_v22, %v6073_v49  ;;  %2295 = vmatprep.mubr.bf16.mxu0 %v1976_v53  ;;  %v1905_v18 = vmax.f32 %v1820_v30, 0.0 }
 0x2f9   : > { %v1823_v35 = vpop.f32.mrf.mxu1  ;;  %2296 = vmatmul.mubr.bf16.gmra.mxu0 %v1975_v24 }
 0x2fa   : > { %v1824_v10 = vadd.f32 %v1823_v35, %v6065_v2  ;;  %v1906_v16 = vmax.f32 %v1822_v28, 0.0 }
 0x2fb   : > { %v1827_v42 = vpop.f32.mrf.mxu1 }
 0x2fc   : > { %v1907_v21 = vmax.f32 %v1824_v10, 0.0  ;;  %v1977_v19 = vpack.c.bf16 %v1906_v16, %v1904_v31  ;;  %v1828_v62 = vadd.f32 %v1827_v42, %v6073_v49 }
 0x2fd   : > { %v1829_v0 = vpop.f32.mrf.mxu1 }
 0x2fe   : > { %v1978_v40 = vpack.c.bf16 %v1907_v21, %v1905_v18  ;;  %v1830_v43 = vadd.f32 %v1829_v0, %v6065_v2  ;;  %v1908_v1 = vmax.f32 %v1828_v62, 0.0 }
 0x2ff   : > { %v1831_v20 = vpop.f32.mrf.mxu1 }
 0x300   : > { %v1832_v32 = vadd.f32 %v1831_v20, %v6073_v49  ;;  %2305 = vmatprep.mubr.bf16.mxu0 %v1978_v40  ;;  %v1909_v30 = vmax.f32 %v1830_v43, 0.0 }
 0x301   : > { %v1833_v46 = vpop.f32.mrf.mxu1  ;;  %2306 = vmatmul.mubr.bf16.gmra.mxu0 %v1977_v19 }
 0x302   : > { %v1834_v53 = vadd.f32 %v1833_v46, %v6065_v2  ;;  %v1910_v24 = vmax.f32 %v1832_v32, 0.0 }
 0x303   : > { %v1837_v22 = vpop.f32.mrf.mxu1 }
 0x304   : > { %v1911_v28 = vmax.f32 %v1834_v53, 0.0  ;;  %v1979_v16 = vpack.c.bf16 %v1910_v24, %v1908_v1  ;;  %v1838_v42 = vadd.f32 %v1837_v22, %v6073_v49 }
 0x305   : > { %v1839_v35 = vpop.f32.mrf.mxu1 }
 0x306   : > { %v1980_v10 = vpack.c.bf16 %v1911_v28, %v1909_v30  ;;  %v1840_v21 = vadd.f32 %v1839_v35, %v6065_v2  ;;  %v1912_v62 = vmax.f32 %v1838_v42, 0.0 }
 0x307   : > { %v1841_v18 = vpop.f32.mrf.mxu1 }
 0x308   : > { %v1842_v31 = vadd.f32 %v1841_v18, %v6073_v49  ;;  %2315 = vmatprep.mubr.bf16.mxu0 %v1980_v10  ;;  %v1913_v43 = vmax.f32 %v1840_v21, 0.0 }
 0x309   : > { %v1843_v0 = vpop.f32.mrf.mxu1  ;;  %2316 = vmatmul.mubr.bf16.gmra.mxu0 %v1979_v16 }
 0x30a   : > { %v1844_v40 = vadd.f32 %v1843_v0, %v6065_v2  ;;  %v1914_v19 = vmax.f32 %v1842_v31, 0.0 }
 0x30b   : > { %v1847_v20 = vpop.f32.mrf.mxu1 }
 0x30c   : > { %v1915_v32 = vmax.f32 %v1844_v40, 0.0  ;;  %v1981_v24 = vpack.c.bf16 %v1914_v19, %v1912_v62  ;;  %v1848_v22 = vadd.f32 %v1847_v20, %v6073_v49  ;;  %v5157_v40 = vld [vmem:[#allocation2 + $0x470] ss:$8 sps:$4 sm:$0xff]   ;;  %v5159_v19 = vld [vmem:[#allocation2 + $0x474] ss:$8 sps:$4 sm:$0xff]  }
 0x30d   : > { %v1849_v46 = vpop.f32.mrf.mxu1  ;;  %3125 = vmatprep.subr.bf16.mxu0 %v5159_v19  ;;  %v5165_v20 = vld [vmem:[#allocation2 + $0x454] ss:$8 sps:$4 sm:$0xff]   ;;  %v5168_v62 = vld [vmem:[#allocation2 + $0x444] ss:$8 sps:$4 sm:$0xff]  }
 0x30e   : > { %v1982_v53 = vpack.c.bf16 %v1915_v32, %v1913_v43  ;;  %v1850_v28 = vadd.f32 %v1849_v46, %v6065_v2  ;;  %v1916_v31 = vmax.f32 %v1848_v22, 0.0  ;;  %3126 = vmatpush1.bf16.msra.mxu0 %v5157_v40  ;;  %v5160_v43 = vld [vmem:[#allocation2 + $0x460] ss:$8 sps:$4 sm:$0xff]   ;;  %v5162_v32 = vld [vmem:[#allocation2 + $0x464] ss:$8 sps:$4 sm:$0xff]  }
 0x30f   : > { %v1851_v30 = vpop.f32.mrf.mxu1  ;;  %3127 = vmatprep.subr.bf16.mxu0 %v5162_v32  ;;  %v5169_v46 = vld [vmem:[#allocation2 + $0x430] ss:$8 sps:$4 sm:$0xff]   ;;  %v5174_v22 = vld [vmem:[#allocation2 + $0x424] ss:$8 sps:$4 sm:$0xff]   ;;  %v5177_v40 = vld [vmem:[#allocation2 + $0x414] ss:$8 sps:$4 sm:$0xff]  }
 0x310   : > { %v1852_v1 = vadd.f32 %v1851_v30, %v6073_v49  ;;  %2325 = vmatprep.mubr.bf16.mxu0 %v1982_v53  ;;  %v1917_v18 = vmax.f32 %v1850_v28, 0.0  ;;  %v5163_v49 = vld [vmem:[#allocation2 + $0x450] ss:$8 sps:$4 sm:$0xff]   ;;  %v5171_v53 = vld [vmem:[#allocation2 + $0x434] ss:$8 sps:$4 sm:$0xff]  }
 0x311   : > { %v1853_v35 = vpop.f32.mrf.mxu1  ;;  %2326 = vmatmul.mubr.bf16.gmra.mxu0 %v1981_v24  ;;  %v1987_v24 = vsub.s32 3, %v5687_v51  ;;  %v5180_v19 = vld [vmem:[#allocation2 + $0x404] ss:$8 sps:$4 sm:$0xff]  }
 0x312   : > { %v1854_v10 = vadd.f32 %v1853_v35, %v6065_v2  ;;  %v1918_v16 = vmax.f32 %v1852_v1, 0.0  ;;  %3128 = vmatpush1.bf16.msra.mxu0 %v5160_v43  ;;  %v5166_v2 = vld [vmem:[#allocation2 + $0x440] ss:$8 sps:$4 sm:$0xff]  }
 0x313   : > { %3129 = vmatprep.subr.bf16.mxu0 %v5165_v20  ;;  %v6141_v28 = vrot.slane %v6062_v25, %v1987_v24  ;;  %v5172_v1 = vld [vmem:[#allocation2 + $0x420] ss:$8 sps:$4 sm:$0xff]   ;;  %v6144_v35 = vrot.slane %v6070_v38, %v1987_v24 }
 0x314   : > { %v1919_v21 = vmax.f32 %v1854_v10, 0.0  ;;  %v1983_v0 = vpack.c.bf16 %v1918_v16, %v1916_v31  ;;  %v5178_v20 = vld [vmem:[#allocation2 + $0x400] ss:$8 sps:$4 sm:$0xff]  }
 0x316   : > { %v1984_v42 = vpack.c.bf16 %v1919_v21, %v1917_v18  ;;  %3130 = vmatpush1.bf16.msra.mxu0 %v5163_v49 }
 0x317   : > { %3131 = vmatprep.subr.bf16.mxu0 %v5168_v62 }
 0x318   : > { %2335 = vmatprep.mubr.bf16.mxu0 %v1984_v42 }
 0x319   : > { %2336 = vmatmul.mubr.bf16.gmra.mxu0 %v1983_v0  ;;  %v5175_v0 = vld [vmem:[#allocation2 + $0x410] ss:$8 sps:$4 sm:$0xff]  }
 0x31a   : > { %3132 = vmatpush1.bf16.msra.mxu0 %v5166_v2 }
 0x31b   : > { %3133 = vmatprep.subr.bf16.mxu0 %v5171_v53 }
 0x31e   : > { %3134 = vmatpush1.bf16.msra.mxu0 %v5169_v46  ;;  %v5183_v46 = vld [vmem:[#allocation2 + $0x4f4] ss:$8 sps:$4 sm:$0xff]  }
 0x31f   : > { %3135 = vmatprep.subr.bf16.mxu0 %v5174_v22 }
 0x322   : > { %3136 = vmatpush1.bf16.msra.mxu0 %v5172_v1 }
 0x323   : > { %3137 = vmatprep.subr.bf16.mxu0 %v5177_v40 }
 0x326   : > { %3138 = vmatpush1.bf16.msra.mxu0 %v5175_v0 }
 0x327   : > { %3139 = vmatprep.subr.bf16.mxu0 %v5180_v19  ;;  %v5184_v19 = vld [vmem:[#allocation2 + $0x4e0] ss:$8 sps:$4 sm:$0xff]  }
 0x32a   : > { %3140 = vmatpush1.bf16.msra.mxu0 %v5178_v20 }
 0x32b   : > { %3141 = vmatprep.subr.bf16.mxu0 %v5183_v46 }
 0x361   : > { %v2187_v30 = vpop.f32.mrf.mxu0 }
 0x362   : > { %v2188_v31 = vadd.f32 %v2187_v30, %v6144_v35 }
 0x363   : > { %v2189_v10 = vpop.f32.mrf.mxu0 }
 0x364   : > { %v2190_v18 = vadd.f32 %v2189_v10, %v6141_v28  ;;  %v2346_v2 = vmax.f32 %v2188_v31, 0.0  ;;  %v5181_v10 = vld [vmem:[#allocation2 + $0x4f0] ss:$8 sps:$4 sm:$0xff]  }
 0x365   : > { %v2191_v16 = vpop.f32.mrf.mxu0  ;;  %3142 = vmatpush2.bf16.msra.mxu0 %v5181_v10 }
 0x366   : > { %v2192_v21 = vadd.f32 %v2191_v16, %v6144_v35  ;;  %v2347_v38 = vmax.f32 %v2190_v18, 0.0 }
 0x367   : > { %v2193_v42 = vpop.f32.mrf.mxu0 }
 0x368   : > { %v2194_v25 = vadd.f32 %v2193_v42, %v6141_v28  ;;  %v2348_v43 = vmax.f32 %v2192_v21, 0.0  ;;  %v5186_v21 = vld [vmem:[#allocation2 + $0x4e4] ss:$8 sps:$4 sm:$0xff]  }
 0x369   : > { %v2197_v32 = vpop.f32.mrf.mxu0  ;;  %3143 = vmatprep.subr.bf16.mxu0 %v5186_v21 }
 0x36a   : > { %v2349_v49 = vmax.f32 %v2194_v25, 0.0  ;;  %v2443_v24 = vpack.c.bf16 %v2348_v43, %v2346_v2  ;;  %v2198_v16 = vadd.f32 %v2197_v32, %v6144_v35  ;;  %3144 = vmatpush2.bf16.msra.mxu0 %v5184_v19 }
 0x36b   : > { %v2199_v62 = vpop.f32.mrf.mxu0 }
 0x36c   : > { %v2444_v53 = vpack.c.bf16 %v2349_v49, %v2347_v38  ;;  %v2200_v1 = vadd.f32 %v2199_v62, %v6141_v28  ;;  %v2350_v43 = vmax.f32 %v2198_v16, 0.0  ;;  %v5189_v49 = vld [vmem:[#allocation2 + $0x4d4] ss:$8 sps:$4 sm:$0xff]  }
 0x36d   : > { %v2201_v30 = vpop.f32.mrf.mxu0  ;;  %3145 = vmatprep.subr.bf16.mxu0 %v5189_v49 }
 0x36e   : > { %v2202_v22 = vadd.f32 %v2201_v30, %v6144_v35  ;;  %2675 = vmatprep.mubr.bf16.mxu1 %v2444_v53  ;;  %v2351_v40 = vmax.f32 %v2200_v1, 0.0  ;;  %v5187_v53 = vld [vmem:[#allocation2 + $0x4d0] ss:$8 sps:$4 sm:$0xff]   ;;  %v5192_v1 = vld [vmem:[#allocation2 + $0x4c4] ss:$8 sps:$4 sm:$0xff]  }
 0x36f   : > { %v2203_v18 = vpop.f32.mrf.mxu0  ;;  %2676 = vmatmul.mubr.bf16.vlgmr.msra.gmra.mxu1 %v2443_v24  ;;  %3146 = vmatpush2.bf16.msra.mxu0 %v5187_v53 }
 0x370   : > { %v2204_v31 = vadd.f32 %v2203_v18, %v6141_v28  ;;  %v2352_v42 = vmax.f32 %v2202_v22, 0.0  ;;  %3147 = vmatprep.subr.bf16.mxu0 %v5192_v1 }
 0x371   : > { %v2207_v0 = vpop.f32.mrf.mxu0 }
 0x372   : > { %v2353_v25 = vmax.f32 %v2204_v31, 0.0  ;;  %v2445_v2 = vpack.c.bf16 %v2352_v42, %v2350_v43  ;;  %v2208_v24 = vadd.f32 %v2207_v0, %v6144_v35  ;;  %v5190_v31 = vld [vmem:[#allocation2 + $0x4c0] ss:$8 sps:$4 sm:$0xff]  }
 0x373   : > { %v2209_v38 = vpop.f32.mrf.mxu0  ;;  %3148 = vmatpush2.bf16.msra.mxu0 %v5190_v31 }
 0x374   : > { %v2446_v20 = vpack.c.bf16 %v2353_v25, %v2351_v40  ;;  %v2210_v32 = vadd.f32 %v2209_v38, %v6141_v28  ;;  %v2354_v42 = vmax.f32 %v2208_v24, 0.0  ;;  %v5195_v25 = vld [vmem:[#allocation2 + $0x4b4] ss:$8 sps:$4 sm:$0xff]  }
 0x375   : > { %v2211_v62 = vpop.f32.mrf.mxu0  ;;  %3149 = vmatprep.subr.bf16.mxu0 %v5195_v25 }
 0x376   : > { %v2212_v46 = vadd.f32 %v2211_v62, %v6144_v35  ;;  %2685 = vmatprep.mubr.bf16.mxu1 %v2446_v20  ;;  %v2355_v18 = vmax.f32 %v2210_v32, 0.0  ;;  %v5193_v20 = vld [vmem:[#allocation2 + $0x4b0] ss:$8 sps:$4 sm:$0xff]   ;;  %v5198_v32 = vld [vmem:[#allocation2 + $0x4a4] ss:$8 sps:$4 sm:$0xff]  }
 0x377   : > { %v2213_v30 = vpop.f32.mrf.mxu0  ;;  %2686 = vmatmul.mubr.bf16.gmra.mxu1 %v2445_v2  ;;  %3150 = vmatpush2.bf16.msra.mxu0 %v5193_v20 }
 0x378   : > { %v2214_v22 = vadd.f32 %v2213_v30, %v6141_v28  ;;  %v2356_v10 = vmax.f32 %v2212_v46, 0.0  ;;  %3151 = vmatprep.subr.bf16.mxu0 %v5198_v32 }
 0x379   : > { %v2217_v16 = vpop.f32.mrf.mxu0 }
 0x37a   : > { %v2357_v21 = vmax.f32 %v2214_v22, 0.0  ;;  %v2447_v43 = vpack.c.bf16 %v2356_v10, %v2354_v42  ;;  %v2218_v2 = vadd.f32 %v2217_v16, %v6144_v35  ;;  %v5196_v22 = vld [vmem:[#allocation2 + $0x4a0] ss:$8 sps:$4 sm:$0xff]  }
 0x37b   : > { %v2219_v40 = vpop.f32.mrf.mxu0  ;;  %3152 = vmatpush2.bf16.msra.mxu0 %v5196_v22 }
 0x37c   : > { %v2448_v19 = vpack.c.bf16 %v2357_v21, %v2355_v18  ;;  %v2220_v0 = vadd.f32 %v2219_v40, %v6141_v28  ;;  %v2358_v10 = vmax.f32 %v2218_v2, 0.0  ;;  %v5201_v21 = vld [vmem:[#allocation2 + $0x494] ss:$8 sps:$4 sm:$0xff]  }
 0x37d   : > { %v2221_v38 = vpop.f32.mrf.mxu0  ;;  %3153 = vmatprep.subr.bf16.mxu0 %v5201_v21 }
 0x37e   : > { %v2222_v49 = vadd.f32 %v2221_v38, %v6144_v35  ;;  %2695 = vmatprep.mubr.bf16.mxu1 %v2448_v19  ;;  %v2359_v30 = vmax.f32 %v2220_v0, 0.0  ;;  %v5199_v19 = vld [vmem:[#allocation2 + $0x490] ss:$8 sps:$4 sm:$0xff]  }
 0x37f   : > { %v2223_v62 = vpop.f32.mrf.mxu0  ;;  %2696 = vmatmul.mubr.bf16.gmra.mxu1 %v2447_v43  ;;  %3154 = vmatpush2.bf16.msra.mxu0 %v5199_v19 }
 0x380   : > { %v2224_v46 = vadd.f32 %v2223_v62, %v6141_v28  ;;  %v2360_v53 = vmax.f32 %v2222_v49, 0.0 }
 0x381   : > { %v2227_v24 = vpop.f32.mrf.mxu0 }
 0x382   : > { %v2361_v1 = vmax.f32 %v2224_v46, 0.0  ;;  %v2449_v42 = vpack.c.bf16 %v2360_v53, %v2358_v10  ;;  %v2228_v43 = vadd.f32 %v2227_v24, %v6144_v35 }
 0x383   : > { %v2229_v18 = vpop.f32.mrf.mxu0 }
 0x384   : > { %v2450_v31 = vpack.c.bf16 %v2361_v1, %v2359_v30  ;;  %v2230_v16 = vadd.f32 %v2229_v18, %v6141_v28  ;;  %v2362_v32 = vmax.f32 %v2228_v43, 0.0 }
 0x385   : > { %v2231_v40 = vpop.f32.mrf.mxu0 }
 0x386   : > { %v2232_v25 = vadd.f32 %v2231_v40, %v6144_v35  ;;  %2705 = vmatprep.mubr.bf16.mxu1 %v2450_v31  ;;  %v2363_v2 = vmax.f32 %v2230_v16, 0.0 }
 0x387   : > { %v2233_v38 = vpop.f32.mrf.mxu0  ;;  %2706 = vmatmul.mubr.bf16.gmra.mxu1 %v2449_v42 }
 0x388   : > { %v2234_v0 = vadd.f32 %v2233_v38, %v6141_v28  ;;  %v2364_v49 = vmax.f32 %v2232_v25, 0.0 }
 0x389   : > { %v2237_v20 = vpop.f32.mrf.mxu0 }
 0x38a   : > { %v2365_v62 = vmax.f32 %v2234_v0, 0.0  ;;  %v2451_v30 = vpack.c.bf16 %v2364_v49, %v2362_v32  ;;  %v2238_v24 = vadd.f32 %v2237_v20, %v6144_v35 }
 0x38b   : > { %v2239_v46 = vpop.f32.mrf.mxu0 }
 0x38c   : > { %v2452_v53 = vpack.c.bf16 %v2365_v62, %v2363_v2  ;;  %v2240_v22 = vadd.f32 %v2239_v46, %v6141_v28  ;;  %v2366_v25 = vmax.f32 %v2238_v24, 0.0 }
 0x38d   : > { %v2241_v1 = vpop.f32.mrf.mxu0 }
 0x38e   : > { %v2242_v10 = vadd.f32 %v2241_v1, %v6144_v35  ;;  %2715 = vmatprep.mubr.bf16.mxu1 %v2452_v53  ;;  %v2367_v40 = vmax.f32 %v2240_v22, 0.0 }
 0x38f   : > { %v2243_v18 = vpop.f32.mrf.mxu0  ;;  %2716 = vmatmul.mubr.bf16.gmra.mxu1 %v2451_v30 }
 0x390   : > { %v2244_v21 = vadd.f32 %v2243_v18, %v6141_v28  ;;  %v2368_v31 = vmax.f32 %v2242_v10, 0.0 }
 0x391   : > { %v2247_v42 = vpop.f32.mrf.mxu0 }
 0x392   : > { %v2369_v16 = vmax.f32 %v2244_v21, 0.0  ;;  %v2453_v38 = vpack.c.bf16 %v2368_v31, %v2366_v25  ;;  %v2248_v20 = vadd.f32 %v2247_v42, %v6144_v35 }
 0x393   : > { %v2249_v19 = vpop.f32.mrf.mxu0 }
 0x394   : > { %v2454_v43 = vpack.c.bf16 %v2369_v16, %v2367_v40  ;;  %v2250_v49 = vadd.f32 %v2249_v19, %v6141_v28  ;;  %v2370_v22 = vmax.f32 %v2248_v20, 0.0 }
 0x395   : > { %v2251_v0 = vpop.f32.mrf.mxu0 }
 0x396   : > { %v2252_v2 = vadd.f32 %v2251_v0, %v6144_v35  ;;  %2725 = vmatprep.mubr.bf16.mxu1 %v2454_v43  ;;  %v2371_v30 = vmax.f32 %v2250_v49, 0.0 }
 0x397   : > { %v2253_v62 = vpop.f32.mrf.mxu0  ;;  %2726 = vmatmul.mubr.bf16.gmra.mxu1 %v2453_v38 }
 0x398   : > { %v2254_v32 = vadd.f32 %v2253_v62, %v6141_v28  ;;  %v2372_v46 = vmax.f32 %v2252_v2, 0.0 }
 0x399   : > { %v2257_v53 = vpop.f32.mrf.mxu0 }
 0x39a   : > { %v2373_v1 = vmax.f32 %v2254_v32, 0.0  ;;  %v2455_v18 = vpack.c.bf16 %v2372_v46, %v2370_v22  ;;  %v2258_v42 = vadd.f32 %v2257_v53, %v6144_v35 }
 0x39b   : > { %v2259_v10 = vpop.f32.mrf.mxu0 }
 0x39c   : > { %v2456_v24 = vpack.c.bf16 %v2373_v1, %v2371_v30  ;;  %v2260_v31 = vadd.f32 %v2259_v10, %v6141_v28  ;;  %v2374_v49 = vmax.f32 %v2258_v42, 0.0 }
 0x39d   : > { %v2261_v21 = vpop.f32.mrf.mxu0 }
 0x39e   : > { %v2262_v40 = vadd.f32 %v2261_v21, %v6144_v35  ;;  %2735 = vmatprep.mubr.bf16.mxu1 %v2456_v24  ;;  %v2375_v38 = vmax.f32 %v2260_v31, 0.0 }
 0x39f   : > { %v2263_v16 = vpop.f32.mrf.mxu0  ;;  %2736 = vmatmul.mubr.bf16.gmra.mxu1 %v2455_v18 }
 0x3a0   : > { %v2264_v25 = vadd.f32 %v2263_v16, %v6141_v28  ;;  %v2376_v19 = vmax.f32 %v2262_v40, 0.0 }
 0x3a1   : > { %v2267_v43 = vpop.f32.mrf.mxu0 }
 0x3a2   : > { %v2377_v0 = vmax.f32 %v2264_v25, 0.0  ;;  %v2457_v62 = vpack.c.bf16 %v2376_v19, %v2374_v49  ;;  %v2268_v53 = vadd.f32 %v2267_v43, %v6144_v35 }
 0x3a3   : > { %v2269_v2 = vpop.f32.mrf.mxu0 }
 0x3a4   : > { %v2458_v20 = vpack.c.bf16 %v2377_v0, %v2375_v38  ;;  %v2270_v46 = vadd.f32 %v2269_v2, %v6141_v28  ;;  %v2378_v31 = vmax.f32 %v2268_v53, 0.0 }
 0x3a5   : > { %v2271_v32 = vpop.f32.mrf.mxu0 }
 0x3a6   : > { %v2272_v30 = vadd.f32 %v2271_v32, %v6144_v35  ;;  %2745 = vmatprep.mubr.bf16.mxu1 %v2458_v20  ;;  %v2379_v18 = vmax.f32 %v2270_v46, 0.0 }
 0x3a7   : > { %v2273_v1 = vpop.f32.mrf.mxu0  ;;  %2746 = vmatmul.mubr.bf16.gmra.mxu1 %v2457_v62 }
 0x3a8   : > { %v2274_v22 = vadd.f32 %v2273_v1, %v6141_v28  ;;  %v2380_v10 = vmax.f32 %v2272_v30, 0.0 }
 0x3a9   : > { %v2277_v24 = vpop.f32.mrf.mxu0 }
 0x3aa   : > { %v2381_v21 = vmax.f32 %v2274_v22, 0.0  ;;  %v2459_v16 = vpack.c.bf16 %v2380_v10, %v2378_v31  ;;  %v2278_v43 = vadd.f32 %v2277_v24, %v6144_v35  ;;  %v5204_v31 = vld [vmem:[#allocation2 + $0x484] ss:$8 sps:$4 sm:$0xff]  }
 0x3ab   : > { %v2279_v40 = vpop.f32.mrf.mxu0  ;;  %3155 = vmatprep.subr.bf16.mxu0 %v5204_v31 }
 0x3ac   : > { %v2460_v42 = vpack.c.bf16 %v2381_v21, %v2379_v18  ;;  %v2280_v19 = vadd.f32 %v2279_v40, %v6141_v28  ;;  %v2382_v46 = vmax.f32 %v2278_v43, 0.0 }
 0x3ad   : > { %v2281_v25 = vpop.f32.mrf.mxu0 }
 0x3ae   : > { %v2282_v38 = vadd.f32 %v2281_v25, %v6144_v35  ;;  %2755 = vmatprep.mubr.bf16.mxu1 %v2460_v42  ;;  %v2383_v62 = vmax.f32 %v2280_v19, 0.0  ;;  %v5202_v42 = vld [vmem:[#allocation2 + $0x480] ss:$8 sps:$4 sm:$0xff]  }
 0x3af   : > { %v2283_v0 = vpop.f32.mrf.mxu0  ;;  %2756 = vmatmul.mubr.bf16.gmra.mxu1 %v2459_v16  ;;  %3156 = vmatpush2.bf16.msra.mxu0 %v5202_v42 }
 0x3b0   : > { %v2284_v49 = vadd.f32 %v2283_v0, %v6141_v28  ;;  %v2384_v2 = vmax.f32 %v2282_v38, 0.0 }
 0x3b1   : > { %v2287_v20 = vpop.f32.mrf.mxu0 }
 0x3b2   : > { %v2385_v32 = vmax.f32 %v2284_v49, 0.0  ;;  %v2461_v1 = vpack.c.bf16 %v2384_v2, %v2382_v46  ;;  %v2288_v24 = vadd.f32 %v2287_v20, %v6144_v35 }
 0x3b3   : > { %v2289_v30 = vpop.f32.mrf.mxu0 }
 0x3b4   : > { %v2462_v53 = vpack.c.bf16 %v2385_v32, %v2383_v62  ;;  %v2290_v10 = vadd.f32 %v2289_v30, %v6141_v28  ;;  %v2386_v43 = vmax.f32 %v2288_v24, 0.0 }
 0x3b5   : > { %v2291_v22 = vpop.f32.mrf.mxu0 }
 0x3b6   : > { %v2292_v18 = vadd.f32 %v2291_v22, %v6144_v35  ;;  %2765 = vmatprep.mubr.bf16.mxu1 %v2462_v53  ;;  %v2387_v19 = vmax.f32 %v2290_v10, 0.0 }
 0x3b7   : > { %v2293_v21 = vpop.f32.mrf.mxu0  ;;  %2766 = vmatmul.mubr.bf16.gmra.mxu1 %v2461_v1 }
 0x3b8   : > { %v2294_v40 = vadd.f32 %v2293_v21, %v6141_v28  ;;  %v2388_v16 = vmax.f32 %v2292_v18, 0.0 }
 0x3b9   : > { %v2297_v25 = vpop.f32.mrf.mxu0 }
 0x3ba   : > { %v2389_v38 = vmax.f32 %v2294_v40, 0.0  ;;  %v2463_v2 = vpack.c.bf16 %v2388_v16, %v2386_v43  ;;  %v2298_v46 = vadd.f32 %v2297_v25, %v6144_v35 }
 0x3bb   : > { %v2299_v0 = vpop.f32.mrf.mxu0 }
 0x3bc   : > { %v2464_v49 = vpack.c.bf16 %v2389_v38, %v2387_v19  ;;  %v2300_v32 = vadd.f32 %v2299_v0, %v6141_v28  ;;  %v2390_v24 = vmax.f32 %v2298_v46, 0.0 }
 0x3bd   : > { %v2301_v62 = vpop.f32.mrf.mxu0 }
 0x3be   : > { %v2302_v20 = vadd.f32 %v2301_v62, %v6144_v35  ;;  %2775 = vmatprep.mubr.bf16.mxu1 %v2464_v49  ;;  %v2391_v10 = vmax.f32 %v2300_v32, 0.0 }
 0x3bf   : > { %v2303_v30 = vpop.f32.mrf.mxu0  ;;  %2776 = vmatmul.mubr.bf16.gmra.mxu1 %v2463_v2 }
 0x3c0   : > { %v2304_v53 = vadd.f32 %v2303_v30, %v6141_v28  ;;  %v2392_v1 = vmax.f32 %v2302_v20, 0.0 }
 0x3c1   : > { %v2307_v22 = vpop.f32.mrf.mxu0 }
 0x3c2   : > { %v2393_v18 = vmax.f32 %v2304_v53, 0.0  ;;  %v2465_v40 = vpack.c.bf16 %v2392_v1, %v2390_v24  ;;  %v2308_v25 = vadd.f32 %v2307_v22, %v6144_v35 }
 0x3c3   : > { %v2309_v21 = vpop.f32.mrf.mxu0 }
 0x3c4   : > { %v2466_v31 = vpack.c.bf16 %v2393_v18, %v2391_v10  ;;  %v2310_v16 = vadd.f32 %v2309_v21, %v6141_v28  ;;  %v2394_v32 = vmax.f32 %v2308_v25, 0.0 }
 0x3c5   : > { %v2311_v42 = vpop.f32.mrf.mxu0 }
 0x3c6   : > { %v2312_v19 = vadd.f32 %v2311_v42, %v6144_v35  ;;  %2785 = vmatprep.mubr.bf16.mxu1 %v2466_v31  ;;  %v2395_v2 = vmax.f32 %v2310_v16, 0.0 }
 0x3c7   : > { %v2313_v38 = vpop.f32.mrf.mxu0  ;;  %2786 = vmatmul.mubr.bf16.gmra.mxu1 %v2465_v40 }
 0x3c8   : > { %v2314_v43 = vadd.f32 %v2313_v38, %v6141_v28  ;;  %v2396_v0 = vmax.f32 %v2312_v19, 0.0 }
 0x3c9   : > { %v2317_v49 = vpop.f32.mrf.mxu0 }
 0x3ca   : > { %v2397_v62 = vmax.f32 %v2314_v43, 0.0  ;;  %v2467_v30 = vpack.c.bf16 %v2396_v0, %v2394_v32  ;;  %v2318_v22 = vadd.f32 %v2317_v49, %v6144_v35 }
 0x3cb   : > { %v2319_v20 = vpop.f32.mrf.mxu0 }
 0x3cc   : > { %v2468_v46 = vpack.c.bf16 %v2397_v62, %v2395_v2  ;;  %v2320_v1 = vadd.f32 %v2319_v20, %v6141_v28  ;;  %v2398_v16 = vmax.f32 %v2318_v22, 0.0 }
 0x3cd   : > { %v2321_v53 = vpop.f32.mrf.mxu0 }
 0x3ce   : > { %v2322_v10 = vadd.f32 %v2321_v53, %v6144_v35  ;;  %2795 = vmatprep.mubr.bf16.mxu1 %v2468_v46  ;;  %v2399_v40 = vmax.f32 %v2320_v1, 0.0 }
 0x3cf   : > { %v2323_v18 = vpop.f32.mrf.mxu0  ;;  %2796 = vmatmul.mubr.bf16.gmra.mxu1 %v2467_v30 }
 0x3d0   : > { %v2324_v24 = vadd.f32 %v2323_v18, %v6141_v28  ;;  %v2400_v21 = vmax.f32 %v2322_v10, 0.0 }
 0x3d1   : > { %v2327_v31 = vpop.f32.mrf.mxu0 }
 0x3d2   : > { %v2401_v42 = vmax.f32 %v2324_v24, 0.0  ;;  %v2469_v38 = vpack.c.bf16 %v2400_v21, %v2398_v16  ;;  %v2328_v49 = vadd.f32 %v2327_v31, %v6144_v35 }
 0x3d3   : > { %v2329_v19 = vpop.f32.mrf.mxu0 }
 0x3d4   : > { %v2470_v25 = vpack.c.bf16 %v2401_v42, %v2399_v40  ;;  %v2330_v0 = vadd.f32 %v2329_v19, %v6141_v28  ;;  %v2402_v1 = vmax.f32 %v2328_v49, 0.0  ;;  %v5205_v49 = vld [vmem:[#allocation2 + $0x570] ss:$8 sps:$4 sm:$0xff]  }
 0x3d5   : > { %v2331_v43 = vpop.f32.mrf.mxu0 }
 0x3d6   : > { %v2332_v2 = vadd.f32 %v2331_v43, %v6144_v35  ;;  %2805 = vmatprep.mubr.bf16.mxu1 %v2470_v25  ;;  %v2403_v30 = vmax.f32 %v2330_v0, 0.0 }
 0x3d7   : > { %v2333_v62 = vpop.f32.mrf.mxu0  ;;  %2806 = vmatmul.mubr.bf16.gmra.mxu1 %v2469_v38 }
 0x3d8   : > { %v2334_v32 = vadd.f32 %v2333_v62, %v6141_v28  ;;  %v2404_v20 = vmax.f32 %v2332_v2, 0.0  ;;  %v5207_v62 = vld [vmem:[#allocation2 + $0x574] ss:$8 sps:$4 sm:$0xff]  }
 0x3d9   : > { %v2337_v46 = vpop.f32.mrf.mxu0  ;;  %3687 = vmatprep.subr.bf16.mxu1 %v5207_v62 }
 0x3da   : > { %v2405_v53 = vmax.f32 %v2334_v32, 0.0  ;;  %v2471_v18 = vpack.c.bf16 %v2404_v20, %v2402_v1  ;;  %v2338_v31 = vadd.f32 %v2337_v46, %v6144_v35  ;;  %3688 = vmatpush1.bf16.msra.mxu1 %v5205_v49  ;;  %v5208_v32 = vld [vmem:[#allocation2 + $0x560] ss:$8 sps:$4 sm:$0xff]   ;;  %v5210_v20 = vld [vmem:[#allocation2 + $0x564] ss:$8 sps:$4 sm:$0xff]  }
 0x3db   : > { %v2339_v10 = vpop.f32.mrf.mxu0  ;;  %3689 = vmatprep.subr.bf16.mxu1 %v5210_v20  ;;  %v5213_v46 = vld [vmem:[#allocation2 + $0x554] ss:$8 sps:$4 sm:$0xff]   ;;  %v5223_v20 = vld [vmem:[#allocation2 + $0x510] ss:$8 sps:$4 sm:$0xff]  }
 0x3dc   : > { %v2472_v22 = vpack.c.bf16 %v2405_v53, %v2403_v30  ;;  %v2340_v21 = vadd.f32 %v2339_v10, %v6141_v28  ;;  %v2406_v43 = vmax.f32 %v2338_v31, 0.0  ;;  %v5216_v30 = vld [vmem:[#allocation2 + $0x544] ss:$8 sps:$4 sm:$0xff]   ;;  %v2477_v53 = vsub.s32 4, %v5687_v51 }
 0x3dd   : > { %v2341_v24 = vpop.f32.mrf.mxu0  ;;  %v6214_v10 = vld [vmem:[%s6701_s3 + $0x8] sm:$0xff] }
 0x3de   : > { %v2342_v40 = vadd.f32 %v2341_v24, %v6144_v35  ;;  %2815 = vmatprep.mubr.bf16.mxu1 %v2472_v22  ;;  %v2407_v25 = vmax.f32 %v2340_v21, 0.0  ;;  %3690 = vmatpush1.bf16.msra.mxu1 %v5208_v32  ;;  %v5211_v35 = vld [vmem:[#allocation2 + $0x550] ss:$8 sps:$4 sm:$0xff]   ;;  %v6217_v22 = vrot.slane %v6214_v10, %v2477_v53  ;;  %v5219_v24 = vld [vmem:[#allocation2 + $0x534] ss:$8 sps:$4 sm:$0xff]   ;;  %v6222_v21 = vld [vmem:[%s6701_s3] sm:$0xff] }
 0x3df   : > { %v2343_v42 = vpop.f32.mrf.mxu0  ;;  %2816 = vmatmul.mubr.bf16.gmra.mxu1 %v2471_v18  ;;  %3691 = vmatprep.subr.bf16.mxu1 %v5213_v46  ;;  %v5217_v18 = vld [vmem:[#allocation2 + $0x530] ss:$8 sps:$4 sm:$0xff]  }
 0x3e0   : > { %v2344_v16 = vadd.f32 %v2343_v42, %v6141_v28  ;;  %v2408_v19 = vmax.f32 %v2342_v40, 0.0  ;;  %v5214_v28 = vld [vmem:[#allocation2 + $0x540] ss:$8 sps:$4 sm:$0xff]   ;;  %v6225_v40 = vrot.slane %v6222_v21, %v2477_v53 }
 0x3e2   : > { %v2409_v38 = vmax.f32 %v2344_v16, 0.0  ;;  %v2473_v2 = vpack.c.bf16 %v2408_v19, %v2406_v43  ;;  %3692 = vmatpush1.bf16.msra.mxu1 %v5211_v35 }
 0x3e3   : > { %3693 = vmatprep.subr.bf16.mxu1 %v5216_v30 }
 0x3e4   : > { %v2474_v0 = vpack.c.bf16 %v2409_v38, %v2407_v25  ;;  %v5220_v25 = vld [vmem:[#allocation2 + $0x520] ss:$8 sps:$4 sm:$0xff]   ;;  %v5222_v38 = vld [vmem:[#allocation2 + $0x524] ss:$8 sps:$4 sm:$0xff]  }
 0x3e6   : > { %2825 = vmatprep.mubr.bf16.mxu1 %v2474_v0  ;;  %3694 = vmatpush1.bf16.msra.mxu1 %v5214_v28  ;;  %v5228_v28 = vld [vmem:[#allocation2 + $0x504] ss:$8 sps:$4 sm:$0xff]  }
 0x3e7   : > { %2826 = vmatmul.mubr.bf16.gmra.mxu1 %v2473_v2  ;;  %3695 = vmatprep.subr.bf16.mxu1 %v5219_v24  ;;  %v5225_v2 = vld [vmem:[#allocation2 + $0x514] ss:$8 sps:$4 sm:$0xff]  }
 0x3ea   : > { %3696 = vmatpush1.bf16.msra.mxu1 %v5217_v18 }
 0x3eb   : > { %3697 = vmatprep.subr.bf16.mxu1 %v5222_v38 }
 0x3ee   : > { %3698 = vmatpush1.bf16.msra.mxu1 %v5220_v25 }
 0x3ef   : > { %3699 = vmatprep.subr.bf16.mxu1 %v5225_v2 }
 0x3f2   : > { %3700 = vmatpush1.bf16.msra.mxu1 %v5223_v20 }
 0x3f3   : > { %3701 = vmatprep.subr.bf16.mxu1 %v5228_v28 }
 0x42f   : > { %v2677_v1 = vpop.f32.mrf.mxu1 }
 0x430   : > { %v2678_v43 = vadd.f32 %v2677_v1, %v6225_v40  ;;  %v5226_v1 = vld [vmem:[#allocation2 + $0x500] ss:$8 sps:$4 sm:$0xff]  }
 0x431   : > { %v2679_v31 = vpop.f32.mrf.mxu1  ;;  %3702 = vmatpush1.bf16.msra.mxu1 %v5226_v1 }
 0x432   : > { %v2680_v16 = vadd.f32 %v2679_v31, %v6217_v22  ;;  %v2836_v30 = vmax.f32 %v2678_v43, 0.0 }
 0x433   : > { %v2681_v42 = vpop.f32.mrf.mxu1 }
 0x434   : > { %v2682_v19 = vadd.f32 %v2681_v42, %v6225_v40  ;;  %v2837_v35 = vmax.f32 %v2680_v16, 0.0 }
 0x435   : > { %v2683_v0 = vpop.f32.mrf.mxu1 }
 0x436   : > { %v2684_v49 = vadd.f32 %v2683_v0, %v6217_v22  ;;  %v2838_v62 = vmax.f32 %v2682_v19, 0.0  ;;  %v5231_v19 = vld [vmem:[#allocation2 + $0x5f4] ss:$8 sps:$4 sm:$0xff]  }
 0x437   : > { %v2687_v32 = vpop.f32.mrf.mxu1  ;;  %3703 = vmatprep.subr.bf16.mxu1 %v5231_v19 }
 0x438   : > { %v2839_v46 = vmax.f32 %v2684_v49, 0.0  ;;  %v2933_v24 = vpack.c.bf16 %v2838_v62, %v2836_v30  ;;  %v2688_v25 = vadd.f32 %v2687_v32, %v6225_v40  ;;  %v5229_v49 = vld [vmem:[#allocation2 + $0x5f0] ss:$8 sps:$4 sm:$0xff]  }
 0x439   : > { %v2689_v53 = vpop.f32.mrf.mxu1  ;;  %3704 = vmatpush2.bf16.msra.mxu1 %v5229_v49 }
 0x43a   : > { %v2934_v18 = vpack.c.bf16 %v2839_v46, %v2837_v35  ;;  %v2690_v42 = vadd.f32 %v2689_v53, %v6217_v22  ;;  %v5234_v35 = vld [vmem:[#allocation2 + $0x5e4] ss:$8 sps:$4 sm:$0xff]   ;;  %v2840_v46 = vmax.f32 %v2688_v25, 0.0 }
 0x43b   : > { %v2691_v31 = vpop.f32.mrf.mxu1  ;;  %3705 = vmatprep.subr.bf16.mxu1 %v5234_v35 }
 0x43c   : > { %v2692_v0 = vadd.f32 %v2691_v31, %v6225_v40  ;;  %3157 = vmatprep.mubr.bf16.mxu0 %v2934_v18  ;;  %v2841_v62 = vmax.f32 %v2690_v42, 0.0  ;;  %v5232_v31 = vld [vmem:[#allocation2 + $0x5e0] ss:$8 sps:$4 sm:$0xff]  }
 0x43d   : > { %v2693_v16 = vpop.f32.mrf.mxu1  ;;  %3158 = vmatmul.mubr.bf16.vlgmr.msra.gmra.mxu0 %v2933_v24  ;;  %3706 = vmatpush2.bf16.msra.mxu1 %v5232_v31 }
 0x43e   : > { %v2694_v38 = vadd.f32 %v2693_v16, %v6217_v22  ;;  %v2842_v43 = vmax.f32 %v2692_v0, 0.0  ;;  %v5237_v0 = vld [vmem:[#allocation2 + $0x5d4] ss:$8 sps:$4 sm:$0xff]  }
 0x43f   : > { %v2697_v2 = vpop.f32.mrf.mxu1  ;;  %3707 = vmatprep.subr.bf16.mxu1 %v5237_v0 }
 0x440   : > { %v2843_v20 = vmax.f32 %v2694_v38, 0.0  ;;  %v2935_v18 = vpack.c.bf16 %v2842_v43, %v2840_v46  ;;  %v2698_v1 = vadd.f32 %v2697_v2, %v6225_v40  ;;  %v5235_v38 = vld [vmem:[#allocation2 + $0x5d0] ss:$8 sps:$4 sm:$0xff]  }
 0x441   : > { %v2699_v30 = vpop.f32.mrf.mxu1  ;;  %3708 = vmatpush2.bf16.msra.mxu1 %v5235_v38 }
 0x442   : > { %v2936_v53 = vpack.c.bf16 %v2843_v20, %v2841_v62  ;;  %v2700_v32 = vadd.f32 %v2699_v30, %v6217_v22  ;;  %v5240_v62 = vld [vmem:[#allocation2 + $0x5c4] ss:$8 sps:$4 sm:$0xff]   ;;  %v2844_v20 = vmax.f32 %v2698_v1, 0.0 }
 0x443   : > { %v2701_v28 = vpop.f32.mrf.mxu1  ;;  %3709 = vmatprep.subr.bf16.mxu1 %v5240_v62 }
 0x444   : > { %v2702_v24 = vadd.f32 %v2701_v28, %v6225_v40  ;;  %3167 = vmatprep.mubr.bf16.mxu0 %v2936_v53  ;;  %v2845_v43 = vmax.f32 %v2700_v32, 0.0  ;;  %v5238_v28 = vld [vmem:[#allocation2 + $0x5c0] ss:$8 sps:$4 sm:$0xff]  }
 0x445   : > { %v2703_v42 = vpop.f32.mrf.mxu1  ;;  %3168 = vmatmul.mubr.bf16.gmra.mxu0 %v2935_v18  ;;  %3710 = vmatpush2.bf16.msra.mxu1 %v5238_v28 }
 0x446   : > { %v2704_v19 = vadd.f32 %v2703_v42, %v6217_v22  ;;  %v2846_v25 = vmax.f32 %v2702_v24, 0.0  ;;  %v5243_v24 = vld [vmem:[#allocation2 + $0x5b4] ss:$8 sps:$4 sm:$0xff]  }
 0x447   : > { %v2707_v16 = vpop.f32.mrf.mxu1  ;;  %3711 = vmatprep.subr.bf16.mxu1 %v5243_v24 }
 0x448   : > { %v2847_v49 = vmax.f32 %v2704_v19, 0.0  ;;  %v2937_v53 = vpack.c.bf16 %v2846_v25, %v2844_v20  ;;  %v2708_v31 = vadd.f32 %v2707_v16, %v6225_v40  ;;  %v5241_v19 = vld [vmem:[#allocation2 + $0x5b0] ss:$8 sps:$4 sm:$0xff]  }
 0x449   : > { %v2709_v46 = vpop.f32.mrf.mxu1  ;;  %3712 = vmatpush2.bf16.msra.mxu1 %v5241_v19 }
 0x44a   : > { %v2938_v30 = vpack.c.bf16 %v2847_v49, %v2845_v43  ;;  %v2710_v2 = vadd.f32 %v2709_v46, %v6217_v22  ;;  %v5246_v43 = vld [vmem:[#allocation2 + $0x5a4] ss:$8 sps:$4 sm:$0xff]   ;;  %v2848_v49 = vmax.f32 %v2708_v31, 0.0 }
 0x44b   : > { %v2711_v35 = vpop.f32.mrf.mxu1  ;;  %3713 = vmatprep.subr.bf16.mxu1 %v5246_v43 }
 0x44c   : > { %v2712_v18 = vadd.f32 %v2711_v35, %v6225_v40  ;;  %3177 = vmatprep.mubr.bf16.mxu0 %v2938_v30  ;;  %v2849_v25 = vmax.f32 %v2710_v2, 0.0  ;;  %v5244_v35 = vld [vmem:[#allocation2 + $0x5a0] ss:$8 sps:$4 sm:$0xff]  }
 0x44d   : > { %v2713_v32 = vpop.f32.mrf.mxu1  ;;  %3178 = vmatmul.mubr.bf16.gmra.mxu0 %v2937_v53  ;;  %3714 = vmatpush2.bf16.msra.mxu1 %v5244_v35 }
 0x44e   : > { %v2714_v0 = vadd.f32 %v2713_v32, %v6217_v22  ;;  %v2850_v1 = vmax.f32 %v2712_v18, 0.0  ;;  %v5249_v18 = vld [vmem:[#allocation2 + $0x594] ss:$8 sps:$4 sm:$0xff]  }
 0x44f   : > { %v2717_v42 = vpop.f32.mrf.mxu1  ;;  %3715 = vmatprep.subr.bf16.mxu1 %v5249_v18 }
 0x450   : > { %v2851_v38 = vmax.f32 %v2714_v0, 0.0  ;;  %v2939_v30 = vpack.c.bf16 %v2850_v1, %v2848_v49  ;;  %v2718_v28 = vadd.f32 %v2717_v42, %v6225_v40  ;;  %v5247_v0 = vld [vmem:[#allocation2 + $0x590] ss:$8 sps:$4 sm:$0xff]  }
 0x451   : > { %v2719_v20 = vpop.f32.mrf.mxu1  ;;  %3716 = vmatpush2.bf16.msra.mxu1 %v5247_v0 }
 0x452   : > { %v2940_v46 = vpack.c.bf16 %v2851_v38, %v2849_v25  ;;  %v2720_v16 = vadd.f32 %v2719_v20, %v6217_v22  ;;  %v2852_v25 = vmax.f32 %v2718_v28, 0.0 }
 0x453   : > { %v2721_v62 = vpop.f32.mrf.mxu1 }
 0x454   : > { %v2722_v53 = vadd.f32 %v2721_v62, %v6225_v40  ;;  %3187 = vmatprep.mubr.bf16.mxu0 %v2940_v46  ;;  %v2853_v1 = vmax.f32 %v2720_v16, 0.0 }
 0x455   : > { %v2723_v2 = vpop.f32.mrf.mxu1  ;;  %3188 = vmatmul.mubr.bf16.gmra.mxu0 %v2939_v30 }
 0x456   : > { %v2724_v24 = vadd.f32 %v2723_v2, %v6217_v22  ;;  %v2854_v31 = vmax.f32 %v2722_v53, 0.0 }
 0x457   : > { %v2727_v32 = vpop.f32.mrf.mxu1 }
 0x458   : > { %v2855_v19 = vmax.f32 %v2724_v24, 0.0  ;;  %v2941_v20 = vpack.c.bf16 %v2854_v31, %v2852_v25  ;;  %v2728_v30 = vadd.f32 %v2727_v32, %v6225_v40 }
 0x459   : > { %v2729_v38 = vpop.f32.mrf.mxu1 }
 0x45a   : > { %v2942_v49 = vpack.c.bf16 %v2855_v19, %v2853_v1  ;;  %v2730_v43 = vadd.f32 %v2729_v38, %v6217_v22  ;;  %v2856_v2 = vmax.f32 %v2728_v30, 0.0 }
 0x45b   : > { %v2731_v46 = vpop.f32.mrf.mxu1 }
 0x45c   : > { %v2732_v42 = vadd.f32 %v2731_v46, %v6225_v40  ;;  %3197 = vmatprep.mubr.bf16.mxu0 %v2942_v49  ;;  %v2857_v18 = vmax.f32 %v2730_v43, 0.0 }
 0x45d   : > { %v2733_v62 = vpop.f32.mrf.mxu1  ;;  %3198 = vmatmul.mubr.bf16.gmra.mxu0 %v2941_v20 }
 0x45e   : > { %v2734_v35 = vadd.f32 %v2733_v62, %v6217_v22  ;;  %v2858_v16 = vmax.f32 %v2732_v42, 0.0 }
 0x45f   : > { %v2737_v53 = vpop.f32.mrf.mxu1 }
 0x460   : > { %v2859_v28 = vmax.f32 %v2734_v35, 0.0  ;;  %v2943_v1 = vpack.c.bf16 %v2858_v16, %v2856_v2  ;;  %v2738_v32 = vadd.f32 %v2737_v53, %v6225_v40 }
 0x461   : > { %v2739_v24 = vpop.f32.mrf.mxu1 }
 0x462   : > { %v2944_v31 = vpack.c.bf16 %v2859_v28, %v2857_v18  ;;  %v2740_v19 = vadd.f32 %v2739_v24, %v6217_v22  ;;  %v2860_v30 = vmax.f32 %v2738_v32, 0.0 }
 0x463   : > { %v2741_v0 = vpop.f32.mrf.mxu1 }
 0x464   : > { %v2742_v25 = vadd.f32 %v2741_v0, %v6225_v40  ;;  %3207 = vmatprep.mubr.bf16.mxu0 %v2944_v31  ;;  %v2861_v43 = vmax.f32 %v2740_v19, 0.0 }
 0x465   : > { %v2743_v38 = vpop.f32.mrf.mxu1  ;;  %3208 = vmatmul.mubr.bf16.gmra.mxu0 %v2943_v1 }
 0x466   : > { %v2744_v49 = vadd.f32 %v2743_v38, %v6217_v22  ;;  %v2862_v20 = vmax.f32 %v2742_v25, 0.0 }
 0x467   : > { %v2747_v46 = vpop.f32.mrf.mxu1 }
 0x468   : > { %v2863_v42 = vmax.f32 %v2744_v49, 0.0  ;;  %v2945_v16 = vpack.c.bf16 %v2862_v20, %v2860_v30  ;;  %v2748_v53 = vadd.f32 %v2747_v46, %v6225_v40 }
 0x469   : > { %v2749_v62 = vpop.f32.mrf.mxu1 }
 0x46a   : > { %v2946_v35 = vpack.c.bf16 %v2863_v42, %v2861_v43  ;;  %v2750_v28 = vadd.f32 %v2749_v62, %v6217_v22  ;;  %v2864_v32 = vmax.f32 %v2748_v53, 0.0 }
 0x46b   : > { %v2751_v18 = vpop.f32.mrf.mxu1 }
 0x46c   : > { %v2752_v2 = vadd.f32 %v2751_v18, %v6225_v40  ;;  %3217 = vmatprep.mubr.bf16.mxu0 %v2946_v35  ;;  %v2865_v19 = vmax.f32 %v2750_v28, 0.0 }
 0x46d   : > { %v2753_v24 = vpop.f32.mrf.mxu1  ;;  %3218 = vmatmul.mubr.bf16.gmra.mxu0 %v2945_v16 }
 0x46e   : > { %v2754_v31 = vadd.f32 %v2753_v24, %v6217_v22  ;;  %v2866_v1 = vmax.f32 %v2752_v2, 0.0 }
 0x46f   : > { %v2757_v0 = vpop.f32.mrf.mxu1 }
 0x470   : > { %v2867_v25 = vmax.f32 %v2754_v31, 0.0  ;;  %v2947_v20 = vpack.c.bf16 %v2866_v1, %v2864_v32  ;;  %v2758_v46 = vadd.f32 %v2757_v0, %v6225_v40 }
 0x471   : > { %v2759_v38 = vpop.f32.mrf.mxu1 }
 0x472   : > { %v2948_v49 = vpack.c.bf16 %v2867_v25, %v2865_v19  ;;  %v2760_v42 = vadd.f32 %v2759_v38, %v6217_v22  ;;  %v2868_v53 = vmax.f32 %v2758_v46, 0.0 }
 0x473   : > { %v2761_v43 = vpop.f32.mrf.mxu1 }
 0x474   : > { %v2762_v30 = vadd.f32 %v2761_v43, %v6225_v40  ;;  %3227 = vmatprep.mubr.bf16.mxu0 %v2948_v49  ;;  %v2869_v28 = vmax.f32 %v2760_v42, 0.0 }
 0x475   : > { %v2763_v62 = vpop.f32.mrf.mxu1  ;;  %3228 = vmatmul.mubr.bf16.gmra.mxu0 %v2947_v20 }
 0x476   : > { %v2764_v35 = vadd.f32 %v2763_v62, %v6217_v22  ;;  %v2870_v16 = vmax.f32 %v2762_v30, 0.0 }
 0x477   : > { %v2767_v18 = vpop.f32.mrf.mxu1 }
 0x478   : > { %v2871_v2 = vmax.f32 %v2764_v35, 0.0  ;;  %v2949_v1 = vpack.c.bf16 %v2870_v16, %v2868_v53  ;;  %v2768_v0 = vadd.f32 %v2767_v18, %v6225_v40 }
 0x479   : > { %v2769_v24 = vpop.f32.mrf.mxu1 }
 0x47a   : > { %v2950_v31 = vpack.c.bf16 %v2871_v2, %v2869_v28  ;;  %v2770_v25 = vadd.f32 %v2769_v24, %v6217_v22  ;;  %v2872_v46 = vmax.f32 %v2768_v0, 0.0 }
 0x47b   : > { %v2771_v19 = vpop.f32.mrf.mxu1 }
 0x47c   : > { %v2772_v32 = vadd.f32 %v2771_v19, %v6225_v40  ;;  %3237 = vmatprep.mubr.bf16.mxu0 %v2950_v31  ;;  %v2873_v42 = vmax.f32 %v2770_v25, 0.0  ;;  %v5252_v25 = vld [vmem:[#allocation2 + $0x584] ss:$8 sps:$4 sm:$0xff]  }
 0x47d   : > { %v2773_v38 = vpop.f32.mrf.mxu1  ;;  %3238 = vmatmul.mubr.bf16.gmra.mxu0 %v2949_v1  ;;  %3717 = vmatprep.subr.bf16.mxu1 %v5252_v25 }
 0x47e   : > { %v2774_v49 = vadd.f32 %v2773_v38, %v6217_v22  ;;  %v2874_v20 = vmax.f32 %v2772_v32, 0.0  ;;  %v5250_v38 = vld [vmem:[#allocation2 + $0x580] ss:$8 sps:$4 sm:$0xff]  }
 0x47f   : > { %v2777_v43 = vpop.f32.mrf.mxu1  ;;  %3718 = vmatpush2.bf16.msra.mxu1 %v5250_v38 }
 0x480   : > { %v2875_v30 = vmax.f32 %v2774_v49, 0.0  ;;  %v2951_v16 = vpack.c.bf16 %v2874_v20, %v2872_v46  ;;  %v2778_v18 = vadd.f32 %v2777_v43, %v6225_v40 }
 0x481   : > { %v2779_v62 = vpop.f32.mrf.mxu1 }
 0x482   : > { %v2952_v35 = vpack.c.bf16 %v2875_v30, %v2873_v42  ;;  %v2780_v2 = vadd.f32 %v2779_v62, %v6217_v22  ;;  %v2876_v49 = vmax.f32 %v2778_v18, 0.0 }
 0x483   : > { %v2781_v28 = vpop.f32.mrf.mxu1 }
 0x484   : > { %v2782_v53 = vadd.f32 %v2781_v28, %v6225_v40  ;;  %3247 = vmatprep.mubr.bf16.mxu0 %v2952_v35  ;;  %v2877_v32 = vmax.f32 %v2780_v2, 0.0 }
 0x485   : > { %v2783_v24 = vpop.f32.mrf.mxu1  ;;  %3248 = vmatmul.mubr.bf16.gmra.mxu0 %v2951_v16 }
 0x486   : > { %v2784_v31 = vadd.f32 %v2783_v24, %v6217_v22  ;;  %v2878_v1 = vmax.f32 %v2782_v53, 0.0 }
 0x487   : > { %v2787_v19 = vpop.f32.mrf.mxu1 }
 0x488   : > { %v2879_v0 = vmax.f32 %v2784_v31, 0.0  ;;  %v2953_v30 = vpack.c.bf16 %v2878_v1, %v2876_v49  ;;  %v2788_v35 = vadd.f32 %v2787_v19, %v6225_v40 }
 0x489   : > { %v2789_v20 = vpop.f32.mrf.mxu1 }
 0x48a   : > { %v2954_v42 = vpack.c.bf16 %v2879_v0, %v2877_v32  ;;  %v2790_v62 = vadd.f32 %v2789_v20, %v6217_v22  ;;  %v2880_v31 = vmax.f32 %v2788_v35, 0.0 }
 0x48b   : > { %v2791_v46 = vpop.f32.mrf.mxu1 }
 0x48c   : > { %v2792_v43 = vadd.f32 %v2791_v46, %v6225_v40  ;;  %3257 = vmatprep.mubr.bf16.mxu0 %v2954_v42  ;;  %v2881_v18 = vmax.f32 %v2790_v62, 0.0 }
 0x48d   : > { %v2793_v16 = vpop.f32.mrf.mxu1  ;;  %3258 = vmatmul.mubr.bf16.gmra.mxu0 %v2953_v30 }
 0x48e   : > { %v2794_v28 = vadd.f32 %v2793_v16, %v6217_v22  ;;  %v2882_v2 = vmax.f32 %v2792_v43, 0.0 }
 0x48f   : > { %v2797_v53 = vpop.f32.mrf.mxu1 }
 0x490   : > { %v2883_v24 = vmax.f32 %v2794_v28, 0.0  ;;  %v2955_v1 = vpack.c.bf16 %v2882_v2, %v2880_v31  ;;  %v2798_v19 = vadd.f32 %v2797_v53, %v6225_v40 }
 0x491   : > { %v2799_v25 = vpop.f32.mrf.mxu1 }
 0x492   : > { %v2956_v32 = vpack.c.bf16 %v2883_v24, %v2881_v18  ;;  %v2800_v38 = vadd.f32 %v2799_v25, %v6217_v22  ;;  %v2884_v35 = vmax.f32 %v2798_v19, 0.0 }
 0x493   : > { %v2801_v0 = vpop.f32.mrf.mxu1 }
 0x494   : > { %v2802_v49 = vadd.f32 %v2801_v0, %v6225_v40  ;;  %3267 = vmatprep.mubr.bf16.mxu0 %v2956_v32  ;;  %v2885_v62 = vmax.f32 %v2800_v38, 0.0 }
 0x495   : > { %v2803_v20 = vpop.f32.mrf.mxu1  ;;  %3268 = vmatmul.mubr.bf16.gmra.mxu0 %v2955_v1 }
 0x496   : > { %v2804_v42 = vadd.f32 %v2803_v20, %v6217_v22  ;;  %v2886_v30 = vmax.f32 %v2802_v49, 0.0 }
 0x497   : > { %v2807_v46 = vpop.f32.mrf.mxu1 }
 0x498   : > { %v2887_v43 = vmax.f32 %v2804_v42, 0.0  ;;  %v2957_v2 = vpack.c.bf16 %v2886_v30, %v2884_v35  ;;  %v2808_v53 = vadd.f32 %v2807_v46, %v6225_v40 }
 0x499   : > { %v2809_v16 = vpop.f32.mrf.mxu1 }
 0x49a   : > { %v2958_v28 = vpack.c.bf16 %v2887_v43, %v2885_v62  ;;  %v2810_v24 = vadd.f32 %v2809_v16, %v6217_v22  ;;  %v2888_v19 = vmax.f32 %v2808_v53, 0.0 }
 0x49b   : > { %v2811_v18 = vpop.f32.mrf.mxu1 }
 0x49c   : > { %v2812_v31 = vadd.f32 %v2811_v18, %v6225_v40  ;;  %3277 = vmatprep.mubr.bf16.mxu0 %v2958_v28  ;;  %v2889_v38 = vmax.f32 %v2810_v24, 0.0 }
 0x49d   : > { %v2813_v25 = vpop.f32.mrf.mxu1  ;;  %3278 = vmatmul.mubr.bf16.gmra.mxu0 %v2957_v2 }
 0x49e   : > { %v2814_v32 = vadd.f32 %v2813_v25, %v6217_v22  ;;  %v2890_v1 = vmax.f32 %v2812_v31, 0.0 }
 0x49f   : > { %v2817_v0 = vpop.f32.mrf.mxu1 }
 0x4a0   : > { %v2891_v49 = vmax.f32 %v2814_v32, 0.0  ;;  %v2959_v30 = vpack.c.bf16 %v2890_v1, %v2888_v19  ;;  %v2818_v46 = vadd.f32 %v2817_v0, %v6225_v40 }
 0x4a1   : > { %v2819_v20 = vpop.f32.mrf.mxu1 }
 0x4a2   : > { %v2960_v42 = vpack.c.bf16 %v2891_v49, %v2889_v38  ;;  %v2820_v43 = vadd.f32 %v2819_v20, %v6217_v22  ;;  %v2892_v53 = vmax.f32 %v2818_v46, 0.0 }
 0x4a3   : > { %v2821_v62 = vpop.f32.mrf.mxu1 }
 0x4a4   : > { %v2822_v35 = vadd.f32 %v2821_v62, %v6225_v40  ;;  %3287 = vmatprep.mubr.bf16.mxu0 %v2960_v42  ;;  %v2893_v24 = vmax.f32 %v2820_v43, 0.0 }
 0x4a5   : > { %v2823_v16 = vpop.f32.mrf.mxu1  ;;  %3288 = vmatmul.mubr.bf16.gmra.mxu0 %v2959_v30 }
 0x4a6   : > { %v2824_v28 = vadd.f32 %v2823_v16, %v6217_v22  ;;  %v2894_v2 = vmax.f32 %v2822_v35, 0.0 }
 0x4a7   : > { %v2827_v18 = vpop.f32.mrf.mxu1 }
 0x4a8   : > { %v2895_v31 = vmax.f32 %v2824_v28, 0.0  ;;  %v2961_v1 = vpack.c.bf16 %v2894_v2, %v2892_v53  ;;  %v2828_v0 = vadd.f32 %v2827_v18, %v6225_v40  ;;  %v5253_v28 = vld [vmem:[#allocation2 + $0x670] ss:$8 sps:$4 sm:$0xff]   ;;  %v5255_v2 = vld [vmem:[#allocation2 + $0x674] ss:$8 sps:$4 sm:$0xff]  }
 0x4a9   : > { %v2829_v25 = vpop.f32.mrf.mxu1  ;;  %4177 = vmatprep.subr.bf16.mxu0 %v5255_v2  ;;  %v5261_v18 = vld [vmem:[#allocation2 + $0x654] ss:$8 sps:$4 sm:$0xff]   ;;  %v5264_v53 = vld [vmem:[#allocation2 + $0x644] ss:$8 sps:$4 sm:$0xff]  }
 0x4aa   : > { %v2962_v32 = vpack.c.bf16 %v2895_v31, %v2893_v24  ;;  %v2830_v49 = vadd.f32 %v2829_v25, %v6217_v22  ;;  %v2896_v35 = vmax.f32 %v2828_v0, 0.0  ;;  %4178 = vmatpush1.bf16.msra.mxu0 %v5253_v28  ;;  %v5256_v24 = vld [vmem:[#allocation2 + $0x660] ss:$8 sps:$4 sm:$0xff]   ;;  %v5258_v31 = vld [vmem:[#allocation2 + $0x664] ss:$8 sps:$4 sm:$0xff]  }
 0x4ab   : > { %v2831_v38 = vpop.f32.mrf.mxu1  ;;  %4179 = vmatprep.subr.bf16.mxu0 %v5258_v31  ;;  %v5267_v0 = vld [vmem:[#allocation2 + $0x634] ss:$8 sps:$4 sm:$0xff]  }
 0x4ac   : > { %v2832_v19 = vadd.f32 %v2831_v38, %v6225_v40  ;;  %3297 = vmatprep.mubr.bf16.mxu0 %v2962_v32  ;;  %v2897_v62 = vmax.f32 %v2830_v49, 0.0  ;;  %v5259_v40 = vld [vmem:[#allocation2 + $0x650] ss:$8 sps:$4 sm:$0xff]   ;;  %v3320_v32 = vsub.s32 5, %v5687_v51 }
 0x4ad   : > { %v2833_v20 = vpop.f32.mrf.mxu1  ;;  %3298 = vmatmul.mubr.bf16.gmra.mxu0 %v2961_v1 }
 0x4ae   : > { %v2834_v42 = vadd.f32 %v2833_v20, %v6217_v22  ;;  %v2898_v30 = vmax.f32 %v2832_v19, 0.0  ;;  %4180 = vmatpush1.bf16.msra.mxu0 %v5256_v24  ;;  %v5262_v22 = vld [vmem:[#allocation2 + $0x640] ss:$8 sps:$4 sm:$0xff]   ;;  %v6294_v49 = vrot.slane %v6214_v10, %v3320_v32  ;;  %v5265_v19 = vld [vmem:[#allocation2 + $0x630] ss:$8 sps:$4 sm:$0xff]  }
 0x4af   : > { %4181 = vmatprep.subr.bf16.mxu0 %v5261_v18 }
 0x4b0   : > { %v2899_v43 = vmax.f32 %v2834_v42, 0.0  ;;  %v2963_v16 = vpack.c.bf16 %v2898_v30, %v2896_v35  ;;  %v6298_v42 = vrot.slane %v6222_v21, %v3320_v32  ;;  %v5273_v21 = vld [vmem:[#allocation2 + $0x614] ss:$8 sps:$4 sm:$0xff]  }
 0x4b2   : > { %v2964_v46 = vpack.c.bf16 %v2899_v43, %v2897_v62  ;;  %4182 = vmatpush1.bf16.msra.mxu0 %v5259_v40  ;;  %v5270_v62 = vld [vmem:[#allocation2 + $0x624] ss:$8 sps:$4 sm:$0xff]  }
 0x4b3   : > { %4183 = vmatprep.subr.bf16.mxu0 %v5264_v53  ;;  %v5276_v53 = vld [vmem:[#allocation2 + $0x604] ss:$8 sps:$4 sm:$0xff]  }
 0x4b4   : > { %3307 = vmatprep.mubr.bf16.mxu0 %v2964_v46  ;;  %v5268_v46 = vld [vmem:[#allocation2 + $0x620] ss:$8 sps:$4 sm:$0xff]  }
 0x4b5   : > { %3308 = vmatmul.mubr.bf16.gmra.mxu0 %v2963_v16 }
 0x4b6   : > { %4184 = vmatpush1.bf16.msra.mxu0 %v5262_v22 }
 0x4b7   : > { %4185 = vmatprep.subr.bf16.mxu0 %v5267_v0 }
 0x4ba   : > { %4186 = vmatpush1.bf16.msra.mxu0 %v5265_v19 }
 0x4bb   : > { %4187 = vmatprep.subr.bf16.mxu0 %v5270_v62 }
 0x4be   : > { %4188 = vmatpush1.bf16.msra.mxu0 %v5268_v46 }
 0x4bf   : > { %4189 = vmatprep.subr.bf16.mxu0 %v5273_v21  ;;  %v5282_v21 = vld [vmem:[#allocation2 + $0x6e4] ss:$8 sps:$4 sm:$0xff]  }
 0x4fd   : > { %v3159_v25 = vpop.f32.mrf.mxu0 }
 0x4fe   : > { %v3160_v20 = vadd.f32 %v3159_v25, %v5859_v44 }
 0x4ff   : > { %v3161_v1 = vpop.f32.mrf.mxu0 }
 0x500   : > { %v3162_v38 = vadd.f32 %v3161_v1, %v5861_v50  ;;  %v3326_v44 = vadd.f32 %v6298_v42, %v3160_v20  ;;  %v5274_v20 = vld [vmem:[#allocation2 + $0x600] ss:$8 sps:$4 sm:$0xff]  }
 0x501   : > { %v3163_v30 = vpop.f32.mrf.mxu0 }
 0x502   : > { %v3164_v43 = vadd.f32 %v3163_v30, %v5863_v56  ;;  %v3327_v50 = vadd.f32 %v6294_v49, %v3162_v38  ;;  %v5271_v56 = vld [vmem:[#allocation2 + $0x610] ss:$8 sps:$4 sm:$0xff]   ;;  %v3390_v25 = vmax.f32 %v3326_v44, 0.0 }
 0x503   : > { %v3165_v35 = vpop.f32.mrf.mxu0  ;;  %4190 = vmatpush1.bf16.msra.mxu0 %v5271_v56 }
 0x504   : > { %v3328_v10 = vadd.f32 %v6298_v42, %v3164_v43  ;;  %v3166_v16 = vadd.f32 %v3165_v35, %v5865_v57  ;;  %v3391_v40 = vmax.f32 %v3327_v50, 0.0  ;;  %4191 = vmatprep.subr.bf16.mxu0 %v5276_v53 }
 0x505   : > { %v3169_v28 = vpop.f32.mrf.mxu0 }
 0x506   : > { %v3329_v2 = vadd.f32 %v6294_v49, %v3166_v16  ;;  %v3392_v24 = vmax.f32 %v3328_v10, 0.0  ;;  %v3170_v57 = vadd.f32 %v3169_v28, %v5867_v58  ;;  %v5277_v10 = vld [vmem:[#allocation2 + $0x6f0] ss:$8 sps:$4 sm:$0xff]  }
 0x507   : > { %v3171_v31 = vpop.f32.mrf.mxu0  ;;  %4192 = vmatpush1.bf16.msra.mxu0 %v5274_v20 }
 0x508   : > { %v3393_v18 = vmax.f32 %v3329_v2, 0.0  ;;  %v3172_v22 = vadd.f32 %v3171_v31, %v5869_v61  ;;  %v3487_v19 = vpack.c.bf16 %v3392_v24, %v3390_v25  ;;  %v5279_v61 = vld [vmem:[#allocation2 + $0x6f4] ss:$8 sps:$4 sm:$0xff]   ;;  %v3330_v35 = vadd.f32 %v6298_v42, %v3170_v57 }
 0x509   : > { %v3173_v32 = vpop.f32.mrf.mxu0  ;;  %4193 = vmatprep.subr.bf16.mxu0 %v5279_v61 }
 0x50a   : > { %v3174_v1 = vadd.f32 %v3173_v32, %v5871_v52  ;;  %v3488_v38 = vpack.c.bf16 %v3393_v18, %v3391_v40  ;;  %v3331_v30 = vadd.f32 %v6294_v49, %v3172_v22  ;;  %v5280_v22 = vld [vmem:[#allocation2 + $0x6e0] ss:$8 sps:$4 sm:$0xff]  }
 0x50b   : > { %v3175_v0 = vpop.f32.mrf.mxu0  ;;  %4194 = vmatpush2.bf16.msra.mxu0 %v5277_v10 }
 0x50c   : > { %v3332_v62 = vadd.f32 %v6298_v42, %v3174_v1  ;;  %v3176_v43 = vadd.f32 %v3175_v0, %v5873_v5  ;;  %3719 = vmatprep.mubr.bf16.mxu1 %v3488_v38  ;;  %v3395_v16 = vmax.f32 %v3331_v30, 0.0  ;;  %v3394_v5 = vmax.f32 %v3330_v35, 0.0  ;;  %4195 = vmatprep.subr.bf16.mxu0 %v5282_v21 }
 0x50d   : > { %v3179_v58 = vpop.f32.mrf.mxu0  ;;  %3720 = vmatmul.mubr.bf16.vlgmr.msra.gmra.mxu1 %v3487_v19  ;;  %v5283_v19 = vld [vmem:[#allocation2 + $0x6d0] ss:$8 sps:$4 sm:$0xff]  }
 0x50e   : > { %v3333_v52 = vadd.f32 %v6294_v49, %v3176_v43  ;;  %v3396_v46 = vmax.f32 %v3332_v62, 0.0  ;;  %v3180_v2 = vadd.f32 %v3179_v58, %v5875_v7  ;;  %v5288_v62 = vld [vmem:[#allocation2 + $0x6c4] ss:$8 sps:$4 sm:$0xff]  }
 0x50f   : > { %v3181_v50 = vpop.f32.mrf.mxu0  ;;  %4196 = vmatpush2.bf16.msra.mxu0 %v5280_v22 }
 0x510   : > { %v3397_v44 = vmax.f32 %v3333_v52, 0.0  ;;  %v3182_v28 = vadd.f32 %v3181_v50, %v5877_v63  ;;  %v3489_v40 = vpack.c.bf16 %v3396_v46, %v3394_v5  ;;  %v5285_v63 = vld [vmem:[#allocation2 + $0x6d4] ss:$8 sps:$4 sm:$0xff]   ;;  %v3334_v32 = vadd.f32 %v6298_v42, %v3180_v2  ;;  %v5286_v50 = vld [vmem:[#allocation2 + $0x6c0] ss:$8 sps:$4 sm:$0xff]  }
 0x511   : > { %v3183_v24 = vpop.f32.mrf.mxu0  ;;  %4197 = vmatprep.subr.bf16.mxu0 %v5285_v63  ;;  %v5289_v2 = vld [vmem:[#allocation2 + $0x6b0] ss:$8 sps:$4 sm:$0xff]  }
 0x512   : > { %v3184_v31 = vadd.f32 %v3183_v24, %v5879_v11  ;;  %v3490_v56 = vpack.c.bf16 %v3397_v44, %v3395_v16  ;;  %v3335_v53 = vadd.f32 %v6294_v49, %v3182_v28 }
 0x513   : > { %v3185_v18 = vpop.f32.mrf.mxu0  ;;  %4198 = vmatpush2.bf16.msra.mxu0 %v5283_v19 }
 0x514   : > { %v3336_v25 = vadd.f32 %v6298_v42, %v3184_v31  ;;  %v3186_v57 = vadd.f32 %v3185_v18, %v5881_v45  ;;  %3729 = vmatprep.mubr.bf16.mxu1 %v3490_v56  ;;  %v3399_v0 = vmax.f32 %v3335_v53, 0.0  ;;  %v3398_v45 = vmax.f32 %v3334_v32, 0.0  ;;  %4199 = vmatprep.subr.bf16.mxu0 %v5288_v62  ;;  %v5292_v32 = vld [vmem:[#allocation2 + $0x6a0] ss:$8 sps:$4 sm:$0xff]  }
 0x515   : > { %v3189_v7 = vpop.f32.mrf.mxu0  ;;  %3730 = vmatmul.mubr.bf16.gmra.mxu1 %v3489_v40  ;;  %v5294_v40 = vld [vmem:[#allocation2 + $0x6a4] ss:$8 sps:$4 sm:$0xff]  }
 0x516   : > { %v3337_v11 = vadd.f32 %v6294_v49, %v3186_v57  ;;  %v3400_v1 = vmax.f32 %v3336_v25, 0.0  ;;  %v3190_v43 = vadd.f32 %v3189_v7, %v5884_v48 }
 0x517   : > { %v3191_v38 = vpop.f32.mrf.mxu0  ;;  %4200 = vmatpush2.bf16.msra.mxu0 %v5286_v50 }
 0x518   : > { %v3401_v20 = vmax.f32 %v3337_v11, 0.0  ;;  %v3192_v30 = vadd.f32 %v3191_v38, %v5892_v29  ;;  %v3491_v52 = vpack.c.bf16 %v3400_v1, %v3398_v45  ;;  %v5291_v29 = vld [vmem:[#allocation2 + $0x6b4] ss:$8 sps:$4 sm:$0xff]   ;;  %v3338_v28 = vadd.f32 %v6298_v42, %v3190_v43 }
 0x519   : > { %v3193_v61 = vpop.f32.mrf.mxu0  ;;  %4201 = vmatprep.subr.bf16.mxu0 %v5291_v29 }
 0x51a   : > { %v3194_v35 = vadd.f32 %v3193_v61, %v5898_v59  ;;  %v3492_v58 = vpack.c.bf16 %v3401_v20, %v3399_v0  ;;  %v3339_v10 = vadd.f32 %v6294_v49, %v3192_v30  ;;  %v5295_v20 = vld [vmem:[#allocation2 + $0x690] ss:$8 sps:$4 sm:$0xff]  }
 0x51b   : > { %v3195_v46 = vpop.f32.mrf.mxu0  ;;  %4202 = vmatpush2.bf16.msra.mxu0 %v5289_v2 }
 0x51c   : > { %v3340_v16 = vadd.f32 %v6298_v42, %v3194_v35  ;;  %v3196_v44 = vadd.f32 %v3195_v46, %v5900_v55  ;;  %3739 = vmatprep.mubr.bf16.mxu1 %v3492_v58  ;;  %v3403_v24 = vmax.f32 %v3339_v10, 0.0  ;;  %v3402_v55 = vmax.f32 %v3338_v28, 0.0  ;;  %4203 = vmatprep.subr.bf16.mxu0 %v5294_v40 }
 0x51d   : > { %v3199_v48 = vpop.f32.mrf.mxu0  ;;  %3740 = vmatmul.mubr.bf16.gmra.mxu1 %v3491_v52 }
 0x51e   : > { %v3341_v59 = vadd.f32 %v6294_v49, %v3196_v44  ;;  %v3404_v21 = vmax.f32 %v3340_v16, 0.0  ;;  %v3200_v18 = vadd.f32 %v3199_v48, %v5906_v15 }
 0x51f   : > { %v3201_v5 = vpop.f32.mrf.mxu0  ;;  %4204 = vmatpush2.bf16.msra.mxu0 %v5292_v32 }
 0x520   : > { %v3405_v31 = vmax.f32 %v3341_v59, 0.0  ;;  %v3202_v56 = vadd.f32 %v3201_v5, %v5908_v17  ;;  %v3493_v57 = vpack.c.bf16 %v3404_v21, %v3402_v55  ;;  %v5297_v17 = vld [vmem:[#allocation2 + $0x694] ss:$8 sps:$4 sm:$0xff]   ;;  %v3342_v38 = vadd.f32 %v6298_v42, %v3200_v18 }
 0x521   : > { %v3203_v22 = vpop.f32.mrf.mxu0  ;;  %4205 = vmatprep.subr.bf16.mxu0 %v5297_v17 }
 0x522   : > { %v3204_v53 = vadd.f32 %v3203_v22, %v5914_v33  ;;  %v3494_v25 = vpack.c.bf16 %v3405_v31, %v3403_v24  ;;  %v3343_v7 = vadd.f32 %v6294_v49, %v3202_v56  ;;  %v3406_v43 = vmax.f32 %v3342_v38, 0.0 }
 0x523   : > { %v3205_v63 = vpop.f32.mrf.mxu0  ;;  %4206 = vmatpush2.bf16.msra.mxu0 %v5295_v20 }
 0x524   : > { %v3344_v11 = vadd.f32 %v6298_v42, %v3204_v53  ;;  %v3206_v1 = vadd.f32 %v3205_v63, %v5916_v41  ;;  %3749 = vmatprep.mubr.bf16.mxu1 %v3494_v25  ;;  %v3407_v30 = vmax.f32 %v3343_v7, 0.0 }
 0x525   : > { %v3209_v15 = vpop.f32.mrf.mxu0  ;;  %3750 = vmatmul.mubr.bf16.gmra.mxu1 %v3493_v57 }
 0x526   : > { %v3345_v33 = vadd.f32 %v6294_v49, %v3206_v1  ;;  %v3408_v19 = vmax.f32 %v3344_v11, 0.0  ;;  %v3210_v41 = vadd.f32 %v3209_v15, %v5922_v39 }
 0x527   : > { %v3211_v0 = vpop.f32.mrf.mxu0 }
 0x528   : > { %v3409_v62 = vmax.f32 %v3345_v33, 0.0  ;;  %v3212_v45 = vadd.f32 %v3211_v0, %v5924_v6  ;;  %v3495_v52 = vpack.c.bf16 %v3408_v19, %v3406_v43  ;;  %v3346_v6 = vadd.f32 %v6298_v42, %v3210_v41 }
 0x529   : > { %v3213_v61 = vpop.f32.mrf.mxu0 }
 0x52a   : > { %v3214_v35 = vadd.f32 %v3213_v61, %v5930_v12  ;;  %v3496_v58 = vpack.c.bf16 %v3409_v62, %v3407_v30  ;;  %v3347_v50 = vadd.f32 %v6294_v49, %v3212_v45  ;;  %v3410_v21 = vmax.f32 %v3346_v6, 0.0 }
 0x52b   : > { %v3215_v46 = vpop.f32.mrf.mxu0 }
 0x52c   : > { %v3348_v10 = vadd.f32 %v6298_v42, %v3214_v35  ;;  %v3216_v16 = vadd.f32 %v3215_v46, %v5932_v54  ;;  %3759 = vmatprep.mubr.bf16.mxu1 %v3496_v58  ;;  %v3411_v12 = vmax.f32 %v3347_v50, 0.0 }
 0x52d   : > { %v3219_v44 = vpop.f32.mrf.mxu0  ;;  %3760 = vmatmul.mubr.bf16.gmra.mxu1 %v3495_v52 }
 0x52e   : > { %v3349_v39 = vadd.f32 %v6294_v49, %v3216_v16  ;;  %v3412_v29 = vmax.f32 %v3348_v10, 0.0  ;;  %v3220_v5 = vadd.f32 %v3219_v44, %v5938_v47 }
 0x52f   : > { %v3221_v28 = vpop.f32.mrf.mxu0 }
 0x530   : > { %v3413_v48 = vmax.f32 %v3349_v39, 0.0  ;;  %v3222_v59 = vadd.f32 %v3221_v28, %v5940_v60  ;;  %v3497_v31 = vpack.c.bf16 %v3412_v29, %v3410_v21  ;;  %v3350_v22 = vadd.f32 %v6298_v42, %v3220_v5 }
 0x531   : > { %v3223_v2 = vpop.f32.mrf.mxu0 }
 0x532   : > { %v3224_v24 = vadd.f32 %v3223_v2, %v5946_v8  ;;  %v3498_v54 = vpack.c.bf16 %v3413_v48, %v3411_v12  ;;  %v3351_v40 = vadd.f32 %v6294_v49, %v3222_v59  ;;  %v3414_v32 = vmax.f32 %v3350_v22, 0.0  ;;  %v6732_v59 = vld [vmem:[#allocation8_spill] sm:$0xff] }
 0x533   : > { %v3225_v56 = vpop.f32.mrf.mxu0 }
 0x534   : > { %v3352_v55 = vadd.f32 %v6298_v42, %v3224_v24  ;;  %v3226_v18 = vadd.f32 %v3225_v56, %v5948_v27  ;;  %3769 = vmatprep.mubr.bf16.mxu1 %v3498_v54  ;;  %v3415_v57 = vmax.f32 %v3351_v40, 0.0 }
 0x535   : > { %v3229_v53 = vpop.f32.mrf.mxu0  ;;  %3770 = vmatmul.mubr.bf16.gmra.mxu1 %v3497_v31  ;;  %v6733_v31 = vld [vmem:[#allocation9_spill] sm:$0xff] }
 0x536   : > { %v3353_v60 = vadd.f32 %v6294_v49, %v3226_v18  ;;  %v3416_v47 = vmax.f32 %v3352_v55, 0.0  ;;  %v3230_v7 = vadd.f32 %v3229_v53, %v5954_v3 }
 0x537   : > { %v3231_v25 = vpop.f32.mrf.mxu0 }
 0x538   : > { %v3417_v8 = vmax.f32 %v3353_v60, 0.0  ;;  %v3232_v63 = vadd.f32 %v3231_v25, %v5956_v9  ;;  %v3499_v17 = vpack.c.bf16 %v3416_v47, %v3414_v32  ;;  %v3354_v0 = vadd.f32 %v6298_v42, %v3230_v7  ;;  %v6734_v60 = vld [vmem:[#allocation11_spill] sm:$0xff]  ;;  %v6736_v32 = vld [vmem:[#allocation12_spill] sm:$0xff] }
 0x539   : > { %v3233_v11 = vpop.f32.mrf.mxu0 }
 0x53a   : > { %v3234_v1 = vadd.f32 %v3233_v11, %v5962_v4  ;;  %v3500_v27 = vpack.c.bf16 %v3417_v8, %v3415_v57  ;;  %v3355_v15 = vadd.f32 %v6294_v49, %v3232_v63  ;;  %v3418_v43 = vmax.f32 %v3354_v0, 0.0  ;;  %v6735_v57 = vld [vmem:[#allocation10_spill] sm:$0xff] }
 0x53b   : > { %v3235_v38 = vpop.f32.mrf.mxu0 }
 0x53c   : > { %v3356_v33 = vadd.f32 %v6298_v42, %v3234_v1  ;;  %v3236_v19 = vadd.f32 %v3235_v38, %v5964_v26  ;;  %3779 = vmatprep.mubr.bf16.mxu1 %v3500_v27  ;;  %v3419_v62 = vmax.f32 %v3355_v15, 0.0  ;;  %v6737_v15 = vld [vmem:[#allocation13_spill] sm:$0xff] }
 0x53d   : > { %v3239_v20 = vpop.f32.mrf.mxu0  ;;  %3780 = vmatmul.mubr.bf16.gmra.mxu1 %v3499_v17 }
 0x53e   : > { %v3357_v9 = vadd.f32 %v6294_v49, %v3236_v19  ;;  %v3420_v3 = vmax.f32 %v3356_v33, 0.0  ;;  %v3240_v41 = vadd.f32 %v3239_v20, %v5970_v37  ;;  %v5300_v20 = vld [vmem:[#allocation2 + $0x684] ss:$8 sps:$4 sm:$0xff]  }
 0x53f   : > { %v3241_v30 = vpop.f32.mrf.mxu0  ;;  %4207 = vmatprep.subr.bf16.mxu0 %v5300_v20 }
 0x540   : > { %v3421_v4 = vmax.f32 %v3357_v9, 0.0  ;;  %v3242_v45 = vadd.f32 %v3241_v30, %v5972_v34  ;;  %v3501_v58 = vpack.c.bf16 %v3420_v3, %v3418_v43  ;;  %v3358_v16 = vadd.f32 %v6298_v42, %v3240_v41  ;;  %v5298_v3 = vld [vmem:[#allocation2 + $0x680] ss:$8 sps:$4 sm:$0xff]   ;;  %v6738_v43 = vld [vmem:[#allocation15_spill] sm:$0xff] }
 0x541   : > { %v3243_v61 = vpop.f32.mrf.mxu0  ;;  %4208 = vmatpush2.bf16.msra.mxu0 %v5298_v3 }
 0x542   : > { %v3244_v35 = vadd.f32 %v3243_v61, %v5978_v13  ;;  %v3502_v26 = vpack.c.bf16 %v3421_v4, %v3419_v62  ;;  %v3359_v46 = vadd.f32 %v6294_v49, %v3242_v45  ;;  %v3422_v28 = vmax.f32 %v3358_v16, 0.0 }
 0x543   : > { %v3245_v52 = vpop.f32.mrf.mxu0 }
 0x544   : > { %v3360_v50 = vadd.f32 %v6298_v42, %v3244_v35  ;;  %v3246_v10 = vadd.f32 %v3245_v52, %v5980_v36  ;;  %3789 = vmatprep.mubr.bf16.mxu1 %v3502_v26  ;;  %v3423_v39 = vmax.f32 %v3359_v46, 0.0  ;;  %v6739_v35 = vld [vmem:[#allocation14_spill] sm:$0xff]  ;;  %v6740_v52 = vld [vmem:[#allocation16_spill] sm:$0xff] }
 0x545   : > { %v3249_v6 = vpop.f32.mrf.mxu0  ;;  %3790 = vmatmul.mubr.bf16.gmra.mxu1 %v3501_v58 }
 0x546   : > { %v3361_v34 = vadd.f32 %v6294_v49, %v3246_v10  ;;  %v3424_v37 = vmax.f32 %v3360_v50, 0.0  ;;  %v3250_v12 = vadd.f32 %v3249_v6, %v5986_v14 }
 0x547   : > { %v3251_v44 = vpop.f32.mrf.mxu0 }
 0x548   : > { %v3425_v13 = vmax.f32 %v3361_v34, 0.0  ;;  %v3252_v29 = vadd.f32 %v3251_v44, %v5988_v23  ;;  %v3503_v5 = vpack.c.bf16 %v3424_v37, %v3422_v28  ;;  %v3362_v40 = vadd.f32 %v6298_v42, %v3250_v12  ;;  %v6741_v37 = vld [vmem:[#allocation17_spill] sm:$0xff] }
 0x549   : > { %v3253_v48 = vpop.f32.mrf.mxu0 }
 0x54a   : > { %v3254_v21 = vadd.f32 %v3253_v48, %v6732_v59  ;;  %v3504_v36 = vpack.c.bf16 %v3425_v13, %v3423_v39  ;;  %v3363_v24 = vadd.f32 %v6294_v49, %v3252_v29  ;;  %v3426_v25 = vmax.f32 %v3362_v40, 0.0 }
 0x54b   : > { %v3255_v2 = vpop.f32.mrf.mxu0 }
 0x54c   : > { %v3364_v54 = vadd.f32 %v6298_v42, %v3254_v21  ;;  %v3256_v56 = vadd.f32 %v3255_v2, %v6733_v31  ;;  %3799 = vmatprep.mubr.bf16.mxu1 %v3504_v36  ;;  %v3427_v22 = vmax.f32 %v3363_v24, 0.0  ;;  %v6742_v21 = vld [vmem:[#allocation19_spill] sm:$0xff]  ;;  %v6743_v2 = vld [vmem:[#allocation18_spill] sm:$0xff]  ;;  %v6744_v31 = vld [vmem:[#allocation20_spill] sm:$0xff] }
 0x54d   : > { %v3259_v55 = vpop.f32.mrf.mxu0  ;;  %3800 = vmatmul.mubr.bf16.gmra.mxu1 %v3503_v5 }
 0x54e   : > { %v3365_v23 = vadd.f32 %v6294_v49, %v3256_v56  ;;  %v3428_v14 = vmax.f32 %v3364_v54, 0.0  ;;  %v3260_v8 = vadd.f32 %v3259_v55, %v6735_v57 }
 0x54f   : > { %v3261_v18 = vpop.f32.mrf.mxu0 }
 0x550   : > { %v3429_v53 = vmax.f32 %v3365_v23, 0.0  ;;  %v3262_v47 = vadd.f32 %v3261_v18, %v6734_v60  ;;  %v3505_v1 = vpack.c.bf16 %v3428_v14, %v3426_v25  ;;  %v3366_v19 = vadd.f32 %v6298_v42, %v3260_v8 }
 0x551   : > { %v3263_v63 = vpop.f32.mrf.mxu0 }
 0x552   : > { %v3264_v7 = vadd.f32 %v3263_v63, %v6736_v32  ;;  %v3506_v11 = vpack.c.bf16 %v3429_v53, %v3427_v22  ;;  %v3367_v17 = vadd.f32 %v6294_v49, %v3262_v47  ;;  %v3430_v61 = vmax.f32 %v3366_v19, 0.0  ;;  %v6745_v22 = vld [vmem:[#allocation21_spill] sm:$0xff] }
 0x553   : > { %v3265_v27 = vpop.f32.mrf.mxu0 }
 0x554   : > { %v3368_v38 = vadd.f32 %v6298_v42, %v3264_v7  ;;  %v3266_v33 = vadd.f32 %v3265_v27, %v6737_v15  ;;  %3809 = vmatprep.mubr.bf16.mxu1 %v3506_v11  ;;  %v3431_v4 = vmax.f32 %v3367_v17, 0.0  ;;  %v6746_v7 = vld [vmem:[#allocation23_spill] sm:$0xff]  ;;  %v6747_v27 = vld [vmem:[#allocation22_spill] sm:$0xff]  ;;  %v6748_v15 = vld [vmem:[#allocation24_spill] sm:$0xff] }
 0x555   : > { %v3269_v0 = vpop.f32.mrf.mxu0  ;;  %3810 = vmatmul.mubr.bf16.gmra.mxu1 %v3505_v1 }
 0x556   : > { %v3369_v9 = vadd.f32 %v6294_v49, %v3266_v33  ;;  %v3432_v30 = vmax.f32 %v3368_v38, 0.0  ;;  %v3270_v26 = vadd.f32 %v3269_v0, %v6739_v35 }
 0x557   : > { %v3271_v62 = vpop.f32.mrf.mxu0 }
 0x558   : > { %v3433_v45 = vmax.f32 %v3369_v9, 0.0  ;;  %v3272_v41 = vadd.f32 %v3271_v62, %v6738_v43  ;;  %v3507_v10 = vpack.c.bf16 %v3432_v30, %v3430_v61  ;;  %v3370_v39 = vadd.f32 %v6298_v42, %v3270_v26  ;;  %v6749_v30 = vld [vmem:[#allocation25_spill] sm:$0xff] }
 0x559   : > { %v3273_v58 = vpop.f32.mrf.mxu0 }
 0x55a   : > { %v3274_v46 = vadd.f32 %v3273_v58, %v6740_v52  ;;  %v3508_v50 = vpack.c.bf16 %v3433_v45, %v3431_v4  ;;  %v3371_v6 = vadd.f32 %v6294_v49, %v3272_v41  ;;  %v3434_v5 = vmax.f32 %v3370_v39, 0.0  ;;  %v6750_v58 = vld [vmem:[#allocation27_spill] sm:$0xff] }
 0x55b   : > { %v3275_v16 = vpop.f32.mrf.mxu0 }
 0x55c   : > { %v3372_v34 = vadd.f32 %v6298_v42, %v3274_v46  ;;  %v3276_v44 = vadd.f32 %v3275_v16, %v6741_v37  ;;  %3819 = vmatprep.mubr.bf16.mxu1 %v3508_v50  ;;  %v3435_v48 = vmax.f32 %v3371_v6, 0.0  ;;  %v6751_v50 = vld [vmem:[#allocation26_spill] sm:$0xff]  ;;  %v6752_v6 = vld [vmem:[#allocation28_spill] sm:$0xff] }
 0x55d   : > { %v3279_v13 = vpop.f32.mrf.mxu0  ;;  %3820 = vmatmul.mubr.bf16.gmra.mxu1 %v3507_v10 }
 0x55e   : > { %v3373_v29 = vadd.f32 %v6294_v49, %v3276_v44  ;;  %v3436_v28 = vmax.f32 %v3372_v34, 0.0  ;;  %v3280_v24 = vadd.f32 %v3279_v13, %v6743_v2 }
 0x55f   : > { %v3281_v12 = vpop.f32.mrf.mxu0 }
 0x560   : > { %v3437_v59 = vmax.f32 %v3373_v29, 0.0  ;;  %v3282_v36 = vadd.f32 %v3281_v12, %v6742_v21  ;;  %v3509_v55 = vpack.c.bf16 %v3436_v28, %v3434_v5  ;;  %v3374_v60 = vadd.f32 %v6298_v42, %v3280_v24  ;;  %v6753_v28 = vld [vmem:[#allocation29_spill] sm:$0xff] }
 0x561   : > { %v3283_v54 = vpop.f32.mrf.mxu0 }
 0x562   : > { %v3284_v56 = vadd.f32 %v3283_v54, %v6744_v31  ;;  %v3510_v40 = vpack.c.bf16 %v3437_v59, %v3435_v48  ;;  %v3375_v14 = vadd.f32 %v6294_v49, %v3282_v36  ;;  %v3438_v1 = vmax.f32 %v3374_v60, 0.0  ;;  %v6754_v54 = vld [vmem:[#allocation31_spill] sm:$0xff] }
 0x563   : > { %v3285_v23 = vpop.f32.mrf.mxu0 }
 0x564   : > { %v3376_v18 = vadd.f32 %v6298_v42, %v3284_v56  ;;  %v3286_v53 = vadd.f32 %v3285_v23, %v6745_v22  ;;  %3829 = vmatprep.mubr.bf16.mxu1 %v3510_v40  ;;  %v3439_v63 = vmax.f32 %v3375_v14, 0.0  ;;  %v6755_v40 = vld [vmem:[#allocation30_spill] sm:$0xff]  ;;  %v6756_v14 = vld [vmem:[#allocation32_spill] sm:$0xff] }
 0x565   : > { %v3289_v47 = vpop.f32.mrf.mxu0  ;;  %3830 = vmatmul.mubr.bf16.gmra.mxu1 %v3509_v55 }
 0x566   : > { %v3377_v25 = vadd.f32 %v6294_v49, %v3286_v53  ;;  %v3440_v57 = vmax.f32 %v3376_v18, 0.0  ;;  %v3290_v17 = vadd.f32 %v3289_v47, %v6747_v27 }
 0x567   : > { %v3291_v8 = vpop.f32.mrf.mxu0 }
 0x568   : > { %v3441_v32 = vmax.f32 %v3377_v25, 0.0  ;;  %v3292_v11 = vadd.f32 %v3291_v8, %v6746_v7  ;;  %v3511_v0 = vpack.c.bf16 %v3440_v57, %v3438_v1  ;;  %v3378_v4 = vadd.f32 %v6298_v42, %v3290_v17  ;;  %v6757_v57 = vld [vmem:[#allocation33_spill] sm:$0xff] }
 0x569   : > { %v3293_v38 = vpop.f32.mrf.mxu0 }
 0x56a   : > { %v3294_v33 = vadd.f32 %v3293_v38, %v6748_v15  ;;  %v3512_v19 = vpack.c.bf16 %v3441_v32, %v3439_v63  ;;  %v3379_v9 = vadd.f32 %v6294_v49, %v3292_v11  ;;  %v3442_v46 = vmax.f32 %v3378_v4, 0.0 }
 0x56b   : > { %v3295_v20 = vpop.f32.mrf.mxu0  ;;  %v3521_v15 = vsub.s32 6, %v5687_v51 }
 0x56c   : > { %v3380_v3 = vadd.f32 %v6298_v42, %v3294_v33  ;;  %v3296_v62 = vadd.f32 %v3295_v20, %v6749_v30  ;;  %3839 = vmatprep.mubr.bf16.mxu1 %v3512_v19  ;;  %v3443_v35 = vmax.f32 %v3379_v9, 0.0  ;;  %v6430_v19 = vld [vmem:[%s6701_s3 + $0x8] sm:$0xff] }
 0x56d   : > { %v3299_v45 = vpop.f32.mrf.mxu0  ;;  %3840 = vmatmul.mubr.bf16.gmra.mxu1 %v3511_v0 }
 0x56e   : > { %v3381_v43 = vadd.f32 %v6294_v49, %v3296_v62  ;;  %v3444_v41 = vmax.f32 %v3380_v3, 0.0  ;;  %v3300_v10 = vadd.f32 %v3299_v45, %v6751_v50 }
 0x56f   : > { %v3301_v61 = vpop.f32.mrf.mxu0 }
 0x570   : > { %v3445_v26 = vmax.f32 %v3381_v43, 0.0  ;;  %v3302_v52 = vadd.f32 %v3301_v61, %v6750_v58  ;;  %v3513_v44 = vpack.c.bf16 %v3444_v41, %v3442_v46  ;;  %v3382_v48 = vadd.f32 %v6298_v42, %v3300_v10 }
 0x571   : > { %v3303_v16 = vpop.f32.mrf.mxu0 }
 0x572   : > { %v3304_v34 = vadd.f32 %v3303_v16, %v6752_v6  ;;  %v3514_v37 = vpack.c.bf16 %v3445_v26, %v3443_v35  ;;  %v3383_v13 = vadd.f32 %v6294_v49, %v3302_v52  ;;  %v3446_v56 = vmax.f32 %v3382_v48, 0.0 }
 0x573   : > { %v3305_v39 = vpop.f32.mrf.mxu0 }
 0x574   : > { %v3384_v29 = vadd.f32 %v6298_v42, %v3304_v34  ;;  %v3306_v12 = vadd.f32 %v3305_v39, %v6753_v28  ;;  %3849 = vmatprep.mubr.bf16.mxu1 %v3514_v37  ;;  %v3447_v2 = vmax.f32 %v3383_v13, 0.0 }
 0x575   : > { %v3309_v59 = vpop.f32.mrf.mxu0  ;;  %3850 = vmatmul.mubr.bf16.gmra.mxu1 %v3513_v44 }
 0x576   : > { %v3385_v21 = vadd.f32 %v6294_v49, %v3306_v12  ;;  %v3448_v36 = vmax.f32 %v3384_v29, 0.0  ;;  %v3310_v55 = vadd.f32 %v3309_v59, %v6755_v40 }
 0x577   : > { %v3311_v5 = vpop.f32.mrf.mxu0 }
 0x578   : > { %v3449_v24 = vmax.f32 %v3385_v21, 0.0  ;;  %v3312_v31 = vadd.f32 %v3311_v5, %v6754_v54  ;;  %v3515_v53 = vpack.c.bf16 %v3448_v36, %v3446_v56  ;;  %v3386_v63 = vadd.f32 %v6298_v42, %v3310_v55 }
 0x579   : > { %v3313_v23 = vpop.f32.mrf.mxu0 }
 0x57a   : > { %v3314_v18 = vadd.f32 %v3313_v23, %v6756_v14  ;;  %v3516_v22 = vpack.c.bf16 %v3449_v24, %v3447_v2  ;;  %v3387_v47 = vadd.f32 %v6294_v49, %v3312_v31  ;;  %v3450_v27 = vmax.f32 %v3386_v63, 0.0 }
 0x57b   : > { %v3315_v60 = vpop.f32.mrf.mxu0 }
 0x57c   : > { %v3388_v25 = vadd.f32 %v6298_v42, %v3314_v18  ;;  %v3316_v8 = vadd.f32 %v3315_v60, %v6757_v57  ;;  %3859 = vmatprep.mubr.bf16.mxu1 %v3516_v22  ;;  %v3451_v11 = vmax.f32 %v3387_v47, 0.0  ;;  %v6433_v42 = vrot.slane %v6430_v19, %v3521_v15 }
 0x57d   : > { %3860 = vmatmul.mubr.bf16.gmra.mxu1 %v3515_v53 }
 0x57e   : > { %v3389_v32 = vadd.f32 %v6294_v49, %v3316_v8  ;;  %v3452_v7 = vmax.f32 %v3388_v25, 0.0  ;;  %v6438_v49 = vld [vmem:[%s6701_s3] sm:$0xff] }
 0x57f   : > { %v6441_v0 = vrot.slane %v6438_v49, %v3521_v15 }
 0x580   : > { %v3453_v1 = vmax.f32 %v3389_v32, 0.0  ;;  %v3517_v38 = vpack.c.bf16 %v3452_v7, %v3450_v27 }
 0x582   : > { %v3518_v17 = vpack.c.bf16 %v3453_v1, %v3451_v11 }
 0x584   : > { %3869 = vmatprep.mubr.bf16.mxu1 %v3518_v17 }
 0x585   : > { %3870 = vmatmul.mubr.bf16.gmra.mxu1 %v3517_v38 }
 0x5cd   : > { %v3721_v33 = vpop.f32.mrf.mxu1 }
 0x5ce   : > { %v3722_v62 = vadd.f32 %v3721_v33, %v6441_v0 }
 0x5cf   : > { %v3723_v20 = vpop.f32.mrf.mxu1 }
 0x5d0   : > { %v3724_v3 = vadd.f32 %v3723_v20, %v6433_v42  ;;  %v3880_v26 = vmax.f32 %v3722_v62, 0.0 }
 0x5d1   : > { %v3725_v9 = vpop.f32.mrf.mxu1 }
 0x5d2   : > { %v3726_v30 = vadd.f32 %v3725_v9, %v6441_v0  ;;  %v3881_v61 = vmax.f32 %v3724_v3, 0.0 }
 0x5d3   : > { %v3727_v4 = vpop.f32.mrf.mxu1 }
 0x5d4   : > { %v3728_v45 = vadd.f32 %v3727_v4, %v6433_v42  ;;  %v3882_v43 = vmax.f32 %v3726_v30, 0.0 }
 0x5d5   : > { %v3731_v41 = vpop.f32.mrf.mxu1 }
 0x5d6   : > { %v3883_v35 = vmax.f32 %v3728_v45, 0.0  ;;  %v3977_v46 = vpack.c.bf16 %v3882_v43, %v3880_v26  ;;  %v3732_v6 = vadd.f32 %v3731_v41, %v6441_v0 }
 0x5d7   : > { %v3733_v58 = vpop.f32.mrf.mxu1 }
 0x5d8   : > { %v3978_v52 = vpack.c.bf16 %v3883_v35, %v3881_v61  ;;  %v3734_v10 = vadd.f32 %v3733_v58, %v6433_v42  ;;  %v3884_v28 = vmax.f32 %v3732_v6, 0.0 }
 0x5d9   : > { %v3735_v50 = vpop.f32.mrf.mxu1 }
 0x5da   : > { %v3736_v16 = vadd.f32 %v3735_v50, %v6441_v0  ;;  %4209 = vmatprep.mubr.bf16.mxu0 %v3978_v52  ;;  %v3885_v13 = vmax.f32 %v3734_v10, 0.0 }
 0x5db   : > { %v3737_v34 = vpop.f32.mrf.mxu1  ;;  %4210 = vmatmul.mubr.bf16.vlgmr.msra.gmra.mxu0 %v3977_v46 }
 0x5dc   : > { %v3738_v37 = vadd.f32 %v3737_v34, %v6433_v42  ;;  %v3886_v44 = vmax.f32 %v3736_v16, 0.0 }
 0x5dd   : > { %v3741_v39 = vpop.f32.mrf.mxu1 }
 0x5de   : > { %v3887_v29 = vmax.f32 %v3738_v37, 0.0  ;;  %v3979_v59 = vpack.c.bf16 %v3886_v44, %v3884_v28  ;;  %v3742_v2 = vadd.f32 %v3741_v39, %v6441_v0 }
 0x5df   : > { %v3743_v12 = vpop.f32.mrf.mxu1 }
 0x5e0   : > { %v3980_v48 = vpack.c.bf16 %v3887_v29, %v3885_v13  ;;  %v3744_v36 = vadd.f32 %v3743_v12, %v6433_v42  ;;  %v3888_v23 = vmax.f32 %v3742_v2, 0.0 }
 0x5e1   : > { %v3745_v21 = vpop.f32.mrf.mxu1 }
 0x5e2   : > { %v3746_v5 = vadd.f32 %v3745_v21, %v6441_v0  ;;  %4219 = vmatprep.mubr.bf16.mxu0 %v3980_v48  ;;  %v3889_v40 = vmax.f32 %v3744_v36, 0.0 }
 0x5e3   : > { %v3747_v24 = vpop.f32.mrf.mxu1  ;;  %4220 = vmatmul.mubr.bf16.gmra.mxu0 %v3979_v59 }
 0x5e4   : > { %v3748_v54 = vadd.f32 %v3747_v24, %v6433_v42  ;;  %v3890_v31 = vmax.f32 %v3746_v5, 0.0 }
 0x5e5   : > { %v3751_v56 = vpop.f32.mrf.mxu1 }
 0x5e6   : > { %v3891_v55 = vmax.f32 %v3748_v54, 0.0  ;;  %v3981_v22 = vpack.c.bf16 %v3890_v31, %v3888_v23  ;;  %v3752_v25 = vadd.f32 %v3751_v56, %v6441_v0 }
 0x5e7   : > { %v3753_v14 = vpop.f32.mrf.mxu1 }
 0x5e8   : > { %v3982_v18 = vpack.c.bf16 %v3891_v55, %v3889_v40  ;;  %v3754_v60 = vadd.f32 %v3753_v14, %v6433_v42  ;;  %v3892_v1 = vmax.f32 %v3752_v25, 0.0 }
 0x5e9   : > { %v3755_v53 = vpop.f32.mrf.mxu1 }
 0x5ea   : > { %v3756_v47 = vadd.f32 %v3755_v53, %v6441_v0  ;;  %4229 = vmatprep.mubr.bf16.mxu0 %v3982_v18  ;;  %v3893_v7 = vmax.f32 %v3754_v60, 0.0 }
 0x5eb   : > { %v3757_v57 = vpop.f32.mrf.mxu1  ;;  %4230 = vmatmul.mubr.bf16.gmra.mxu0 %v3981_v22 }
 0x5ec   : > { %v3758_v8 = vadd.f32 %v3757_v57, %v6433_v42  ;;  %v3894_v63 = vmax.f32 %v3756_v47, 0.0 }
 0x5ed   : > { %v3761_v32 = vpop.f32.mrf.mxu1 }
 0x5ee   : > { %v3895_v11 = vmax.f32 %v3758_v8, 0.0  ;;  %v3983_v38 = vpack.c.bf16 %v3894_v63, %v3892_v1  ;;  %v3762_v9 = vadd.f32 %v3761_v32, %v6441_v0 }
 0x5ef   : > { %v3763_v27 = vpop.f32.mrf.mxu1 }
 0x5f0   : > { %v3984_v17 = vpack.c.bf16 %v3895_v11, %v3893_v7  ;;  %v3764_v33 = vadd.f32 %v3763_v27, %v6433_v42  ;;  %v3896_v41 = vmax.f32 %v3762_v9, 0.0 }
 0x5f1   : > { %v3765_v15 = vpop.f32.mrf.mxu1 }
 0x5f2   : > { %v3766_v20 = vadd.f32 %v3765_v15, %v6441_v0  ;;  %4239 = vmatprep.mubr.bf16.mxu0 %v3984_v17  ;;  %v3897_v45 = vmax.f32 %v3764_v33, 0.0 }
 0x5f3   : > { %v3767_v3 = vpop.f32.mrf.mxu1  ;;  %4240 = vmatmul.mubr.bf16.gmra.mxu0 %v3983_v38 }
 0x5f4   : > { %v3768_v30 = vadd.f32 %v3767_v3, %v6433_v42  ;;  %v3898_v62 = vmax.f32 %v3766_v20, 0.0 }
 0x5f5   : > { %v3771_v4 = vpop.f32.mrf.mxu1 }
 0x5f6   : > { %v3899_v43 = vmax.f32 %v3768_v30, 0.0  ;;  %v3985_v26 = vpack.c.bf16 %v3898_v62, %v3896_v41  ;;  %v3772_v50 = vadd.f32 %v3771_v4, %v6441_v0 }
 0x5f7   : > { %v3773_v61 = vpop.f32.mrf.mxu1 }
 0x5f8   : > { %v3986_v35 = vpack.c.bf16 %v3899_v43, %v3897_v45  ;;  %v3774_v52 = vadd.f32 %v3773_v61, %v6433_v42  ;;  %v3900_v39 = vmax.f32 %v3772_v50, 0.0 }
 0x5f9   : > { %v3775_v58 = vpop.f32.mrf.mxu1 }
 0x5fa   : > { %v3776_v46 = vadd.f32 %v3775_v58, %v6441_v0  ;;  %4249 = vmatprep.mubr.bf16.mxu0 %v3986_v35  ;;  %v3901_v37 = vmax.f32 %v3774_v52, 0.0 }
 0x5fb   : > { %v3777_v10 = vpop.f32.mrf.mxu1  ;;  %4250 = vmatmul.mubr.bf16.gmra.mxu0 %v3985_v26 }
 0x5fc   : > { %v3778_v16 = vadd.f32 %v3777_v10, %v6433_v42  ;;  %v3902_v6 = vmax.f32 %v3776_v46, 0.0 }
 0x5fd   : > { %v3781_v34 = vpop.f32.mrf.mxu1 }
 0x5fe   : > { %v3903_v44 = vmax.f32 %v3778_v16, 0.0  ;;  %v3987_v28 = vpack.c.bf16 %v3902_v6, %v3900_v39  ;;  %v3782_v21 = vadd.f32 %v3781_v34, %v6441_v0 }
 0x5ff   : > { %v3783_v13 = vpop.f32.mrf.mxu1 }
 0x600   : > { %v3988_v29 = vpack.c.bf16 %v3903_v44, %v3901_v37  ;;  %v3784_v48 = vadd.f32 %v3783_v13, %v6433_v42  ;;  %v3904_v56 = vmax.f32 %v3782_v21, 0.0 }
 0x601   : > { %v3785_v12 = vpop.f32.mrf.mxu1 }
 0x602   : > { %v3786_v59 = vadd.f32 %v3785_v12, %v6441_v0  ;;  %4259 = vmatprep.mubr.bf16.mxu0 %v3988_v29  ;;  %v3905_v54 = vmax.f32 %v3784_v48, 0.0 }
 0x603   : > { %v3787_v36 = vpop.f32.mrf.mxu1  ;;  %4260 = vmatmul.mubr.bf16.gmra.mxu0 %v3987_v28 }
 0x604   : > { %v3788_v5 = vadd.f32 %v3787_v36, %v6433_v42  ;;  %v3906_v2 = vmax.f32 %v3786_v59, 0.0 }
 0x605   : > { %v3791_v24 = vpop.f32.mrf.mxu1 }
 0x606   : > { %v3907_v31 = vmax.f32 %v3788_v5, 0.0  ;;  %v3989_v23 = vpack.c.bf16 %v3906_v2, %v3904_v56  ;;  %v3792_v53 = vadd.f32 %v3791_v24, %v6441_v0 }
 0x607   : > { %v3793_v40 = vpop.f32.mrf.mxu1 }
 0x608   : > { %v3990_v55 = vpack.c.bf16 %v3907_v31, %v3905_v54  ;;  %v3794_v18 = vadd.f32 %v3793_v40, %v6433_v42  ;;  %v3908_v32 = vmax.f32 %v3792_v53, 0.0 }
 0x609   : > { %v3795_v14 = vpop.f32.mrf.mxu1 }
 0x60a   : > { %v3796_v22 = vadd.f32 %v3795_v14, %v6441_v0  ;;  %4269 = vmatprep.mubr.bf16.mxu0 %v3990_v55  ;;  %v3909_v8 = vmax.f32 %v3794_v18, 0.0 }
 0x60b   : > { %v3797_v60 = vpop.f32.mrf.mxu1  ;;  %4270 = vmatmul.mubr.bf16.gmra.mxu0 %v3989_v23 }
 0x60c   : > { %v3798_v47 = vadd.f32 %v3797_v60, %v6433_v42  ;;  %v3910_v25 = vmax.f32 %v3796_v22, 0.0 }
 0x60d   : > { %v3801_v57 = vpop.f32.mrf.mxu1 }
 0x60e   : > { %v3911_v63 = vmax.f32 %v3798_v47, 0.0  ;;  %v3991_v1 = vpack.c.bf16 %v3910_v25, %v3908_v32  ;;  %v3802_v15 = vadd.f32 %v3801_v57, %v6441_v0 }
 0x60f   : > { %v3803_v7 = vpop.f32.mrf.mxu1 }
 0x610   : > { %v3992_v11 = vpack.c.bf16 %v3911_v63, %v3909_v8  ;;  %v3804_v17 = vadd.f32 %v3803_v7, %v6433_v42  ;;  %v3912_v4 = vmax.f32 %v3802_v15, 0.0 }
 0x611   : > { %v3805_v27 = vpop.f32.mrf.mxu1 }
 0x612   : > { %v3806_v38 = vadd.f32 %v3805_v27, %v6441_v0  ;;  %4279 = vmatprep.mubr.bf16.mxu0 %v3992_v11  ;;  %v3913_v30 = vmax.f32 %v3804_v17, 0.0 }
 0x613   : > { %v3807_v33 = vpop.f32.mrf.mxu1  ;;  %4280 = vmatmul.mubr.bf16.gmra.mxu0 %v3991_v1 }
 0x614   : > { %v3808_v20 = vadd.f32 %v3807_v33, %v6433_v42  ;;  %v3914_v9 = vmax.f32 %v3806_v38, 0.0 }
 0x615   : > { %v3811_v3 = vpop.f32.mrf.mxu1 }
 0x616   : > { %v3915_v62 = vmax.f32 %v3808_v20, 0.0  ;;  %v3993_v41 = vpack.c.bf16 %v3914_v9, %v3912_v4  ;;  %v3812_v58 = vadd.f32 %v3811_v3, %v6441_v0 }
 0x617   : > { %v3813_v45 = vpop.f32.mrf.mxu1 }
 0x618   : > { %v3994_v43 = vpack.c.bf16 %v3915_v62, %v3913_v30  ;;  %v3814_v35 = vadd.f32 %v3813_v45, %v6433_v42  ;;  %v3916_v34 = vmax.f32 %v3812_v58, 0.0 }
 0x619   : > { %v3815_v61 = vpop.f32.mrf.mxu1 }
 0x61a   : > { %v3816_v26 = vadd.f32 %v3815_v61, %v6441_v0  ;;  %4289 = vmatprep.mubr.bf16.mxu0 %v3994_v43  ;;  %v3917_v16 = vmax.f32 %v3814_v35, 0.0 }
 0x61b   : > { %v3817_v52 = vpop.f32.mrf.mxu1  ;;  %4290 = vmatmul.mubr.bf16.gmra.mxu0 %v3993_v41 }
 0x61c   : > { %v3818_v46 = vadd.f32 %v3817_v52, %v6433_v42  ;;  %v3918_v50 = vmax.f32 %v3816_v26, 0.0 }
 0x61d   : > { %v3821_v10 = vpop.f32.mrf.mxu1 }
 0x61e   : > { %v3919_v6 = vmax.f32 %v3818_v46, 0.0  ;;  %v3995_v39 = vpack.c.bf16 %v3918_v50, %v3916_v34  ;;  %v3822_v12 = vadd.f32 %v3821_v10, %v6441_v0 }
 0x61f   : > { %v3823_v37 = vpop.f32.mrf.mxu1 }
 0x620   : > { %v3996_v44 = vpack.c.bf16 %v3919_v6, %v3917_v16  ;;  %v3824_v29 = vadd.f32 %v3823_v37, %v6433_v42  ;;  %v3920_v24 = vmax.f32 %v3822_v12, 0.0 }
 0x621   : > { %v3825_v13 = vpop.f32.mrf.mxu1 }
 0x622   : > { %v3826_v28 = vadd.f32 %v3825_v13, %v6441_v0  ;;  %4299 = vmatprep.mubr.bf16.mxu0 %v3996_v44  ;;  %v3921_v5 = vmax.f32 %v3824_v29, 0.0 }
 0x623   : > { %v3827_v48 = vpop.f32.mrf.mxu1  ;;  %4300 = vmatmul.mubr.bf16.gmra.mxu0 %v3995_v39 }
 0x624   : > { %v3828_v59 = vadd.f32 %v3827_v48, %v6433_v42  ;;  %v3922_v21 = vmax.f32 %v3826_v28, 0.0 }
 0x625   : > { %v3831_v36 = vpop.f32.mrf.mxu1 }
 0x626   : > { %v3923_v2 = vmax.f32 %v3828_v59, 0.0  ;;  %v3997_v56 = vpack.c.bf16 %v3922_v21, %v3920_v24  ;;  %v3832_v14 = vadd.f32 %v3831_v36, %v6441_v0 }
 0x627   : > { %v3833_v54 = vpop.f32.mrf.mxu1 }
 0x628   : > { %v3998_v31 = vpack.c.bf16 %v3923_v2, %v3921_v5  ;;  %v3834_v55 = vadd.f32 %v3833_v54, %v6433_v42  ;;  %v3924_v57 = vmax.f32 %v3832_v14, 0.0 }
 0x629   : > { %v3835_v40 = vpop.f32.mrf.mxu1 }
 0x62a   : > { %v3836_v23 = vadd.f32 %v3835_v40, %v6441_v0  ;;  %4309 = vmatprep.mubr.bf16.mxu0 %v3998_v31  ;;  %v3925_v47 = vmax.f32 %v3834_v55, 0.0 }
 0x62b   : > { %v3837_v18 = vpop.f32.mrf.mxu1  ;;  %4310 = vmatmul.mubr.bf16.gmra.mxu0 %v3997_v56 }
 0x62c   : > { %v3838_v22 = vadd.f32 %v3837_v18, %v6433_v42  ;;  %v3926_v53 = vmax.f32 %v3836_v23, 0.0 }
 0x62d   : > { %v3841_v60 = vpop.f32.mrf.mxu1 }
 0x62e   : > { %v3927_v25 = vmax.f32 %v3838_v22, 0.0  ;;  %v3999_v32 = vpack.c.bf16 %v3926_v53, %v3924_v57  ;;  %v3842_v27 = vadd.f32 %v3841_v60, %v6441_v0 }
 0x62f   : > { %v3843_v8 = vpop.f32.mrf.mxu1 }
 0x630   : > { %v4000_v63 = vpack.c.bf16 %v3927_v25, %v3925_v47  ;;  %v3844_v11 = vadd.f32 %v3843_v8, %v6433_v42  ;;  %v3928_v3 = vmax.f32 %v3842_v27, 0.0  ;;  %v4011_v25 = vsub.s32 7, %v5687_v51 }
 0x631   : > { %v3845_v7 = vpop.f32.mrf.mxu1 }
 0x632   : > { %v3846_v1 = vadd.f32 %v3845_v7, %v6441_v0  ;;  %4319 = vmatprep.mubr.bf16.mxu0 %v4000_v63  ;;  %v3929_v20 = vmax.f32 %v3844_v11, 0.0  ;;  %v6510_v57 = vrot.slane %v6438_v49, %v4011_v25 }
 0x633   : > { %v3847_v17 = vpop.f32.mrf.mxu1  ;;  %4320 = vmatmul.mubr.bf16.gmra.mxu0 %v3999_v32 }
 0x634   : > { %v3848_v38 = vadd.f32 %v3847_v17, %v6433_v42  ;;  %v3930_v15 = vmax.f32 %v3846_v1, 0.0 }
 0x635   : > { %v3851_v33 = vpop.f32.mrf.mxu1 }
 0x636   : > { %v3931_v9 = vmax.f32 %v3848_v38, 0.0  ;;  %v4001_v4 = vpack.c.bf16 %v3930_v15, %v3928_v3  ;;  %v3852_v61 = vadd.f32 %v3851_v33, %v6441_v0 }
 0x637   : > { %v3853_v30 = vpop.f32.mrf.mxu1 }
 0x638   : > { %v4002_v62 = vpack.c.bf16 %v3931_v9, %v3929_v20  ;;  %v3854_v43 = vadd.f32 %v3853_v30, %v6433_v42  ;;  %v3932_v10 = vmax.f32 %v3852_v61, 0.0 }
 0x639   : > { %v3855_v45 = vpop.f32.mrf.mxu1 }
 0x63a   : > { %v3856_v41 = vadd.f32 %v3855_v45, %v6441_v0  ;;  %4329 = vmatprep.mubr.bf16.mxu0 %v4002_v62  ;;  %v3933_v46 = vmax.f32 %v3854_v43, 0.0 }
 0x63b   : > { %v3857_v35 = vpop.f32.mrf.mxu1  ;;  %4330 = vmatmul.mubr.bf16.gmra.mxu0 %v4001_v4 }
 0x63c   : > { %v3858_v26 = vadd.f32 %v3857_v35, %v6433_v42  ;;  %v3934_v58 = vmax.f32 %v3856_v41, 0.0 }
 0x63d   : > { %v3861_v52 = vpop.f32.mrf.mxu1 }
 0x63e   : > { %v3935_v50 = vmax.f32 %v3858_v26, 0.0  ;;  %v4003_v34 = vpack.c.bf16 %v3934_v58, %v3932_v10  ;;  %v3862_v13 = vadd.f32 %v3861_v52, %v6441_v0 }
 0x63f   : > { %v3863_v16 = vpop.f32.mrf.mxu1 }
 0x640   : > { %v4004_v6 = vpack.c.bf16 %v3935_v50, %v3933_v46  ;;  %v3864_v44 = vadd.f32 %v3863_v16, %v6433_v42  ;;  %v3936_v36 = vmax.f32 %v3862_v13, 0.0 }
 0x641   : > { %v3865_v37 = vpop.f32.mrf.mxu1 }
 0x642   : > { %v3866_v39 = vadd.f32 %v3865_v37, %v6441_v0  ;;  %4339 = vmatprep.mubr.bf16.mxu0 %v4004_v6  ;;  %v3937_v59 = vmax.f32 %v3864_v44, 0.0 }
 0x643   : > { %v3867_v29 = vpop.f32.mrf.mxu1  ;;  %4340 = vmatmul.mubr.bf16.gmra.mxu0 %v4003_v34 }
 0x644   : > { %v3868_v28 = vadd.f32 %v3867_v29, %v6433_v42  ;;  %v3938_v12 = vmax.f32 %v3866_v39, 0.0 }
 0x645   : > { %v3871_v48 = vpop.f32.mrf.mxu1 }
 0x646   : > { %v3939_v21 = vmax.f32 %v3868_v28, 0.0  ;;  %v4005_v24 = vpack.c.bf16 %v3938_v12, %v3936_v36  ;;  %v3872_v40 = vadd.f32 %v3871_v48, %v6441_v0 }
 0x647   : > { %v3873_v5 = vpop.f32.mrf.mxu1 }
 0x648   : > { %v4006_v2 = vpack.c.bf16 %v3939_v21, %v3937_v59  ;;  %v3874_v31 = vadd.f32 %v3873_v5, %v6433_v42  ;;  %v3940_v53 = vmax.f32 %v3872_v40, 0.0 }
 0x649   : > { %v3875_v54 = vpop.f32.mrf.mxu1 }
 0x64a   : > { %v3876_v56 = vadd.f32 %v3875_v54, %v6441_v0  ;;  %4349 = vmatprep.mubr.bf16.mxu0 %v4006_v2  ;;  %v3941_v18 = vmax.f32 %v3874_v31, 0.0  ;;  %v6515_v0 = vrot.slane %v6430_v19, %v4011_v25 }
 0x64b   : > { %v3877_v55 = vpop.f32.mrf.mxu1  ;;  %4350 = vmatmul.mubr.bf16.gmra.mxu0 %v4005_v24 }
 0x64c   : > { %v3878_v23 = vadd.f32 %v3877_v55, %v6433_v42  ;;  %v3942_v14 = vmax.f32 %v3876_v56, 0.0 }
 0x64e   : > { %v3943_v22 = vmax.f32 %v3878_v23, 0.0  ;;  %v4007_v47 = vpack.c.bf16 %v3942_v14, %v3940_v53 }
 0x650   : > { %v4008_v60 = vpack.c.bf16 %v3943_v22, %v3941_v18 }
 0x652   : > { %4359 = vmatprep.mubr.bf16.mxu0 %v4008_v60 }
 0x653   : > { %4360 = vmatmul.mubr.bf16.gmra.mxu0 %v4007_v47 }
 0x69b   : > { %v4211_v42 = vpop.f32.mrf.mxu0 }
 0x69c   : > { %v4212_v8 = vadd.f32 %v4211_v42, %v6510_v57 }
 0x69d   : > { %v4213_v63 = vpop.f32.mrf.mxu0 }
 0x69e   : > { %v4370_v32 = vmax.f32 %v4212_v8, 0.0  ;;  %v4214_v7 = vadd.f32 %v4213_v63, %v6515_v0 }
 0x69f   : > { %v4215_v11 = vpop.f32.mrf.mxu0 }
 0x6a0   : > { %4434 = vst [vmem:[%s6519_s13] sm:$0xff] %v4370_v32  ;;  %v4371_v51 = vmax.f32 %v4214_v7, 0.0  ;;  %v4216_v19 = vadd.f32 %v4215_v11, %v6510_v57 }
 0x6a1   : > { %v4217_v49 = vpop.f32.mrf.mxu0 }
 0x6a2   : > { %4435 = vst [vmem:[%s6519_s13 + $0x8] sm:$0xff] %v4371_v51  ;;  %v4372_v1 = vmax.f32 %v4216_v19, 0.0  ;;  %v4218_v27 = vadd.f32 %v4217_v49, %v6515_v0 }
 0x6a3   : > { %v4221_v17 = vpop.f32.mrf.mxu0 }
 0x6a4   : > { %4436 = vst [vmem:[%s6519_s13 + $0x10] sm:$0xff] %v4372_v1  ;;  %v4373_v38 = vmax.f32 %v4218_v27, 0.0  ;;  %v4222_v15 = vadd.f32 %v4221_v17, %v6510_v57 }
 0x6a5   : > { %v4223_v33 = vpop.f32.mrf.mxu0 }
 0x6a6   : > { %4437 = vst [vmem:[%s6519_s13 + $0x18] sm:$0xff] %v4373_v38  ;;  %v4374_v20 = vmax.f32 %v4222_v15, 0.0  ;;  %v4224_v9 = vadd.f32 %v4223_v33, %v6515_v0 }
 0x6a7   : > { %v4225_v3 = vpop.f32.mrf.mxu0 }
 0x6a8   : > { %4438 = vst [vmem:[%s6519_s13 + $0x20] sm:$0xff] %v4374_v20  ;;  %v4375_v30 = vmax.f32 %v4224_v9, 0.0  ;;  %v4226_v62 = vadd.f32 %v4225_v3, %v6510_v57 }
 0x6a9   : > { %v4227_v4 = vpop.f32.mrf.mxu0 }
 0x6aa   : > { %4439 = vst [vmem:[%s6519_s13 + $0x28] sm:$0xff] %v4375_v30  ;;  %v4376_v45 = vmax.f32 %v4226_v62, 0.0  ;;  %v4228_v43 = vadd.f32 %v4227_v4, %v6515_v0 }
 0x6ab   : > { %v4231_v41 = vpop.f32.mrf.mxu0 }
 0x6ac   : > { %4440 = vst [vmem:[%s6519_s13 + $0x30] sm:$0xff] %v4376_v45  ;;  %v4377_v61 = vmax.f32 %v4228_v43, 0.0  ;;  %v4232_v35 = vadd.f32 %v4231_v41, %v6510_v57 }
 0x6ad   : > { %v4233_v26 = vpop.f32.mrf.mxu0 }
 0x6ae   : > { %4441 = vst [vmem:[%s6519_s13 + $0x38] sm:$0xff] %v4377_v61  ;;  %v4378_v58 = vmax.f32 %v4232_v35, 0.0  ;;  %v4234_v52 = vadd.f32 %v4233_v26, %v6515_v0 }
 0x6af   : > { %v4235_v46 = vpop.f32.mrf.mxu0 }
 0x6b0   : > { %4442 = vst [vmem:[%s6519_s13 + $0x40] sm:$0xff] %v4378_v58  ;;  %v4379_v50 = vmax.f32 %v4234_v52, 0.0  ;;  %v4236_v10 = vadd.f32 %v4235_v46, %v6510_v57 }
 0x6b1   : > { %v4237_v16 = vpop.f32.mrf.mxu0 }
 0x6b2   : > { %4443 = vst [vmem:[%s6519_s13 + $0x48] sm:$0xff] %v4379_v50  ;;  %v4380_v6 = vmax.f32 %v4236_v10, 0.0  ;;  %v4238_v34 = vadd.f32 %v4237_v16, %v6515_v0 }
 0x6b3   : > { %v4241_v37 = vpop.f32.mrf.mxu0 }
 0x6b4   : > { %4444 = vst [vmem:[%s6519_s13 + $0x50] sm:$0xff] %v4380_v6  ;;  %v4381_v44 = vmax.f32 %v4238_v34, 0.0  ;;  %v4242_v39 = vadd.f32 %v4241_v37, %v6510_v57 }
 0x6b5   : > { %v4243_v13 = vpop.f32.mrf.mxu0 }
 0x6b6   : > { %4445 = vst [vmem:[%s6519_s13 + $0x58] sm:$0xff] %v4381_v44  ;;  %v4382_v29 = vmax.f32 %v4242_v39, 0.0  ;;  %v4244_v28 = vadd.f32 %v4243_v13, %v6515_v0 }
 0x6b7   : > { %v4245_v12 = vpop.f32.mrf.mxu0 }
 0x6b8   : > { %4446 = vst [vmem:[%s6519_s13 + $0x60] sm:$0xff] %v4382_v29  ;;  %v4383_v48 = vmax.f32 %v4244_v28, 0.0  ;;  %v4246_v59 = vadd.f32 %v4245_v12, %v6510_v57 }
 0x6b9   : > { %v4247_v21 = vpop.f32.mrf.mxu0 }
 0x6ba   : > { %4447 = vst [vmem:[%s6519_s13 + $0x68] sm:$0xff] %v4383_v48  ;;  %v4384_v36 = vmax.f32 %v4246_v59, 0.0  ;;  %v4248_v5 = vadd.f32 %v4247_v21, %v6515_v0 }
 0x6bb   : > { %v4251_v2 = vpop.f32.mrf.mxu0 }
 0x6bc   : > { %4448 = vst [vmem:[%s6519_s13 + $0x70] sm:$0xff] %v4384_v36  ;;  %v4385_v24 = vmax.f32 %v4248_v5, 0.0  ;;  %v4252_v54 = vadd.f32 %v4251_v2, %v6510_v57 }
 0x6bd   : > { %v4253_v31 = vpop.f32.mrf.mxu0 }
 0x6be   : > { %4449 = vst [vmem:[%s6519_s13 + $0x78] sm:$0xff] %v4385_v24  ;;  %v4386_v56 = vmax.f32 %v4252_v54, 0.0  ;;  %v4254_v40 = vadd.f32 %v4253_v31, %v6515_v0 }
 0x6bf   : > { %v4255_v55 = vpop.f32.mrf.mxu0 }
 0x6c0   : > { %4450 = vst [vmem:[%s6519_s13 + $0x80] sm:$0xff] %v4386_v56  ;;  %v4387_v23 = vmax.f32 %v4254_v40, 0.0  ;;  %v4256_v14 = vadd.f32 %v4255_v55, %v6510_v57 }
 0x6c1   : > { %v4257_v18 = vpop.f32.mrf.mxu0 }
 0x6c2   : > { %4451 = vst [vmem:[%s6519_s13 + $0x88] sm:$0xff] %v4387_v23  ;;  %v4388_v22 = vmax.f32 %v4256_v14, 0.0  ;;  %v4258_v53 = vadd.f32 %v4257_v18, %v6515_v0 }
 0x6c3   : > { %v4261_v60 = vpop.f32.mrf.mxu0 }
 0x6c4   : > { %4452 = vst [vmem:[%s6519_s13 + $0x90] sm:$0xff] %v4388_v22  ;;  %v4389_v47 = vmax.f32 %v4258_v53, 0.0  ;;  %v4262_v25 = vadd.f32 %v4261_v60, %v6510_v57 }
 0x6c5   : > { %v4263_v42 = vpop.f32.mrf.mxu0 }
 0x6c6   : > { %4453 = vst [vmem:[%s6519_s13 + $0x98] sm:$0xff] %v4389_v47  ;;  %v4390_v8 = vmax.f32 %v4262_v25, 0.0  ;;  %v4264_v63 = vadd.f32 %v4263_v42, %v6515_v0 }
 0x6c7   : > { %v4265_v32 = vpop.f32.mrf.mxu0 }
 0x6c8   : > { %4454 = vst [vmem:[%s6519_s13 + $0xa0] sm:$0xff] %v4390_v8  ;;  %v4391_v7 = vmax.f32 %v4264_v63, 0.0  ;;  %v4266_v11 = vadd.f32 %v4265_v32, %v6510_v57 }
 0x6c9   : > { %v4267_v51 = vpop.f32.mrf.mxu0 }
 0x6ca   : > { %4455 = vst [vmem:[%s6519_s13 + $0xa8] sm:$0xff] %v4391_v7  ;;  %v4392_v19 = vmax.f32 %v4266_v11, 0.0  ;;  %v4268_v49 = vadd.f32 %v4267_v51, %v6515_v0 }
 0x6cb   : > { %v4271_v1 = vpop.f32.mrf.mxu0 }
 0x6cc   : > { %4456 = vst [vmem:[%s6519_s13 + $0xb0] sm:$0xff] %v4392_v19  ;;  %v4393_v27 = vmax.f32 %v4268_v49, 0.0  ;;  %v4272_v17 = vadd.f32 %v4271_v1, %v6510_v57 }
 0x6cd   : > { %v4273_v38 = vpop.f32.mrf.mxu0 }
 0x6ce   : > { %4457 = vst [vmem:[%s6519_s13 + $0xb8] sm:$0xff] %v4393_v27  ;;  %v4394_v15 = vmax.f32 %v4272_v17, 0.0  ;;  %v4274_v33 = vadd.f32 %v4273_v38, %v6515_v0 }
 0x6cf   : > { %v4275_v20 = vpop.f32.mrf.mxu0 }
 0x6d0   : > { %4458 = vst [vmem:[%s6519_s13 + $0xc0] sm:$0xff] %v4394_v15  ;;  %v4395_v9 = vmax.f32 %v4274_v33, 0.0  ;;  %v4276_v3 = vadd.f32 %v4275_v20, %v6510_v57 }
 0x6d1   : > { %v4277_v30 = vpop.f32.mrf.mxu0 }
 0x6d2   : > { %4459 = vst [vmem:[%s6519_s13 + $0xc8] sm:$0xff] %v4395_v9  ;;  %v4396_v62 = vmax.f32 %v4276_v3, 0.0  ;;  %v4278_v4 = vadd.f32 %v4277_v30, %v6515_v0 }
 0x6d3   : > { %v4281_v45 = vpop.f32.mrf.mxu0 }
 0x6d4   : > { %4460 = vst [vmem:[%s6519_s13 + $0xd0] sm:$0xff] %v4396_v62  ;;  %v4397_v43 = vmax.f32 %v4278_v4, 0.0  ;;  %v4282_v41 = vadd.f32 %v4281_v45, %v6510_v57 }
 0x6d5   : > { %v4283_v61 = vpop.f32.mrf.mxu0 }
 0x6d6   : > { %4461 = vst [vmem:[%s6519_s13 + $0xd8] sm:$0xff] %v4397_v43  ;;  %v4398_v35 = vmax.f32 %v4282_v41, 0.0  ;;  %v4284_v26 = vadd.f32 %v4283_v61, %v6515_v0 }
 0x6d7   : > { %v4285_v58 = vpop.f32.mrf.mxu0 }
 0x6d8   : > { %4462 = vst [vmem:[%s6519_s13 + $0xe0] sm:$0xff] %v4398_v35  ;;  %v4399_v52 = vmax.f32 %v4284_v26, 0.0  ;;  %v4286_v46 = vadd.f32 %v4285_v58, %v6510_v57 }
 0x6d9   : > { %v4287_v50 = vpop.f32.mrf.mxu0 }
 0x6da   : > { %4463 = vst [vmem:[%s6519_s13 + $0xe8] sm:$0xff] %v4399_v52  ;;  %v4400_v10 = vmax.f32 %v4286_v46, 0.0  ;;  %v4288_v16 = vadd.f32 %v4287_v50, %v6515_v0 }
 0x6db   : > { %v4291_v6 = vpop.f32.mrf.mxu0 }
 0x6dc   : > { %4464 = vst [vmem:[%s6519_s13 + $0xf0] sm:$0xff] %v4400_v10  ;;  %v4401_v34 = vmax.f32 %v4288_v16, 0.0  ;;  %v4292_v37 = vadd.f32 %v4291_v6, %v6510_v57 }
 0x6dd   : > { %v4293_v44 = vpop.f32.mrf.mxu0 }
 0x6de   : > { %4465 = vst [vmem:[%s6519_s13 + $0xf8] sm:$0xff] %v4401_v34  ;;  %v4402_v39 = vmax.f32 %v4292_v37, 0.0  ;;  %v4294_v13 = vadd.f32 %v4293_v44, %v6515_v0 }
 0x6df   : > { %v4295_v29 = vpop.f32.mrf.mxu0 }
 0x6e0   : > { %4466 = vst [vmem:[%s6519_s13 + $0x100] sm:$0xff] %v4402_v39  ;;  %v4403_v28 = vmax.f32 %v4294_v13, 0.0  ;;  %v4296_v12 = vadd.f32 %v4295_v29, %v6510_v57 }
 0x6e1   : > { %v4297_v48 = vpop.f32.mrf.mxu0 }
 0x6e2   : > { %4467 = vst [vmem:[%s6519_s13 + $0x108] sm:$0xff] %v4403_v28  ;;  %v4404_v59 = vmax.f32 %v4296_v12, 0.0  ;;  %v4298_v21 = vadd.f32 %v4297_v48, %v6515_v0 }
 0x6e3   : > { %v4301_v36 = vpop.f32.mrf.mxu0 }
 0x6e4   : > { %4468 = vst [vmem:[%s6519_s13 + $0x110] sm:$0xff] %v4404_v59  ;;  %v4405_v5 = vmax.f32 %v4298_v21, 0.0  ;;  %v4302_v2 = vadd.f32 %v4301_v36, %v6510_v57 }
 0x6e5   : > { %v4303_v24 = vpop.f32.mrf.mxu0 }
 0x6e6   : > { %4469 = vst [vmem:[%s6519_s13 + $0x118] sm:$0xff] %v4405_v5  ;;  %v4406_v54 = vmax.f32 %v4302_v2, 0.0  ;;  %v4304_v31 = vadd.f32 %v4303_v24, %v6515_v0 }
 0x6e7   : > { %v4305_v56 = vpop.f32.mrf.mxu0 }
 0x6e8   : > { %4470 = vst [vmem:[%s6519_s13 + $0x120] sm:$0xff] %v4406_v54  ;;  %v4407_v40 = vmax.f32 %v4304_v31, 0.0  ;;  %v4306_v55 = vadd.f32 %v4305_v56, %v6510_v57 }
 0x6e9   : > { %v4307_v23 = vpop.f32.mrf.mxu0 }
 0x6ea   : > { %4471 = vst [vmem:[%s6519_s13 + $0x128] sm:$0xff] %v4407_v40  ;;  %v4408_v14 = vmax.f32 %v4306_v55, 0.0  ;;  %v4308_v18 = vadd.f32 %v4307_v23, %v6515_v0 }
 0x6eb   : > { %v4311_v22 = vpop.f32.mrf.mxu0 }
 0x6ec   : > { %4472 = vst [vmem:[%s6519_s13 + $0x130] sm:$0xff] %v4408_v14  ;;  %v4409_v53 = vmax.f32 %v4308_v18, 0.0  ;;  %v4312_v60 = vadd.f32 %v4311_v22, %v6510_v57 }
 0x6ed   : > { %v4313_v47 = vpop.f32.mrf.mxu0 }
 0x6ee   : > { %4473 = vst [vmem:[%s6519_s13 + $0x138] sm:$0xff] %v4409_v53  ;;  %v4410_v25 = vmax.f32 %v4312_v60, 0.0  ;;  %v4314_v42 = vadd.f32 %v4313_v47, %v6515_v0 }
 0x6ef   : > { %v4315_v8 = vpop.f32.mrf.mxu0 }
 0x6f0   : > { %4474 = vst [vmem:[%s6519_s13 + $0x140] sm:$0xff] %v4410_v25  ;;  %v4411_v63 = vmax.f32 %v4314_v42, 0.0  ;;  %v4316_v32 = vadd.f32 %v4315_v8, %v6510_v57 }
 0x6f1   : > { %v4317_v7 = vpop.f32.mrf.mxu0 }
 0x6f2   : > { %4475 = vst [vmem:[%s6519_s13 + $0x148] sm:$0xff] %v4411_v63  ;;  %v4412_v11 = vmax.f32 %v4316_v32, 0.0  ;;  %v4318_v51 = vadd.f32 %v4317_v7, %v6515_v0 }
 0x6f3   : > { %v4321_v19 = vpop.f32.mrf.mxu0 }
 0x6f4   : > { %4476 = vst [vmem:[%s6519_s13 + $0x150] sm:$0xff] %v4412_v11  ;;  %v4413_v49 = vmax.f32 %v4318_v51, 0.0  ;;  %v4322_v1 = vadd.f32 %v4321_v19, %v6510_v57 }
 0x6f5   : > { %v4323_v27 = vpop.f32.mrf.mxu0 }
 0x6f6   : > { %4477 = vst [vmem:[%s6519_s13 + $0x158] sm:$0xff] %v4413_v49  ;;  %v4414_v17 = vmax.f32 %v4322_v1, 0.0  ;;  %v4324_v38 = vadd.f32 %v4323_v27, %v6515_v0 }
 0x6f7   : > { %v4325_v15 = vpop.f32.mrf.mxu0 }
 0x6f8   : > { %4478 = vst [vmem:[%s6519_s13 + $0x160] sm:$0xff] %v4414_v17  ;;  %v4415_v33 = vmax.f32 %v4324_v38, 0.0  ;;  %v4326_v20 = vadd.f32 %v4325_v15, %v6510_v57 }
 0x6f9   : > { %v4327_v9 = vpop.f32.mrf.mxu0 }
 0x6fa   : > { %4479 = vst [vmem:[%s6519_s13 + $0x168] sm:$0xff] %v4415_v33  ;;  %v4416_v3 = vmax.f32 %v4326_v20, 0.0  ;;  %v4328_v30 = vadd.f32 %v4327_v9, %v6515_v0 }
 0x6fb   : > { %v4331_v62 = vpop.f32.mrf.mxu0 }
 0x6fc   : > { %4480 = vst [vmem:[%s6519_s13 + $0x170] sm:$0xff] %v4416_v3  ;;  %v4417_v4 = vmax.f32 %v4328_v30, 0.0  ;;  %v4332_v45 = vadd.f32 %v4331_v62, %v6510_v57 }
 0x6fd   : > { %v4333_v43 = vpop.f32.mrf.mxu0 }
 0x6fe   : > { %4481 = vst [vmem:[%s6519_s13 + $0x178] sm:$0xff] %v4417_v4  ;;  %v4418_v41 = vmax.f32 %v4332_v45, 0.0  ;;  %v4334_v61 = vadd.f32 %v4333_v43, %v6515_v0 }
 0x6ff   : > { %v4335_v35 = vpop.f32.mrf.mxu0 }
 0x700   : > { %4482 = vst [vmem:[%s6519_s13 + $0x180] sm:$0xff] %v4418_v41  ;;  %v4419_v26 = vmax.f32 %v4334_v61, 0.0  ;;  %v4336_v58 = vadd.f32 %v4335_v35, %v6510_v57 }
 0x701   : > { %v4337_v52 = vpop.f32.mrf.mxu0 }
 0x702   : > { %4483 = vst [vmem:[%s6519_s13 + $0x188] sm:$0xff] %v4419_v26  ;;  %v4420_v46 = vmax.f32 %v4336_v58, 0.0  ;;  %v4338_v50 = vadd.f32 %v4337_v52, %v6515_v0 }
 0x703   : > { %v4341_v10 = vpop.f32.mrf.mxu0 }
 0x704   : > { %4484 = vst [vmem:[%s6519_s13 + $0x190] sm:$0xff] %v4420_v46  ;;  %v4421_v16 = vmax.f32 %v4338_v50, 0.0  ;;  %v4342_v6 = vadd.f32 %v4341_v10, %v6510_v57 }
 0x705   : > { %v4343_v34 = vpop.f32.mrf.mxu0 }
 0x706   : > { %4485 = vst [vmem:[%s6519_s13 + $0x198] sm:$0xff] %v4421_v16  ;;  %v4422_v37 = vmax.f32 %v4342_v6, 0.0  ;;  %v4344_v44 = vadd.f32 %v4343_v34, %v6515_v0 }
 0x707   : > { %v4345_v39 = vpop.f32.mrf.mxu0 }
 0x708   : > { %4486 = vst [vmem:[%s6519_s13 + $0x1a0] sm:$0xff] %v4422_v37  ;;  %v4423_v13 = vmax.f32 %v4344_v44, 0.0  ;;  %v4346_v29 = vadd.f32 %v4345_v39, %v6510_v57 }
 0x709   : > { %v4347_v28 = vpop.f32.mrf.mxu0 }
 0x70a   : > { %4487 = vst [vmem:[%s6519_s13 + $0x1a8] sm:$0xff] %v4423_v13  ;;  %v4424_v12 = vmax.f32 %v4346_v29, 0.0  ;;  %v4348_v48 = vadd.f32 %v4347_v28, %v6515_v0 }
 0x70b   : > { %v4351_v59 = vpop.f32.mrf.mxu0 }
 0x70c   : > { %4488 = vst [vmem:[%s6519_s13 + $0x1b0] sm:$0xff] %v4424_v12  ;;  %v4425_v21 = vmax.f32 %v4348_v48, 0.0  ;;  %v4352_v36 = vadd.f32 %v4351_v59, %v6510_v57 }
 0x70d   : > { %v4353_v5 = vpop.f32.mrf.mxu0 }
 0x70e   : > { %4489 = vst [vmem:[%s6519_s13 + $0x1b8] sm:$0xff] %v4425_v21  ;;  %v4426_v2 = vmax.f32 %v4352_v36, 0.0  ;;  %v4354_v24 = vadd.f32 %v4353_v5, %v6515_v0 }
 0x70f   : > { %v4355_v54 = vpop.f32.mrf.mxu0 }
 0x710   : > { %4490 = vst [vmem:[%s6519_s13 + $0x1c0] sm:$0xff] %v4426_v2  ;;  %v4427_v31 = vmax.f32 %v4354_v24, 0.0  ;;  %v4356_v56 = vadd.f32 %v4355_v54, %v6510_v57 }
 0x711   : > { %v4357_v40 = vpop.f32.mrf.mxu0 }
 0x712   : > { %4491 = vst [vmem:[%s6519_s13 + $0x1c8] sm:$0xff] %v4427_v31  ;;  %v4428_v55 = vmax.f32 %v4356_v56, 0.0  ;;  %v4358_v23 = vadd.f32 %v4357_v40, %v6515_v0 }
 0x713   : > { %v4361_v14 = vpop.f32.mrf.mxu0 }
 0x714   : > { %4492 = vst [vmem:[%s6519_s13 + $0x1d0] sm:$0xff] %v4428_v55  ;;  %v4429_v18 = vmax.f32 %v4358_v23, 0.0  ;;  %v4362_v22 = vadd.f32 %v4361_v14, %v6510_v57 }
 0x715   : > { %v4363_v53 = vpop.f32.mrf.mxu0 }
 0x716   : > { %4493 = vst [vmem:[%s6519_s13 + $0x1d8] sm:$0xff] %v4429_v18  ;;  %v4430_v60 = vmax.f32 %v4362_v22, 0.0  ;;  %v4364_v47 = vadd.f32 %v4363_v53, %v6515_v0 }
 0x717   : > { %v4365_v25 = vpop.f32.mrf.mxu0 }
 0x718   : > { %4494 = vst [vmem:[%s6519_s13 + $0x1e0] sm:$0xff] %v4430_v60  ;;  %v4431_v42 = vmax.f32 %v4364_v47, 0.0  ;;  %v4366_v8 = vadd.f32 %v4365_v25, %v6510_v57 }
 0x719   : > { %v4367_v63 = vpop.f32.mrf.mxu0 }
 0x71a   : > { %4495 = vst [vmem:[%s6519_s13 + $0x1e8] sm:$0xff] %v4431_v42  ;;  %v4432_v32 = vmax.f32 %v4366_v8, 0.0  ;;  %v4368_v7 = vadd.f32 %v4367_v63, %v6515_v0 }
 0x71c   : > { %4496 = vst [vmem:[%s6519_s13 + $0x1f0] sm:$0xff] %v4432_v32  ;;  %v4433_v11 = vmax.f32 %v4368_v7, 0.0 }
 0x71e   : > { %4497 = vst [vmem:[%s6519_s13 + $0x1f8] sm:$0xff] %v4433_v11 }
 0x71f   : > { %5346 = shalt.err (!%p5343_p0)
}
 0x720   : > { %s5347_s6 = scalar_lea.hbm %s6650_s27, 8192  ;;  %s5351_s10 = scalar_lea.hbm %s6702_s4, 32768 }
 0x721   : > { %p5348_p1 = scmp.ne.s32.totalorder %s6650_s27, %s5347_s6  ;;  %p5352_p4 = scmp.lt.s32.totalorder %s6650_s27, %s6702_s4 }
 0x722   : > { %p5353_p7 = scmp.lt.s32.totalorder %s5351_s10, %s5347_s6 }
 0x723   : > { %p5349_p2 = pnand %p5348_p1, %p5469_p5 }
 0x724   : > { %p5354_p6 = por %p5353_p7, %p5352_p4 }
 0x725   : > { %p5350_p3 = pneg %p5349_p2 }
 0x727   : > { %p5355_p8 = pnand %p5354_p6, %p5350_p3 }
 0x729   : > { %5358 = shalt.err (!%p5355_p8)
}
 0x72a   : > { %s5404_s12 = smov 256   ;;  %s5405_s13 = smov 16  }
 0x72b   : > { %4890 = dma.vmem_to_hbm [thread:$0]  (%p5469_p5), %s6652_s20, 8192, %s6650_s27, %s6658_s19, %s5404_s12, %s5404_s12, %s5405_s13  }
 0x72c PF: > { %p4902_p9 = scmp.ge.s32.totalorder %s5397_s18, 2  ;;  %s4528_s14 = sand.u32 1, %s5385_s15  }
 0x72d   : > { %p6758_p10 = scmp.ne.s32.totalorder %s6704_s26, 0  ;;  %s4529_s22 = scalar_lea.sflag [#allocation4], %s4528_s14 }
 0x72f   : > { %p4897_p11 = pnand %p4902_p9, %p6758_p10 }
 0x731   : > { %p4898_p12 = pneg %p4897_p11 }
 0x733   : > { %5380 = dma.done.wait (%p4898_p12), %s4529_s22, 8192  }
 0x734   : > { %5382 = vsyncadd (%p4898_p12), %s4529_s22, 4294959104  ;;  %p15_p13 = scmp.ge.s32.totalorder %s5456_s21, 6   ;;  %s6759_s15 = smov %s5389_s16 }
 0x735   : > { %s6760_s16 = smov %s5393_s17  ;;  %s6761_s17 = smov %s5467_s24 }
 0x736   : > { %s6762_s18 = smov %s5456_s21  ;;  %17 = sbr.rel (!%p15_p13) target bundleno = 4 (0x4), region = 82 }
 0x73b   :  { %4534 = vsyncpa [#allocation3], 1 }
 0x73c   :  { %4536 = vsyncpa [#allocation3 + $0x1], 1 }
 0x73d   :  { %4537 = vsyncpa [#allocation4], 1 }
 0x73e   :  { %4539 = vsyncpa [#allocation4 + $0x1], 1 }

</bundles_post_ra>
